<compile_context>
chip_gen: v7x
topology: tpu7x:2x2x1
jax: 0.10.0
libtpu: 0.0.40
codegen_flags: <defaults>
</compile_context>

<pallas_src>
import functools

import jax
import jax.numpy as jnp
from jax import lax
from jax.experimental import pallas as pl
from jax.experimental.pallas import tpu as pltpu


# ---------------------------------------------------------------------------
# Fused InceptionA kernel (one image per grid step, everything in VMEM)
# ---------------------------------------------------------------------------

def _inception_a_kernel(x_ref, w1_ref, b1_ref, w5_ref, b5_ref,
                        w3a_ref, b3a_ref, w3b_ref, b3b_ref,
                        o_ref, pad_ref, cols_ref, *, H, W):
    """Layout: channels on sublanes, flattened spatial H*W on lanes.

      x_ref    : (1, Cin, H*W)
      w1_ref   : (72, Cin)    merged 1x1 weights [b1x1 | b5x5_1 | b3x3_1 | bpool]
      b1_ref   : (72, 1)
      w5_ref   : (24, 400)    5x5 conv weight as (Cout, K*K*Cin)
      w3a_ref  : (24, 144)    3x3 conv (16 -> 24)
      w3b_ref  : (24, 216)    3x3 conv (24 -> 24)
      o_ref    : (1, 88, H*W) concatenated branch outputs
      pad_ref  : (24, H*W + 2*pad_off) zero-padded flat-spatial scratch
      cols_ref : (400, H*W)   im2col scratch (sized for the 5x5 conv)
    """
    HW = H * W
    pad_off = (pad_ref.shape[1] - HW) // 2      # lane-aligned start of the data

    # Zero once per invocation; the border lanes are never written afterwards.
    pad_ref[...] = jnp.zeros(pad_ref.shape, jnp.float32)

    def shifted_taps(v, K, pad):
        """(tap_index, shifted copy) for all K*K taps of a 'same' KxK window.

        The shifted copy s obeys  s[c, y*W + x] = v[c, (y+dy-pad)*W + (x+dx-pad)]
        with zeros wherever the source pixel falls outside the image, i.e. it is
        exactly the im2col row block of tap (dy, dx).
        """
        C = v.shape[0]
        pad_ref[0:C, pad_off:pad_off + HW] = v          # lane-aligned store
        xcol = lax.broadcasted_iota(jnp.int32, (C, HW), 1) % W
        taps = []
        for dy in range(K):
            for dx in range(K):
                off = (dy - pad) * W + (dx - pad)       # flat spatial shift
                r = pad_ref[0:C, pad_off + off:pad_off + off + HW]
                ox = dx - pad
                if ox != 0:
                    # kill row-wraparound columns (they would read the adjacent
                    # image row instead of the zero padding)
                    xs = xcol + ox
                    keep = jnp.logical_and(xs >= 0, xs < W)
                    r = jnp.where(keep, r, jnp.zeros_like(r))
                taps.append((dy * K + dx, r))
        return taps

    def conv_same(v, w, b, K, pad):
        """'same' KxK conv: build im2col once, then a single MXU dot."""
        C = v.shape[0]
        for t_idx, r in shifted_taps(v, K, pad):
            cols_ref[t_idx * C:(t_idx + 1) * C, :] = r
        cols = cols_ref[0:K * K * C, :]                 # (K*K*C, HW)
        return jnp.dot(w, cols, preferred_element_type=jnp.float32) + b

    def avgpool3x3(v):
        """3x3 avg pool, stride 1, pad 1, count_include_pad=True (divisor 9)."""
        acc = jnp.zeros(v.shape, jnp.float32)
        for _, r in shifted_taps(v, 3, 1):
            acc = acc + r
        return acc * (1.0 / 9.0)

    xin = x_ref[0]                                      # (Cin, HW)

    # All four 1x1 convolutions fused into one matmul.  The pool branch's 1x1
    # commutes with the (linear) average pool; its bias is added after pooling
    # so count_include_pad stays exact at the borders.
    t = jnp.dot(w1_ref[...], xin, preferred_element_type=jnp.float32)   # (72, HW)
    b1 = b1_ref[...]
    tb = t[0:48] + b1[0:48]

    # branch1x1 -> output channels [0, 16)
    o_ref[0, 0:16, :] = tb[0:16]

    # branch5x5 -> output channels [16, 40)
    o_ref[0, 16:40, :] = conv_same(tb[16:32], w5_ref[...], b5_ref[...], K=5, pad=2)

    # branch3x3 -> output channels [40, 64)
    v3 = conv_same(tb[32:48], w3a_ref[...], b3a_ref[...], K=3, pad=1)
    v3 = conv_same(v3, w3b_ref[...], b3b_ref[...], K=3, pad=1)
    o_ref[0, 40:64, :] = v3

    # branch_pool -> output channels [64, 88)
    o_ref[0, 64:88, :] = avgpool3x3(t[48:72]) + b1[48:72]


# ---------------------------------------------------------------------------
# Wrapper: weight repacking + pallas_call setup (NCHW in, NCHW out, no copies)
# ---------------------------------------------------------------------------

def _to_matrix(w_hwio):
    """(K, K, Cin, Cout) HWIO -> (Cout, K*K*Cin), columns ordered (dy, dx, ci)."""
    K, _, Ci, Co = w_hwio.shape
    return jnp.transpose(w_hwio, (3, 0, 1, 2)).reshape(Co, K * K * Ci)


def _to_col(b):
    return b.reshape(-1, 1)


def inception_a_pallas(x_nchw, params):
    N, Cin, H, W = x_nchw.shape
    HW = H * W
    x = x_nchw.reshape(N, Cin, HW).astype(jnp.float32)      # free reshape of NCHW

    # Merged 1x1 weights: rows [0:16) branch1x1, [16:32) branch5x5_1,
    # [32:48) branch3x3_1, [48:72) branch_pool (its bias is applied post-pool).
    w1 = jnp.concatenate([_to_matrix(params["branch1x1"][0]),
                          _to_matrix(params["branch5x5_1"][0]),
                          _to_matrix(params["branch3x3_1"][0]),
                          _to_matrix(params["branch_pool"][0])], axis=0)
    b1 = jnp.concatenate([_to_col(params["branch1x1"][1]),
                          _to_col(params["branch5x5_1"][1]),
                          _to_col(params["branch3x3_1"][1]),
                          _to_col(params["branch_pool"][1])], axis=0)
    w5, b5 = _to_matrix(params["branch5x5_2"][0]), _to_col(params["branch5x5_2"][1])
    w3a, b3a = _to_matrix(params["branch3x3_2"][0]), _to_col(params["branch3x3_2"][1])
    w3b, b3b = _to_matrix(params["branch3x3_3"][0]), _to_col(params["branch3x3_3"][1])

    cout_total = 16 + 24 + 24 + 24                      # 88
    # Lane-aligned offset of the data region inside the flat padded scratch;
    # must cover the largest flat tap shift (2*W + 2 for the 5x5 conv).
    pad_off = ((2 * W + 2 + 127) // 128) * 128
    pad_width = HW + 2 * pad_off
    cols_rows = 25 * 16                                 # largest im2col (5x5, Cin=16)

    kernel = functools.partial(_inception_a_kernel, H=H, W=W)

    out = pl.pallas_call(
        kernel,
        out_shape=jax.ShapeDtypeStruct((N, cout_total, HW), jnp.float32),
        grid_spec=pltpu.PrefetchScalarGridSpec(
            num_scalar_prefetch=0,
            grid=(N,),
            in_specs=[
                pl.BlockSpec((1, Cin, HW), lambda n: (n, 0, 0)),
                pl.BlockSpec(w1.shape, lambda n: (0, 0)),
                pl.BlockSpec(b1.shape, lambda n: (0, 0)),
                pl.BlockSpec(w5.shape, lambda n: (0, 0)),
                pl.BlockSpec(b5.shape, lambda n: (0, 0)),
                pl.BlockSpec(w3a.shape, lambda n: (0, 0)),
                pl.BlockSpec(b3a.shape, lambda n: (0, 0)),
                pl.BlockSpec(w3b.shape, lambda n: (0, 0)),
                pl.BlockSpec(b3b.shape, lambda n: (0, 0)),
            ],
            out_specs=pl.BlockSpec((1, cout_total, HW), lambda n: (n, 0, 0)),
            scratch_shapes=[
                pltpu.VMEM((24, pad_width), jnp.float32),    # padded flat input
                pltpu.VMEM((cols_rows, HW), jnp.float32),    # im2col matrix
            ],
        ),
        compiler_params=pltpu.CompilerParams(
            dimension_semantics=("parallel",)),
    )(x, w1, b1, w5, b5, w3a, b3a, w3b, b3b)

    return out.reshape(N, cout_total, H, W)             # free reshape to NCHW


# ---------------------------------------------------------------------------
# Parameters (deterministic init; shapes follow the PyTorch module, HWIO)
# ---------------------------------------------------------------------------

def init_inception_a_params(key, in_channels):
    def conv_init(k, kh, kw, cin, cout):
        kw_, kb_ = jax.random.split(k)
        fan_in = cin * kh * kw
        scale = 1.0 / jnp.sqrt(jnp.float32(fan_in))
        w = jax.random.uniform(kw_, (kh, kw, cin, cout), jnp.float32,
                               -scale, scale)            # HWIO
        b = jax.random.uniform(kb_, (cout,), jnp.float32, -scale, scale)
        return w, b

    keys = jax.random.split(key, 7)
    p = {}
    p["branch1x1"] = conv_init(keys[0], 1, 1, in_channels, 16)
    p["branch5x5_1"] = conv_init(keys[1], 1, 1, in_channels, 16)
    p["branch5x5_2"] = conv_init(keys[2], 5, 5, 16, 24)
    p["branch3x3_1"] = conv_init(keys[3], 1, 1, in_channels, 16)
    p["branch3x3_2"] = conv_init(keys[4], 3, 3, 16, 24)
    p["branch3x3_3"] = conv_init(keys[5], 3, 3, 24, 24)
    p["branch_pool"] = conv_init(keys[6], 1, 1, in_channels, 24)
    return p


# ---------------------------------------------------------------------------
# Pure-JAX reference (correctness check)
# ---------------------------------------------------------------------------

def _conv_ref(x, w, b, pad):
    y = lax.conv_general_dilated(
        x, w, window_strides=(1, 1),
        padding=[(pad, pad), (pad, pad)],
        dimension_numbers=("NHWC", "HWIO", "NHWC"))
    return y + b


def inception_a_ref(x_nchw, params):
    x = jnp.transpose(x_nchw, (0, 2, 3, 1)).astype(jnp.float32)
    b1 = _conv_ref(x, *params["branch1x1"], 0)
    b5 = _conv_ref(_conv_ref(x, *params["branch5x5_1"], 0),
                   *params["branch5x5_2"], 2)
    b3 = _conv_ref(_conv_ref(_conv_ref(x, *params["branch3x3_1"], 0),
                             *params["branch3x3_2"], 1),
                   *params["branch3x3_3"], 1)
    xp = jnp.pad(x, ((0, 0), (1, 1), (1, 1), (0, 0)))
    pooled = lax.reduce_window(xp, 0.0, lax.add, (1, 3, 3, 1), (1, 1, 1, 1),
                               "VALID") / 9.0
    bp = _conv_ref(pooled, *params["branch_pool"], 0)
    out = jnp.concatenate([b1, b5, b3, bp], axis=-1)
    return jnp.transpose(out, (0, 3, 1, 2))


# ---------------------------------------------------------------------------

if __name__ == "__main__":
    key = jax.random.PRNGKey(0)
    k_x, k_p = jax.random.split(key)

    N, C, H, W = 2, 4, 16, 16
    x = jax.random.normal(k_x, (N, C, H, W), jnp.float32)
    params = init_inception_a_params(k_p, in_channels=C)

    out = jax.jit(inception_a_pallas)(x, params)
    out = jax.block_until_ready(out)
    assert out.shape == (N, 16 + 24 + 24 + 24, H, W), out.shape

    ref = inception_a_ref(x, params)
    if not jnp.allclose(out, ref, atol=1e-4, rtol=1e-4):
        err = jnp.max(jnp.abs(out - ref))
        raise AssertionError(
            f"Pallas InceptionA mismatch vs JAX reference (max abs err {err})")

    print("KERNEL_OK")
</pallas_src>

<mosaic_0001>
module attributes {stable_mosaic.version = 11 : i64} {
  func.func @_inception_a_kernel(%arg0: i32, %arg1: memref<1x4x256xf32, #tpu.memory_space<vmem>>, %arg2: memref<72x4xf32, #tpu.memory_space<vmem>>, %arg3: memref<72x1xf32, #tpu.memory_space<vmem>>, %arg4: memref<24x400xf32, #tpu.memory_space<vmem>>, %arg5: memref<24x1xf32, #tpu.memory_space<vmem>>, %arg6: memref<24x144xf32, #tpu.memory_space<vmem>>, %arg7: memref<24x1xf32, #tpu.memory_space<vmem>>, %arg8: memref<24x216xf32, #tpu.memory_space<vmem>>, %arg9: memref<24x1xf32, #tpu.memory_space<vmem>>, %arg10: memref<1x88x256xf32, #tpu.memory_space<vmem>>, %arg11: memref<24x512xf32, #tpu.memory_space<vmem>>, %arg12: memref<400x256xf32, #tpu.memory_space<vmem>>) attributes {dimension_semantics = [#tpu.dimension_semantics<parallel>], iteration_bounds = array<i64: 2>, scalar_prefetch = 0 : i64, scratch_operands = 2 : i64, tpu.core_type = #tpu.core_type<tc>, window_params = [{transform_indices = @transform_0, window_bounds = array<i64: 1, 4, 256>}, {pipeline_mode = #tpu.pipeline_mode<synchronous>, transform_indices = @transform_1, window_bounds = array<i64: 72, 4>}, {pipeline_mode = #tpu.pipeline_mode<synchronous>, transform_indices = @transform_2, window_bounds = array<i64: 72, 1>}, {pipeline_mode = #tpu.pipeline_mode<synchronous>, transform_indices = @transform_3, window_bounds = array<i64: 24, 400>}, {pipeline_mode = #tpu.pipeline_mode<synchronous>, transform_indices = @transform_4, window_bounds = array<i64: 24, 1>}, {pipeline_mode = #tpu.pipeline_mode<synchronous>, transform_indices = @transform_5, window_bounds = array<i64: 24, 144>}, {pipeline_mode = #tpu.pipeline_mode<synchronous>, transform_indices = @transform_6, window_bounds = array<i64: 24, 1>}, {pipeline_mode = #tpu.pipeline_mode<synchronous>, transform_indices = @transform_7, window_bounds = array<i64: 24, 216>}, {pipeline_mode = #tpu.pipeline_mode<synchronous>, transform_indices = @transform_8, window_bounds = array<i64: 24, 1>}, {transform_indices = @transform_9, window_bounds = array<i64: 1, 88, 256>}]} {
    %cst = arith.constant 0.000000e+00 : f32
    %0 = vector.broadcast %cst : f32 to vector<24x512xf32>
    %c0 = arith.constant 0 : index
    %c0_0 = arith.constant 0 : index
    %1 = vector.load %arg11[%c0, %c0_0] : memref<24x512xf32, #tpu.memory_space<vmem>>, vector<24x512xf32>
    tpu.vector_store %arg11[%c0, %c0_0], %0 {strides = array<i32>} : memref<24x512xf32, #tpu.memory_space<vmem>>, vector<24x512xf32>,
    %c0_1 = arith.constant 0 : index
    %c0_2 = arith.constant 0 : index
    %c0_3 = arith.constant 0 : index
    %2 = vector.load %arg1[%c0_1, %c0_2, %c0_3] : memref<1x4x256xf32, #tpu.memory_space<vmem>>, vector<1x4x256xf32>
    %3 = vector.shape_cast %2 : vector<1x4x256xf32> to vector<4x256xf32>
    %c0_4 = arith.constant 0 : index
    %c0_5 = arith.constant 0 : index
    %4 = vector.load %arg2[%c0_4, %c0_5] : memref<72x4xf32, #tpu.memory_space<vmem>>, vector<72x4xf32>
    %cst_6 = arith.constant dense<0.000000e+00> : vector<72x256xf32>
    %5 = tpu.matmul %4, %3, %cst_6 {dimension_numbers = #tpu.dot_dimension_numbers<[1], [0], [0], [1], [0, 0, 1, 1], [], []>} : vector<72x4xf32>, vector<4x256xf32>, vector<72x256xf32> -> vector<72x256xf32>
    %c0_7 = arith.constant 0 : index
    %c0_8 = arith.constant 0 : index
    %6 = vector.load %arg3[%c0_7, %c0_8] : memref<72x1xf32, #tpu.memory_space<vmem>>, vector<72x1xf32>
    %7 = vector.extract_strided_slice %5 {offsets = [0, 0], sizes = [48, 256], strides = [1, 1]} : vector<72x256xf32> to vector<48x256xf32>
    %8 = vector.extract_strided_slice %6 {offsets = [0, 0], sizes = [48, 1], strides = [1, 1]} : vector<72x1xf32> to vector<48x1xf32>
    %9 = vector.broadcast %8 : vector<48x1xf32> to vector<48x256xf32>
    %10 = arith.addf %7, %9 : vector<48x256xf32>
    %11 = vector.extract_strided_slice %10 {offsets = [0, 0], sizes = [16, 256], strides = [1, 1]} : vector<48x256xf32> to vector<16x256xf32>
    %c0_9 = arith.constant 0 : index
    %c0_10 = arith.constant 0 : index
    %c0_11 = arith.constant 0 : index
    %12 = vector.load %arg10[%c0_9, %c0_10, %c0_11] : memref<1x88x256xf32, #tpu.memory_space<vmem>>, vector<1x16x256xf32>
    %13 = vector.shape_cast %12 : vector<1x16x256xf32> to vector<16x256xf32>
    %14 = vector.shape_cast %11 : vector<16x256xf32> to vector<1x16x256xf32>
    tpu.vector_store %arg10[%c0_9, %c0_10, %c0_11], %14 {strides = array<i32>} : memref<1x88x256xf32, #tpu.memory_space<vmem>>, vector<1x16x256xf32>,
    %15 = vector.extract_strided_slice %10 {offsets = [16, 0], sizes = [16, 256], strides = [1, 1]} : vector<48x256xf32> to vector<16x256xf32>
    %c0_12 = arith.constant 0 : index
    %c0_13 = arith.constant 0 : index
    %16 = vector.load %arg4[%c0_12, %c0_13] : memref<24x400xf32, #tpu.memory_space<vmem>>, vector<24x400xf32>
    %c0_14 = arith.constant 0 : index
    %c0_15 = arith.constant 0 : index
    %17 = vector.load %arg5[%c0_14, %c0_15] : memref<24x1xf32, #tpu.memory_space<vmem>>, vector<24x1xf32>
    %c0_16 = arith.constant 0 : index
    %c128 = arith.constant 128 : index
    %18 = vector.load %arg11[%c0_16, %c128] : memref<24x512xf32, #tpu.memory_space<vmem>>, vector<16x256xf32>
    tpu.vector_store %arg11[%c0_16, %c128], %15 {strides = array<i32>} : memref<24x512xf32, #tpu.memory_space<vmem>>, vector<16x256xf32>,
    %19 = tpu.iota {dimensions = array<i32: 1>} : vector<16x256xi32>
    %c16_i32 = arith.constant 16 : i32
    %c0_i32 = arith.constant 0 : i32
    %20 = arith.cmpi eq, %c16_i32, %c0_i32 : i32
    %c1_i32 = arith.constant 1 : i32
    %21 = arith.select %20, %c1_i32, %c16_i32 : i32
    %22 = vector.broadcast %21 : i32 to vector<16x256xi32>
    %23 = arith.remsi %19, %22 : vector<16x256xi32>
    %c0_i32_17 = arith.constant 0 : i32
    %24 = vector.broadcast %c0_i32_17 : i32 to vector<16x256xi32>
    %25 = arith.cmpi ne, %23, %24 : vector<16x256xi32>
    %c0_i32_18 = arith.constant 0 : i32
    %26 = vector.broadcast %c0_i32_18 : i32 to vector<16x256xi32>
    %27 = arith.cmpi slt, %23, %26 : vector<16x256xi32>
    %c0_i32_19 = arith.constant 0 : i32
    %28 = arith.cmpi slt, %21, %c0_i32_19 : i32
    %29 = vector.broadcast %28 : i1 to vector<16x256xi1>
    %30 = vector.broadcast %29 : vector<16x256xi1> to vector<16x256xi1>
    %31 = arith.xori %27, %30 : vector<16x256xi1>
    %32 = arith.andi %31, %25 : vector<16x256xi1>
    %33 = vector.broadcast %21 : i32 to vector<16x256xi32>
    %34 = arith.addi %23, %33 : vector<16x256xi32>
    %35 = arith.select %32, %34, %23 : vector<16x256xi1>, vector<16x256xi32>
    %c0_20 = arith.constant 0 : index
    %c94 = arith.constant 94 : index
    %36 = vector.load %arg11[%c0_20, %c94] : memref<24x512xf32, #tpu.memory_space<vmem>>, vector<16x256xf32>
    %c-2_i32 = arith.constant -2 : i32
    %37 = vector.broadcast %c-2_i32 : i32 to vector<16x256xi32>
    %38 = arith.addi %35, %37 : vector<16x256xi32>
    %c0_i32_21 = arith.constant 0 : i32
    %39 = vector.broadcast %c0_i32_21 : i32 to vector<16x256xi32>
    %40 = arith.cmpi sge, %38, %39 : vector<16x256xi32>
    %c16_i32_22 = arith.constant 16 : i32
    %41 = vector.broadcast %c16_i32_22 : i32 to vector<16x256xi32>
    %42 = arith.cmpi slt, %38, %41 : vector<16x256xi32>
    %43 = arith.andi %40, %42 : vector<16x256xi1>
    %cst_23 = arith.constant 0.000000e+00 : f32
    %44 = vector.broadcast %cst_23 : f32 to vector<16x256xf32>
    %45 = arith.select %43, %36, %44 : vector<16x256xi1>, vector<16x256xf32>
    %c0_24 = arith.constant 0 : index
    %c95 = arith.constant 95 : index
    %46 = vector.load %arg11[%c0_24, %c95] : memref<24x512xf32, #tpu.memory_space<vmem>>, vector<16x256xf32>
    %c-1_i32 = arith.constant -1 : i32
    %47 = vector.broadcast %c-1_i32 : i32 to vector<16x256xi32>
    %48 = arith.addi %35, %47 : vector<16x256xi32>
    %c0_i32_25 = arith.constant 0 : i32
    %49 = vector.broadcast %c0_i32_25 : i32 to vector<16x256xi32>
    %50 = arith.cmpi sge, %48, %49 : vector<16x256xi32>
    %c16_i32_26 = arith.constant 16 : i32
    %51 = vector.broadcast %c16_i32_26 : i32 to vector<16x256xi32>
    %52 = arith.cmpi slt, %48, %51 : vector<16x256xi32>
    %53 = arith.andi %50, %52 : vector<16x256xi1>
    %cst_27 = arith.constant 0.000000e+00 : f32
    %54 = vector.broadcast %cst_27 : f32 to vector<16x256xf32>
    %55 = arith.select %53, %46, %54 : vector<16x256xi1>, vector<16x256xf32>
    %c0_28 = arith.constant 0 : index
    %c96 = arith.constant 96 : index
    %56 = vector.load %arg11[%c0_28, %c96] : memref<24x512xf32, #tpu.memory_space<vmem>>, vector<16x256xf32>
    %c0_29 = arith.constant 0 : index
    %c97 = arith.constant 97 : index
    %57 = vector.load %arg11[%c0_29, %c97] : memref<24x512xf32, #tpu.memory_space<vmem>>, vector<16x256xf32>
    %c1_i32_30 = arith.constant 1 : i32
    %58 = vector.broadcast %c1_i32_30 : i32 to vector<16x256xi32>
    %59 = arith.addi %35, %58 : vector<16x256xi32>
    %c0_i32_31 = arith.constant 0 : i32
    %60 = vector.broadcast %c0_i32_31 : i32 to vector<16x256xi32>
    %61 = arith.cmpi sge, %59, %60 : vector<16x256xi32>
    %c16_i32_32 = arith.constant 16 : i32
    %62 = vector.broadcast %c16_i32_32 : i32 to vector<16x256xi32>
    %63 = arith.cmpi slt, %59, %62 : vector<16x256xi32>
    %64 = arith.andi %61, %63 : vector<16x256xi1>
    %cst_33 = arith.constant 0.000000e+00 : f32
    %65 = vector.broadcast %cst_33 : f32 to vector<16x256xf32>
    %66 = arith.select %64, %57, %65 : vector<16x256xi1>, vector<16x256xf32>
    %c0_34 = arith.constant 0 : index
    %c98 = arith.constant 98 : index
    %67 = vector.load %arg11[%c0_34, %c98] : memref<24x512xf32, #tpu.memory_space<vmem>>, vector<16x256xf32>
    %c2_i32 = arith.constant 2 : i32
    %68 = vector.broadcast %c2_i32 : i32 to vector<16x256xi32>
    %69 = arith.addi %35, %68 : vector<16x256xi32>
    %c0_i32_35 = arith.constant 0 : i32
    %70 = vector.broadcast %c0_i32_35 : i32 to vector<16x256xi32>
    %71 = arith.cmpi sge, %69, %70 : vector<16x256xi32>
    %c16_i32_36 = arith.constant 16 : i32
    %72 = vector.broadcast %c16_i32_36 : i32 to vector<16x256xi32>
    %73 = arith.cmpi slt, %69, %72 : vector<16x256xi32>
    %74 = arith.andi %71, %73 : vector<16x256xi1>
    %cst_37 = arith.constant 0.000000e+00 : f32
    %75 = vector.broadcast %cst_37 : f32 to vector<16x256xf32>
    %76 = arith.select %74, %67, %75 : vector<16x256xi1>, vector<16x256xf32>
    %c0_38 = arith.constant 0 : index
    %c110 = arith.constant 110 : index
    %77 = vector.load %arg11[%c0_38, %c110] : memref<24x512xf32, #tpu.memory_space<vmem>>, vector<16x256xf32>
    %c-2_i32_39 = arith.constant -2 : i32
    %78 = vector.broadcast %c-2_i32_39 : i32 to vector<16x256xi32>
    %79 = arith.addi %35, %78 : vector<16x256xi32>
    %c0_i32_40 = arith.constant 0 : i32
    %80 = vector.broadcast %c0_i32_40 : i32 to vector<16x256xi32>
    %81 = arith.cmpi sge, %79, %80 : vector<16x256xi32>
    %c16_i32_41 = arith.constant 16 : i32
    %82 = vector.broadcast %c16_i32_41 : i32 to vector<16x256xi32>
    %83 = arith.cmpi slt, %79, %82 : vector<16x256xi32>
    %84 = arith.andi %81, %83 : vector<16x256xi1>
    %cst_42 = arith.constant 0.000000e+00 : f32
    %85 = vector.broadcast %cst_42 : f32 to vector<16x256xf32>
    %86 = arith.select %84, %77, %85 : vector<16x256xi1>, vector<16x256xf32>
    %c0_43 = arith.constant 0 : index
    %c111 = arith.constant 111 : index
    %87 = vector.load %arg11[%c0_43, %c111] : memref<24x512xf32, #tpu.memory_space<vmem>>, vector<16x256xf32>
    %c-1_i32_44 = arith.constant -1 : i32
    %88 = vector.broadcast %c-1_i32_44 : i32 to vector<16x256xi32>
    %89 = arith.addi %35, %88 : vector<16x256xi32>
    %c0_i32_45 = arith.constant 0 : i32
    %90 = vector.broadcast %c0_i32_45 : i32 to vector<16x256xi32>
    %91 = arith.cmpi sge, %89, %90 : vector<16x256xi32>
    %c16_i32_46 = arith.constant 16 : i32
    %92 = vector.broadcast %c16_i32_46 : i32 to vector<16x256xi32>
    %93 = arith.cmpi slt, %89, %92 : vector<16x256xi32>
    %94 = arith.andi %91, %93 : vector<16x256xi1>
    %cst_47 = arith.constant 0.000000e+00 : f32
    %95 = vector.broadcast %cst_47 : f32 to vector<16x256xf32>
    %96 = arith.select %94, %87, %95 : vector<16x256xi1>, vector<16x256xf32>
    %c0_48 = arith.constant 0 : index
    %c112 = arith.constant 112 : index
    %97 = vector.load %arg11[%c0_48, %c112] : memref<24x512xf32, #tpu.memory_space<vmem>>, vector<16x256xf32>
    %c0_49 = arith.constant 0 : index
    %c113 = arith.constant 113 : index
    %98 = vector.load %arg11[%c0_49, %c113] : memref<24x512xf32, #tpu.memory_space<vmem>>, vector<16x256xf32>
    %c1_i32_50 = arith.constant 1 : i32
    %99 = vector.broadcast %c1_i32_50 : i32 to vector<16x256xi32>
    %100 = arith.addi %35, %99 : vector<16x256xi32>
    %c0_i32_51 = arith.constant 0 : i32
    %101 = vector.broadcast %c0_i32_51 : i32 to vector<16x256xi32>
    %102 = arith.cmpi sge, %100, %101 : vector<16x256xi32>
    %c16_i32_52 = arith.constant 16 : i32
    %103 = vector.broadcast %c16_i32_52 : i32 to vector<16x256xi32>
    %104 = arith.cmpi slt, %100, %103 : vector<16x256xi32>
    %105 = arith.andi %102, %104 : vector<16x256xi1>
    %cst_53 = arith.constant 0.000000e+00 : f32
    %106 = vector.broadcast %cst_53 : f32 to vector<16x256xf32>
    %107 = arith.select %105, %98, %106 : vector<16x256xi1>, vector<16x256xf32>
    %c0_54 = arith.constant 0 : index
    %c114 = arith.constant 114 : index
    %108 = vector.load %arg11[%c0_54, %c114] : memref<24x512xf32, #tpu.memory_space<vmem>>, vector<16x256xf32>
    %c2_i32_55 = arith.constant 2 : i32
    %109 = vector.broadcast %c2_i32_55 : i32 to vector<16x256xi32>
    %110 = arith.addi %35, %109 : vector<16x256xi32>
    %c0_i32_56 = arith.constant 0 : i32
    %111 = vector.broadcast %c0_i32_56 : i32 to vector<16x256xi32>
    %112 = arith.cmpi sge, %110, %111 : vector<16x256xi32>
    %c16_i32_57 = arith.constant 16 : i32
    %113 = vector.broadcast %c16_i32_57 : i32 to vector<16x256xi32>
    %114 = arith.cmpi slt, %110, %113 : vector<16x256xi32>
    %115 = arith.andi %112, %114 : vector<16x256xi1>
    %cst_58 = arith.constant 0.000000e+00 : f32
    %116 = vector.broadcast %cst_58 : f32 to vector<16x256xf32>
    %117 = arith.select %115, %108, %116 : vector<16x256xi1>, vector<16x256xf32>
    %c0_59 = arith.constant 0 : index
    %c126 = arith.constant 126 : index
    %118 = vector.load %arg11[%c0_59, %c126] : memref<24x512xf32, #tpu.memory_space<vmem>>, vector<16x256xf32>
    %c-2_i32_60 = arith.constant -2 : i32
    %119 = vector.broadcast %c-2_i32_60 : i32 to vector<16x256xi32>
    %120 = arith.addi %35, %119 : vector<16x256xi32>
    %c0_i32_61 = arith.constant 0 : i32
    %121 = vector.broadcast %c0_i32_61 : i32 to vector<16x256xi32>
    %122 = arith.cmpi sge, %120, %121 : vector<16x256xi32>
    %c16_i32_62 = arith.constant 16 : i32
    %123 = vector.broadcast %c16_i32_62 : i32 to vector<16x256xi32>
    %124 = arith.cmpi slt, %120, %123 : vector<16x256xi32>
    %125 = arith.andi %122, %124 : vector<16x256xi1>
    %cst_63 = arith.constant 0.000000e+00 : f32
    %126 = vector.broadcast %cst_63 : f32 to vector<16x256xf32>
    %127 = arith.select %125, %118, %126 : vector<16x256xi1>, vector<16x256xf32>
    %c0_64 = arith.constant 0 : index
    %c127 = arith.constant 127 : index
    %128 = vector.load %arg11[%c0_64, %c127] : memref<24x512xf32, #tpu.memory_space<vmem>>, vector<16x256xf32>
    %c-1_i32_65 = arith.constant -1 : i32
    %129 = vector.broadcast %c-1_i32_65 : i32 to vector<16x256xi32>
    %130 = arith.addi %35, %129 : vector<16x256xi32>
    %c0_i32_66 = arith.constant 0 : i32
    %131 = vector.broadcast %c0_i32_66 : i32 to vector<16x256xi32>
    %132 = arith.cmpi sge, %130, %131 : vector<16x256xi32>
    %c16_i32_67 = arith.constant 16 : i32
    %133 = vector.broadcast %c16_i32_67 : i32 to vector<16x256xi32>
    %134 = arith.cmpi slt, %130, %133 : vector<16x256xi32>
    %135 = arith.andi %132, %134 : vector<16x256xi1>
    %cst_68 = arith.constant 0.000000e+00 : f32
    %136 = vector.broadcast %cst_68 : f32 to vector<16x256xf32>
    %137 = arith.select %135, %128, %136 : vector<16x256xi1>, vector<16x256xf32>
    %c0_69 = arith.constant 0 : index
    %c128_70 = arith.constant 128 : index
    %138 = vector.load %arg11[%c0_69, %c128_70] : memref<24x512xf32, #tpu.memory_space<vmem>>, vector<16x256xf32>
    %c0_71 = arith.constant 0 : index
    %c129 = arith.constant 129 : index
    %139 = vector.load %arg11[%c0_71, %c129] : memref<24x512xf32, #tpu.memory_space<vmem>>, vector<16x256xf32>
    %c1_i32_72 = arith.constant 1 : i32
    %140 = vector.broadcast %c1_i32_72 : i32 to vector<16x256xi32>
    %141 = arith.addi %35, %140 : vector<16x256xi32>
    %c0_i32_73 = arith.constant 0 : i32
    %142 = vector.broadcast %c0_i32_73 : i32 to vector<16x256xi32>
    %143 = arith.cmpi sge, %141, %142 : vector<16x256xi32>
    %c16_i32_74 = arith.constant 16 : i32
    %144 = vector.broadcast %c16_i32_74 : i32 to vector<16x256xi32>
    %145 = arith.cmpi slt, %141, %144 : vector<16x256xi32>
    %146 = arith.andi %143, %145 : vector<16x256xi1>
    %cst_75 = arith.constant 0.000000e+00 : f32
    %147 = vector.broadcast %cst_75 : f32 to vector<16x256xf32>
    %148 = arith.select %146, %139, %147 : vector<16x256xi1>, vector<16x256xf32>
    %c0_76 = arith.constant 0 : index
    %c130 = arith.constant 130 : index
    %149 = vector.load %arg11[%c0_76, %c130] : memref<24x512xf32, #tpu.memory_space<vmem>>, vector<16x256xf32>
    %c2_i32_77 = arith.constant 2 : i32
    %150 = vector.broadcast %c2_i32_77 : i32 to vector<16x256xi32>
    %151 = arith.addi %35, %150 : vector<16x256xi32>
    %c0_i32_78 = arith.constant 0 : i32
    %152 = vector.broadcast %c0_i32_78 : i32 to vector<16x256xi32>
    %153 = arith.cmpi sge, %151, %152 : vector<16x256xi32>
    %c16_i32_79 = arith.constant 16 : i32
    %154 = vector.broadcast %c16_i32_79 : i32 to vector<16x256xi32>
    %155 = arith.cmpi slt, %151, %154 : vector<16x256xi32>
    %156 = arith.andi %153, %155 : vector<16x256xi1>
    %cst_80 = arith.constant 0.000000e+00 : f32
    %157 = vector.broadcast %cst_80 : f32 to vector<16x256xf32>
    %158 = arith.select %156, %149, %157 : vector<16x256xi1>, vector<16x256xf32>
    %c0_81 = arith.constant 0 : index
    %c142 = arith.constant 142 : index
    %159 = vector.load %arg11[%c0_81, %c142] : memref<24x512xf32, #tpu.memory_space<vmem>>, vector<16x256xf32>
    %c-2_i32_82 = arith.constant -2 : i32
    %160 = vector.broadcast %c-2_i32_82 : i32 to vector<16x256xi32>
    %161 = arith.addi %35, %160 : vector<16x256xi32>
    %c0_i32_83 = arith.constant 0 : i32
    %162 = vector.broadcast %c0_i32_83 : i32 to vector<16x256xi32>
    %163 = arith.cmpi sge, %161, %162 : vector<16x256xi32>
    %c16_i32_84 = arith.constant 16 : i32
    %164 = vector.broadcast %c16_i32_84 : i32 to vector<16x256xi32>
    %165 = arith.cmpi slt, %161, %164 : vector<16x256xi32>
    %166 = arith.andi %163, %165 : vector<16x256xi1>
    %cst_85 = arith.constant 0.000000e+00 : f32
    %167 = vector.broadcast %cst_85 : f32 to vector<16x256xf32>
    %168 = arith.select %166, %159, %167 : vector<16x256xi1>, vector<16x256xf32>
    %c0_86 = arith.constant 0 : index
    %c143 = arith.constant 143 : index
    %169 = vector.load %arg11[%c0_86, %c143] : memref<24x512xf32, #tpu.memory_space<vmem>>, vector<16x256xf32>
    %c-1_i32_87 = arith.constant -1 : i32
    %170 = vector.broadcast %c-1_i32_87 : i32 to vector<16x256xi32>
    %171 = arith.addi %35, %170 : vector<16x256xi32>
    %c0_i32_88 = arith.constant 0 : i32
    %172 = vector.broadcast %c0_i32_88 : i32 to vector<16x256xi32>
    %173 = arith.cmpi sge, %171, %172 : vector<16x256xi32>
    %c16_i32_89 = arith.constant 16 : i32
    %174 = vector.broadcast %c16_i32_89 : i32 to vector<16x256xi32>
    %175 = arith.cmpi slt, %171, %174 : vector<16x256xi32>
    %176 = arith.andi %173, %175 : vector<16x256xi1>
    %cst_90 = arith.constant 0.000000e+00 : f32
    %177 = vector.broadcast %cst_90 : f32 to vector<16x256xf32>
    %178 = arith.select %176, %169, %177 : vector<16x256xi1>, vector<16x256xf32>
    %c0_91 = arith.constant 0 : index
    %c144 = arith.constant 144 : index
    %179 = vector.load %arg11[%c0_91, %c144] : memref<24x512xf32, #tpu.memory_space<vmem>>, vector<16x256xf32>
    %c0_92 = arith.constant 0 : index
    %c145 = arith.constant 145 : index
    %180 = vector.load %arg11[%c0_92, %c145] : memref<24x512xf32, #tpu.memory_space<vmem>>, vector<16x256xf32>
    %c1_i32_93 = arith.constant 1 : i32
    %181 = vector.broadcast %c1_i32_93 : i32 to vector<16x256xi32>
    %182 = arith.addi %35, %181 : vector<16x256xi32>
    %c0_i32_94 = arith.constant 0 : i32
    %183 = vector.broadcast %c0_i32_94 : i32 to vector<16x256xi32>
    %184 = arith.cmpi sge, %182, %183 : vector<16x256xi32>
    %c16_i32_95 = arith.constant 16 : i32
    %185 = vector.broadcast %c16_i32_95 : i32 to vector<16x256xi32>
    %186 = arith.cmpi slt, %182, %185 : vector<16x256xi32>
    %187 = arith.andi %184, %186 : vector<16x256xi1>
    %cst_96 = arith.constant 0.000000e+00 : f32
    %188 = vector.broadcast %cst_96 : f32 to vector<16x256xf32>
    %189 = arith.select %187, %180, %188 : vector<16x256xi1>, vector<16x256xf32>
    %c0_97 = arith.constant 0 : index
    %c146 = arith.constant 146 : index
    %190 = vector.load %arg11[%c0_97, %c146] : memref<24x512xf32, #tpu.memory_space<vmem>>, vector<16x256xf32>
    %c2_i32_98 = arith.constant 2 : i32
    %191 = vector.broadcast %c2_i32_98 : i32 to vector<16x256xi32>
    %192 = arith.addi %35, %191 : vector<16x256xi32>
    %c0_i32_99 = arith.constant 0 : i32
    %193 = vector.broadcast %c0_i32_99 : i32 to vector<16x256xi32>
    %194 = arith.cmpi sge, %192, %193 : vector<16x256xi32>
    %c16_i32_100 = arith.constant 16 : i32
    %195 = vector.broadcast %c16_i32_100 : i32 to vector<16x256xi32>
    %196 = arith.cmpi slt, %192, %195 : vector<16x256xi32>
    %197 = arith.andi %194, %196 : vector<16x256xi1>
    %cst_101 = arith.constant 0.000000e+00 : f32
    %198 = vector.broadcast %cst_101 : f32 to vector<16x256xf32>
    %199 = arith.select %197, %190, %198 : vector<16x256xi1>, vector<16x256xf32>
    %c0_102 = arith.constant 0 : index
    %c158 = arith.constant 158 : index
    %200 = vector.load %arg11[%c0_102, %c158] : memref<24x512xf32, #tpu.memory_space<vmem>>, vector<16x256xf32>
    %c-2_i32_103 = arith.constant -2 : i32
    %201 = vector.broadcast %c-2_i32_103 : i32 to vector<16x256xi32>
    %202 = arith.addi %35, %201 : vector<16x256xi32>
    %c0_i32_104 = arith.constant 0 : i32
    %203 = vector.broadcast %c0_i32_104 : i32 to vector<16x256xi32>
    %204 = arith.cmpi sge, %202, %203 : vector<16x256xi32>
    %c16_i32_105 = arith.constant 16 : i32
    %205 = vector.broadcast %c16_i32_105 : i32 to vector<16x256xi32>
    %206 = arith.cmpi slt, %202, %205 : vector<16x256xi32>
    %207 = arith.andi %204, %206 : vector<16x256xi1>
    %cst_106 = arith.constant 0.000000e+00 : f32
    %208 = vector.broadcast %cst_106 : f32 to vector<16x256xf32>
    %209 = arith.select %207, %200, %208 : vector<16x256xi1>, vector<16x256xf32>
    %c0_107 = arith.constant 0 : index
    %c159 = arith.constant 159 : index
    %210 = vector.load %arg11[%c0_107, %c159] : memref<24x512xf32, #tpu.memory_space<vmem>>, vector<16x256xf32>
    %c-1_i32_108 = arith.constant -1 : i32
    %211 = vector.broadcast %c-1_i32_108 : i32 to vector<16x256xi32>
    %212 = arith.addi %35, %211 : vector<16x256xi32>
    %c0_i32_109 = arith.constant 0 : i32
    %213 = vector.broadcast %c0_i32_109 : i32 to vector<16x256xi32>
    %214 = arith.cmpi sge, %212, %213 : vector<16x256xi32>
    %c16_i32_110 = arith.constant 16 : i32
    %215 = vector.broadcast %c16_i32_110 : i32 to vector<16x256xi32>
    %216 = arith.cmpi slt, %212, %215 : vector<16x256xi32>
    %217 = arith.andi %214, %216 : vector<16x256xi1>
    %cst_111 = arith.constant 0.000000e+00 : f32
    %218 = vector.broadcast %cst_111 : f32 to vector<16x256xf32>
    %219 = arith.select %217, %210, %218 : vector<16x256xi1>, vector<16x256xf32>
    %c0_112 = arith.constant 0 : index
    %c160 = arith.constant 160 : index
    %220 = vector.load %arg11[%c0_112, %c160] : memref<24x512xf32, #tpu.memory_space<vmem>>, vector<16x256xf32>
    %c0_113 = arith.constant 0 : index
    %c161 = arith.constant 161 : index
    %221 = vector.load %arg11[%c0_113, %c161] : memref<24x512xf32, #tpu.memory_space<vmem>>, vector<16x256xf32>
    %c1_i32_114 = arith.constant 1 : i32
    %222 = vector.broadcast %c1_i32_114 : i32 to vector<16x256xi32>
    %223 = arith.addi %35, %222 : vector<16x256xi32>
    %c0_i32_115 = arith.constant 0 : i32
    %224 = vector.broadcast %c0_i32_115 : i32 to vector<16x256xi32>
    %225 = arith.cmpi sge, %223, %224 : vector<16x256xi32>
    %c16_i32_116 = arith.constant 16 : i32
    %226 = vector.broadcast %c16_i32_116 : i32 to vector<16x256xi32>
    %227 = arith.cmpi slt, %223, %226 : vector<16x256xi32>
    %228 = arith.andi %225, %227 : vector<16x256xi1>
    %cst_117 = arith.constant 0.000000e+00 : f32
    %229 = vector.broadcast %cst_117 : f32 to vector<16x256xf32>
    %230 = arith.select %228, %221, %229 : vector<16x256xi1>, vector<16x256xf32>
    %c0_118 = arith.constant 0 : index
    %c162 = arith.constant 162 : index
    %231 = vector.load %arg11[%c0_118, %c162] : memref<24x512xf32, #tpu.memory_space<vmem>>, vector<16x256xf32>
    %c2_i32_119 = arith.constant 2 : i32
    %232 = vector.broadcast %c2_i32_119 : i32 to vector<16x256xi32>
    %233 = arith.addi %35, %232 : vector<16x256xi32>
    %c0_i32_120 = arith.constant 0 : i32
    %234 = vector.broadcast %c0_i32_120 : i32 to vector<16x256xi32>
    %235 = arith.cmpi sge, %233, %234 : vector<16x256xi32>
    %c16_i32_121 = arith.constant 16 : i32
    %236 = vector.broadcast %c16_i32_121 : i32 to vector<16x256xi32>
    %237 = arith.cmpi slt, %233, %236 : vector<16x256xi32>
    %238 = arith.andi %235, %237 : vector<16x256xi1>
    %cst_122 = arith.constant 0.000000e+00 : f32
    %239 = vector.broadcast %cst_122 : f32 to vector<16x256xf32>
    %240 = arith.select %238, %231, %239 : vector<16x256xi1>, vector<16x256xf32>
    %c0_123 = arith.constant 0 : index
    %c0_124 = arith.constant 0 : index
    %241 = vector.load %arg12[%c0_123, %c0_124] : memref<400x256xf32, #tpu.memory_space<vmem>>, vector<16x256xf32>
    tpu.vector_store %arg12[%c0_123, %c0_124], %45 {strides = array<i32>} : memref<400x256xf32, #tpu.memory_space<vmem>>, vector<16x256xf32>,
    %c16 = arith.constant 16 : index
    %c0_125 = arith.constant 0 : index
    %242 = vector.load %arg12[%c16, %c0_125] : memref<400x256xf32, #tpu.memory_space<vmem>>, vector<16x256xf32>
    tpu.vector_store %arg12[%c16, %c0_125], %55 {strides = array<i32>} : memref<400x256xf32, #tpu.memory_space<vmem>>, vector<16x256xf32>,
    %c32 = arith.constant 32 : index
    %c0_126 = arith.constant 0 : index
    %243 = vector.load %arg12[%c32, %c0_126] : memref<400x256xf32, #tpu.memory_space<vmem>>, vector<16x256xf32>
    tpu.vector_store %arg12[%c32, %c0_126], %56 {strides = array<i32>} : memref<400x256xf32, #tpu.memory_space<vmem>>, vector<16x256xf32>,
    %c48 = arith.constant 48 : index
    %c0_127 = arith.constant 0 : index
    %244 = vector.load %arg12[%c48, %c0_127] : memref<400x256xf32, #tpu.memory_space<vmem>>, vector<16x256xf32>
    tpu.vector_store %arg12[%c48, %c0_127], %66 {strides = array<i32>} : memref<400x256xf32, #tpu.memory_space<vmem>>, vector<16x256xf32>,
    %c64 = arith.constant 64 : index
    %c0_128 = arith.constant 0 : index
    %245 = vector.load %arg12[%c64, %c0_128] : memref<400x256xf32, #tpu.memory_space<vmem>>, vector<16x256xf32>
    tpu.vector_store %arg12[%c64, %c0_128], %76 {strides = array<i32>} : memref<400x256xf32, #tpu.memory_space<vmem>>, vector<16x256xf32>,
    %c80 = arith.constant 80 : index
    %c0_129 = arith.constant 0 : index
    %246 = vector.load %arg12[%c80, %c0_129] : memref<400x256xf32, #tpu.memory_space<vmem>>, vector<16x256xf32>
    tpu.vector_store %arg12[%c80, %c0_129], %86 {strides = array<i32>} : memref<400x256xf32, #tpu.memory_space<vmem>>, vector<16x256xf32>,
    %c96_130 = arith.constant 96 : index
    %c0_131 = arith.constant 0 : index
    %247 = vector.load %arg12[%c96_130, %c0_131] : memref<400x256xf32, #tpu.memory_space<vmem>>, vector<16x256xf32>
    tpu.vector_store %arg12[%c96_130, %c0_131], %96 {strides = array<i32>} : memref<400x256xf32, #tpu.memory_space<vmem>>, vector<16x256xf32>,
    %c112_132 = arith.constant 112 : index
    %c0_133 = arith.constant 0 : index
    %248 = vector.load %arg12[%c112_132, %c0_133] : memref<400x256xf32, #tpu.memory_space<vmem>>, vector<16x256xf32>
    tpu.vector_store %arg12[%c112_132, %c0_133], %97 {strides = array<i32>} : memref<400x256xf32, #tpu.memory_space<vmem>>, vector<16x256xf32>,
    %c128_134 = arith.constant 128 : index
    %c0_135 = arith.constant 0 : index
    %249 = vector.load %arg12[%c128_134, %c0_135] : memref<400x256xf32, #tpu.memory_space<vmem>>, vector<16x256xf32>
    tpu.vector_store %arg12[%c128_134, %c0_135], %107 {strides = array<i32>} : memref<400x256xf32, #tpu.memory_space<vmem>>, vector<16x256xf32>,
    %c144_136 = arith.constant 144 : index
    %c0_137 = arith.constant 0 : index
    %250 = vector.load %arg12[%c144_136, %c0_137] : memref<400x256xf32, #tpu.memory_space<vmem>>, vector<16x256xf32>
    tpu.vector_store %arg12[%c144_136, %c0_137], %117 {strides = array<i32>} : memref<400x256xf32, #tpu.memory_space<vmem>>, vector<16x256xf32>,
    %c160_138 = arith.constant 160 : index
    %c0_139 = arith.constant 0 : index
    %251 = vector.load %arg12[%c160_138, %c0_139] : memref<400x256xf32, #tpu.memory_space<vmem>>, vector<16x256xf32>
    tpu.vector_store %arg12[%c160_138, %c0_139], %127 {strides = array<i32>} : memref<400x256xf32, #tpu.memory_space<vmem>>, vector<16x256xf32>,
    %c176 = arith.constant 176 : index
    %c0_140 = arith.constant 0 : index
    %252 = vector.load %arg12[%c176, %c0_140] : memref<400x256xf32, #tpu.memory_space<vmem>>, vector<16x256xf32>
    tpu.vector_store %arg12[%c176, %c0_140], %137 {strides = array<i32>} : memref<400x256xf32, #tpu.memory_space<vmem>>, vector<16x256xf32>,
    %c192 = arith.constant 192 : index
    %c0_141 = arith.constant 0 : index
    %253 = vector.load %arg12[%c192, %c0_141] : memref<400x256xf32, #tpu.memory_space<vmem>>, vector<16x256xf32>
    tpu.vector_store %arg12[%c192, %c0_141], %138 {strides = array<i32>} : memref<400x256xf32, #tpu.memory_space<vmem>>, vector<16x256xf32>,
    %c208 = arith.constant 208 : index
    %c0_142 = arith.constant 0 : index
    %254 = vector.load %arg12[%c208, %c0_142] : memref<400x256xf32, #tpu.memory_space<vmem>>, vector<16x256xf32>
    tpu.vector_store %arg12[%c208, %c0_142], %148 {strides = array<i32>} : memref<400x256xf32, #tpu.memory_space<vmem>>, vector<16x256xf32>,
    %c224 = arith.constant 224 : index
    %c0_143 = arith.constant 0 : index
    %255 = vector.load %arg12[%c224, %c0_143] : memref<400x256xf32, #tpu.memory_space<vmem>>, vector<16x256xf32>
    tpu.vector_store %arg12[%c224, %c0_143], %158 {strides = array<i32>} : memref<400x256xf32, #tpu.memory_space<vmem>>, vector<16x256xf32>,
    %c240 = arith.constant 240 : index
    %c0_144 = arith.constant 0 : index
    %256 = vector.load %arg12[%c240, %c0_144] : memref<400x256xf32, #tpu.memory_space<vmem>>, vector<16x256xf32>
    tpu.vector_store %arg12[%c240, %c0_144], %168 {strides = array<i32>} : memref<400x256xf32, #tpu.memory_space<vmem>>, vector<16x256xf32>,
    %c256 = arith.constant 256 : index
    %c0_145 = arith.constant 0 : index
    %257 = vector.load %arg12[%c256, %c0_145] : memref<400x256xf32, #tpu.memory_space<vmem>>, vector<16x256xf32>
    tpu.vector_store %arg12[%c256, %c0_145], %178 {strides = array<i32>} : memref<400x256xf32, #tpu.memory_space<vmem>>, vector<16x256xf32>,
    %c272 = arith.constant 272 : index
    %c0_146 = arith.constant 0 : index
    %258 = vector.load %arg12[%c272, %c0_146] : memref<400x256xf32, #tpu.memory_space<vmem>>, vector<16x256xf32>
    tpu.vector_store %arg12[%c272, %c0_146], %179 {strides = array<i32>} : memref<400x256xf32, #tpu.memory_space<vmem>>, vector<16x256xf32>,
    %c288 = arith.constant 288 : index
    %c0_147 = arith.constant 0 : index
    %259 = vector.load %arg12[%c288, %c0_147] : memref<400x256xf32, #tpu.memory_space<vmem>>, vector<16x256xf32>
    tpu.vector_store %arg12[%c288, %c0_147], %189 {strides = array<i32>} : memref<400x256xf32, #tpu.memory_space<vmem>>, vector<16x256xf32>,
    %c304 = arith.constant 304 : index
    %c0_148 = arith.constant 0 : index
    %260 = vector.load %arg12[%c304, %c0_148] : memref<400x256xf32, #tpu.memory_space<vmem>>, vector<16x256xf32>
    tpu.vector_store %arg12[%c304, %c0_148], %199 {strides = array<i32>} : memref<400x256xf32, #tpu.memory_space<vmem>>, vector<16x256xf32>,
    %c320 = arith.constant 320 : index
    %c0_149 = arith.constant 0 : index
    %261 = vector.load %arg12[%c320, %c0_149] : memref<400x256xf32, #tpu.memory_space<vmem>>, vector<16x256xf32>
    tpu.vector_store %arg12[%c320, %c0_149], %209 {strides = array<i32>} : memref<400x256xf32, #tpu.memory_space<vmem>>, vector<16x256xf32>,
    %c336 = arith.constant 336 : index
    %c0_150 = arith.constant 0 : index
    %262 = vector.load %arg12[%c336, %c0_150] : memref<400x256xf32, #tpu.memory_space<vmem>>, vector<16x256xf32>
    tpu.vector_store %arg12[%c336, %c0_150], %219 {strides = array<i32>} : memref<400x256xf32, #tpu.memory_space<vmem>>, vector<16x256xf32>,
    %c352 = arith.constant 352 : index
    %c0_151 = arith.constant 0 : index
    %263 = vector.load %arg12[%c352, %c0_151] : memref<400x256xf32, #tpu.memory_space<vmem>>, vector<16x256xf32>
    tpu.vector_store %arg12[%c352, %c0_151], %220 {strides = array<i32>} : memref<400x256xf32, #tpu.memory_space<vmem>>, vector<16x256xf32>,
    %c368 = arith.constant 368 : index
    %c0_152 = arith.constant 0 : index
    %264 = vector.load %arg12[%c368, %c0_152] : memref<400x256xf32, #tpu.memory_space<vmem>>, vector<16x256xf32>
    tpu.vector_store %arg12[%c368, %c0_152], %230 {strides = array<i32>} : memref<400x256xf32, #tpu.memory_space<vmem>>, vector<16x256xf32>,
    %c384 = arith.constant 384 : index
    %c0_153 = arith.constant 0 : index
    %265 = vector.load %arg12[%c384, %c0_153] : memref<400x256xf32, #tpu.memory_space<vmem>>, vector<16x256xf32>
    tpu.vector_store %arg12[%c384, %c0_153], %240 {strides = array<i32>} : memref<400x256xf32, #tpu.memory_space<vmem>>, vector<16x256xf32>,
    %c0_154 = arith.constant 0 : index
    %c0_155 = arith.constant 0 : index
    %266 = vector.load %arg12[%c0_154, %c0_155] : memref<400x256xf32, #tpu.memory_space<vmem>>, vector<400x256xf32>
    %cst_156 = arith.constant dense<0.000000e+00> : vector<24x256xf32>
    %267 = tpu.matmul %16, %266, %cst_156 {dimension_numbers = #tpu.dot_dimension_numbers<[1], [0], [0], [1], [0, 0, 1, 1], [], []>} : vector<24x400xf32>, vector<400x256xf32>, vector<24x256xf32> -> vector<24x256xf32>
    %268 = vector.broadcast %17 : vector<24x1xf32> to vector<24x256xf32>
    %269 = arith.addf %267, %268 : vector<24x256xf32>
    %c0_157 = arith.constant 0 : index
    %c16_158 = arith.constant 16 : index
    %c0_159 = arith.constant 0 : index
    %270 = vector.load %arg10[%c0_157, %c16_158, %c0_159] : memref<1x88x256xf32, #tpu.memory_space<vmem>>, vector<1x24x256xf32>
    %271 = vector.shape_cast %270 : vector<1x24x256xf32> to vector<24x256xf32>
    %272 = vector.shape_cast %269 : vector<24x256xf32> to vector<1x24x256xf32>
    tpu.vector_store %arg10[%c0_157, %c16_158, %c0_159], %272 {strides = array<i32>} : memref<1x88x256xf32, #tpu.memory_space<vmem>>, vector<1x24x256xf32>,
    %273 = vector.extract_strided_slice %10 {offsets = [32, 0], sizes = [16, 256], strides = [1, 1]} : vector<48x256xf32> to vector<16x256xf32>
    %c0_160 = arith.constant 0 : index
    %c0_161 = arith.constant 0 : index
    %274 = vector.load %arg6[%c0_160, %c0_161] : memref<24x144xf32, #tpu.memory_space<vmem>>, vector<24x144xf32>
    %c0_162 = arith.constant 0 : index
    %c0_163 = arith.constant 0 : index
    %275 = vector.load %arg7[%c0_162, %c0_163] : memref<24x1xf32, #tpu.memory_space<vmem>>, vector<24x1xf32>
    %c0_164 = arith.constant 0 : index
    %c128_165 = arith.constant 128 : index
    %276 = vector.load %arg11[%c0_164, %c128_165] : memref<24x512xf32, #tpu.memory_space<vmem>>, vector<16x256xf32>
    tpu.vector_store %arg11[%c0_164, %c128_165], %273 {strides = array<i32>} : memref<24x512xf32, #tpu.memory_space<vmem>>, vector<16x256xf32>,
    %277 = tpu.iota {dimensions = array<i32: 1>} : vector<16x256xi32>
    %c16_i32_166 = arith.constant 16 : i32
    %c0_i32_167 = arith.constant 0 : i32
    %278 = arith.cmpi eq, %c16_i32_166, %c0_i32_167 : i32
    %c1_i32_168 = arith.constant 1 : i32
    %279 = arith.select %278, %c1_i32_168, %c16_i32_166 : i32
    %280 = vector.broadcast %279 : i32 to vector<16x256xi32>
    %281 = arith.remsi %277, %280 : vector<16x256xi32>
    %c0_i32_169 = arith.constant 0 : i32
    %282 = vector.broadcast %c0_i32_169 : i32 to vector<16x256xi32>
    %283 = arith.cmpi ne, %281, %282 : vector<16x256xi32>
    %c0_i32_170 = arith.constant 0 : i32
    %284 = vector.broadcast %c0_i32_170 : i32 to vector<16x256xi32>
    %285 = arith.cmpi slt, %281, %284 : vector<16x256xi32>
    %c0_i32_171 = arith.constant 0 : i32
    %286 = arith.cmpi slt, %279, %c0_i32_171 : i32
    %287 = vector.broadcast %286 : i1 to vector<16x256xi1>
    %288 = vector.broadcast %287 : vector<16x256xi1> to vector<16x256xi1>
    %289 = arith.xori %285, %288 : vector<16x256xi1>
    %290 = arith.andi %289, %283 : vector<16x256xi1>
    %291 = vector.broadcast %279 : i32 to vector<16x256xi32>
    %292 = arith.addi %281, %291 : vector<16x256xi32>
    %293 = arith.select %290, %292, %281 : vector<16x256xi1>, vector<16x256xi32>
    %c0_172 = arith.constant 0 : index
    %c111_173 = arith.constant 111 : index
    %294 = vector.load %arg11[%c0_172, %c111_173] : memref<24x512xf32, #tpu.memory_space<vmem>>, vector<16x256xf32>
    %c-1_i32_174 = arith.constant -1 : i32
    %295 = vector.broadcast %c-1_i32_174 : i32 to vector<16x256xi32>
    %296 = arith.addi %293, %295 : vector<16x256xi32>
    %c0_i32_175 = arith.constant 0 : i32
    %297 = vector.broadcast %c0_i32_175 : i32 to vector<16x256xi32>
    %298 = arith.cmpi sge, %296, %297 : vector<16x256xi32>
    %c16_i32_176 = arith.constant 16 : i32
    %299 = vector.broadcast %c16_i32_176 : i32 to vector<16x256xi32>
    %300 = arith.cmpi slt, %296, %299 : vector<16x256xi32>
    %301 = arith.andi %298, %300 : vector<16x256xi1>
    %cst_177 = arith.constant 0.000000e+00 : f32
    %302 = vector.broadcast %cst_177 : f32 to vector<16x256xf32>
    %303 = arith.select %301, %294, %302 : vector<16x256xi1>, vector<16x256xf32>
    %c0_178 = arith.constant 0 : index
    %c112_179 = arith.constant 112 : index
    %304 = vector.load %arg11[%c0_178, %c112_179] : memref<24x512xf32, #tpu.memory_space<vmem>>, vector<16x256xf32>
    %c0_180 = arith.constant 0 : index
    %c113_181 = arith.constant 113 : index
    %305 = vector.load %arg11[%c0_180, %c113_181] : memref<24x512xf32, #tpu.memory_space<vmem>>, vector<16x256xf32>
    %c1_i32_182 = arith.constant 1 : i32
    %306 = vector.broadcast %c1_i32_182 : i32 to vector<16x256xi32>
    %307 = arith.addi %293, %306 : vector<16x256xi32>
    %c0_i32_183 = arith.constant 0 : i32
    %308 = vector.broadcast %c0_i32_183 : i32 to vector<16x256xi32>
    %309 = arith.cmpi sge, %307, %308 : vector<16x256xi32>
    %c16_i32_184 = arith.constant 16 : i32
    %310 = vector.broadcast %c16_i32_184 : i32 to vector<16x256xi32>
    %311 = arith.cmpi slt, %307, %310 : vector<16x256xi32>
    %312 = arith.andi %309, %311 : vector<16x256xi1>
    %cst_185 = arith.constant 0.000000e+00 : f32
    %313 = vector.broadcast %cst_185 : f32 to vector<16x256xf32>
    %314 = arith.select %312, %305, %313 : vector<16x256xi1>, vector<16x256xf32>
    %c0_186 = arith.constant 0 : index
    %c127_187 = arith.constant 127 : index
    %315 = vector.load %arg11[%c0_186, %c127_187] : memref<24x512xf32, #tpu.memory_space<vmem>>, vector<16x256xf32>
    %c-1_i32_188 = arith.constant -1 : i32
    %316 = vector.broadcast %c-1_i32_188 : i32 to vector<16x256xi32>
    %317 = arith.addi %293, %316 : vector<16x256xi32>
    %c0_i32_189 = arith.constant 0 : i32
    %318 = vector.broadcast %c0_i32_189 : i32 to vector<16x256xi32>
    %319 = arith.cmpi sge, %317, %318 : vector<16x256xi32>
    %c16_i32_190 = arith.constant 16 : i32
    %320 = vector.broadcast %c16_i32_190 : i32 to vector<16x256xi32>
    %321 = arith.cmpi slt, %317, %320 : vector<16x256xi32>
    %322 = arith.andi %319, %321 : vector<16x256xi1>
    %cst_191 = arith.constant 0.000000e+00 : f32
    %323 = vector.broadcast %cst_191 : f32 to vector<16x256xf32>
    %324 = arith.select %322, %315, %323 : vector<16x256xi1>, vector<16x256xf32>
    %c0_192 = arith.constant 0 : index
    %c128_193 = arith.constant 128 : index
    %325 = vector.load %arg11[%c0_192, %c128_193] : memref<24x512xf32, #tpu.memory_space<vmem>>, vector<16x256xf32>
    %c0_194 = arith.constant 0 : index
    %c129_195 = arith.constant 129 : index
    %326 = vector.load %arg11[%c0_194, %c129_195] : memref<24x512xf32, #tpu.memory_space<vmem>>, vector<16x256xf32>
    %c1_i32_196 = arith.constant 1 : i32
    %327 = vector.broadcast %c1_i32_196 : i32 to vector<16x256xi32>
    %328 = arith.addi %293, %327 : vector<16x256xi32>
    %c0_i32_197 = arith.constant 0 : i32
    %329 = vector.broadcast %c0_i32_197 : i32 to vector<16x256xi32>
    %330 = arith.cmpi sge, %328, %329 : vector<16x256xi32>
    %c16_i32_198 = arith.constant 16 : i32
    %331 = vector.broadcast %c16_i32_198 : i32 to vector<16x256xi32>
    %332 = arith.cmpi slt, %328, %331 : vector<16x256xi32>
    %333 = arith.andi %330, %332 : vector<16x256xi1>
    %cst_199 = arith.constant 0.000000e+00 : f32
    %334 = vector.broadcast %cst_199 : f32 to vector<16x256xf32>
    %335 = arith.select %333, %326, %334 : vector<16x256xi1>, vector<16x256xf32>
    %c0_200 = arith.constant 0 : index
    %c143_201 = arith.constant 143 : index
    %336 = vector.load %arg11[%c0_200, %c143_201] : memref<24x512xf32, #tpu.memory_space<vmem>>, vector<16x256xf32>
    %c-1_i32_202 = arith.constant -1 : i32
    %337 = vector.broadcast %c-1_i32_202 : i32 to vector<16x256xi32>
    %338 = arith.addi %293, %337 : vector<16x256xi32>
    %c0_i32_203 = arith.constant 0 : i32
    %339 = vector.broadcast %c0_i32_203 : i32 to vector<16x256xi32>
    %340 = arith.cmpi sge, %338, %339 : vector<16x256xi32>
    %c16_i32_204 = arith.constant 16 : i32
    %341 = vector.broadcast %c16_i32_204 : i32 to vector<16x256xi32>
    %342 = arith.cmpi slt, %338, %341 : vector<16x256xi32>
    %343 = arith.andi %340, %342 : vector<16x256xi1>
    %cst_205 = arith.constant 0.000000e+00 : f32
    %344 = vector.broadcast %cst_205 : f32 to vector<16x256xf32>
    %345 = arith.select %343, %336, %344 : vector<16x256xi1>, vector<16x256xf32>
    %c0_206 = arith.constant 0 : index
    %c144_207 = arith.constant 144 : index
    %346 = vector.load %arg11[%c0_206, %c144_207] : memref<24x512xf32, #tpu.memory_space<vmem>>, vector<16x256xf32>
    %c0_208 = arith.constant 0 : index
    %c145_209 = arith.constant 145 : index
    %347 = vector.load %arg11[%c0_208, %c145_209] : memref<24x512xf32, #tpu.memory_space<vmem>>, vector<16x256xf32>
    %c1_i32_210 = arith.constant 1 : i32
    %348 = vector.broadcast %c1_i32_210 : i32 to vector<16x256xi32>
    %349 = arith.addi %293, %348 : vector<16x256xi32>
    %c0_i32_211 = arith.constant 0 : i32
    %350 = vector.broadcast %c0_i32_211 : i32 to vector<16x256xi32>
    %351 = arith.cmpi sge, %349, %350 : vector<16x256xi32>
    %c16_i32_212 = arith.constant 16 : i32
    %352 = vector.broadcast %c16_i32_212 : i32 to vector<16x256xi32>
    %353 = arith.cmpi slt, %349, %352 : vector<16x256xi32>
    %354 = arith.andi %351, %353 : vector<16x256xi1>
    %cst_213 = arith.constant 0.000000e+00 : f32
    %355 = vector.broadcast %cst_213 : f32 to vector<16x256xf32>
    %356 = arith.select %354, %347, %355 : vector<16x256xi1>, vector<16x256xf32>
    %c0_214 = arith.constant 0 : index
    %c0_215 = arith.constant 0 : index
    %357 = vector.load %arg12[%c0_214, %c0_215] : memref<400x256xf32, #tpu.memory_space<vmem>>, vector<16x256xf32>
    tpu.vector_store %arg12[%c0_214, %c0_215], %303 {strides = array<i32>} : memref<400x256xf32, #tpu.memory_space<vmem>>, vector<16x256xf32>,
    %c16_216 = arith.constant 16 : index
    %c0_217 = arith.constant 0 : index
    %358 = vector.load %arg12[%c16_216, %c0_217] : memref<400x256xf32, #tpu.memory_space<vmem>>, vector<16x256xf32>
    tpu.vector_store %arg12[%c16_216, %c0_217], %304 {strides = array<i32>} : memref<400x256xf32, #tpu.memory_space<vmem>>, vector<16x256xf32>,
    %c32_218 = arith.constant 32 : index
    %c0_219 = arith.constant 0 : index
    %359 = vector.load %arg12[%c32_218, %c0_219] : memref<400x256xf32, #tpu.memory_space<vmem>>, vector<16x256xf32>
    tpu.vector_store %arg12[%c32_218, %c0_219], %314 {strides = array<i32>} : memref<400x256xf32, #tpu.memory_space<vmem>>, vector<16x256xf32>,
    %c48_220 = arith.constant 48 : index
    %c0_221 = arith.constant 0 : index
    %360 = vector.load %arg12[%c48_220, %c0_221] : memref<400x256xf32, #tpu.memory_space<vmem>>, vector<16x256xf32>
    tpu.vector_store %arg12[%c48_220, %c0_221], %324 {strides = array<i32>} : memref<400x256xf32, #tpu.memory_space<vmem>>, vector<16x256xf32>,
    %c64_222 = arith.constant 64 : index
    %c0_223 = arith.constant 0 : index
    %361 = vector.load %arg12[%c64_222, %c0_223] : memref<400x256xf32, #tpu.memory_space<vmem>>, vector<16x256xf32>
    tpu.vector_store %arg12[%c64_222, %c0_223], %325 {strides = array<i32>} : memref<400x256xf32, #tpu.memory_space<vmem>>, vector<16x256xf32>,
    %c80_224 = arith.constant 80 : index
    %c0_225 = arith.constant 0 : index
    %362 = vector.load %arg12[%c80_224, %c0_225] : memref<400x256xf32, #tpu.memory_space<vmem>>, vector<16x256xf32>
    tpu.vector_store %arg12[%c80_224, %c0_225], %335 {strides = array<i32>} : memref<400x256xf32, #tpu.memory_space<vmem>>, vector<16x256xf32>,
    %c96_226 = arith.constant 96 : index
    %c0_227 = arith.constant 0 : index
    %363 = vector.load %arg12[%c96_226, %c0_227] : memref<400x256xf32, #tpu.memory_space<vmem>>, vector<16x256xf32>
    tpu.vector_store %arg12[%c96_226, %c0_227], %345 {strides = array<i32>} : memref<400x256xf32, #tpu.memory_space<vmem>>, vector<16x256xf32>,
    %c112_228 = arith.constant 112 : index
    %c0_229 = arith.constant 0 : index
    %364 = vector.load %arg12[%c112_228, %c0_229] : memref<400x256xf32, #tpu.memory_space<vmem>>, vector<16x256xf32>
    tpu.vector_store %arg12[%c112_228, %c0_229], %346 {strides = array<i32>} : memref<400x256xf32, #tpu.memory_space<vmem>>, vector<16x256xf32>,
    %c128_230 = arith.constant 128 : index
    %c0_231 = arith.constant 0 : index
    %365 = vector.load %arg12[%c128_230, %c0_231] : memref<400x256xf32, #tpu.memory_space<vmem>>, vector<16x256xf32>
    tpu.vector_store %arg12[%c128_230, %c0_231], %356 {strides = array<i32>} : memref<400x256xf32, #tpu.memory_space<vmem>>, vector<16x256xf32>,
    %c0_232 = arith.constant 0 : index
    %c0_233 = arith.constant 0 : index
    %366 = vector.load %arg12[%c0_232, %c0_233] : memref<400x256xf32, #tpu.memory_space<vmem>>, vector<144x256xf32>
    %cst_234 = arith.constant dense<0.000000e+00> : vector<24x256xf32>
    %367 = tpu.matmul %274, %366, %cst_234 {dimension_numbers = #tpu.dot_dimension_numbers<[1], [0], [0], [1], [0, 0, 1, 1], [], []>} : vector<24x144xf32>, vector<144x256xf32>, vector<24x256xf32> -> vector<24x256xf32>
    %368 = vector.broadcast %275 : vector<24x1xf32> to vector<24x256xf32>
    %369 = arith.addf %367, %368 : vector<24x256xf32>
    %c0_235 = arith.constant 0 : index
    %c0_236 = arith.constant 0 : index
    %370 = vector.load %arg8[%c0_235, %c0_236] : memref<24x216xf32, #tpu.memory_space<vmem>>, vector<24x216xf32>
    %c0_237 = arith.constant 0 : index
    %c0_238 = arith.constant 0 : index
    %371 = vector.load %arg9[%c0_237, %c0_238] : memref<24x1xf32, #tpu.memory_space<vmem>>, vector<24x1xf32>
    %c0_239 = arith.constant 0 : index
    %c128_240 = arith.constant 128 : index
    %372 = vector.load %arg11[%c0_239, %c128_240] : memref<24x512xf32, #tpu.memory_space<vmem>>, vector<24x256xf32>
    tpu.vector_store %arg11[%c0_239, %c128_240], %369 {strides = array<i32>} : memref<24x512xf32, #tpu.memory_space<vmem>>, vector<24x256xf32>,
    %373 = tpu.iota {dimensions = array<i32: 1>} : vector<24x256xi32>
    %c16_i32_241 = arith.constant 16 : i32
    %c0_i32_242 = arith.constant 0 : i32
    %374 = arith.cmpi eq, %c16_i32_241, %c0_i32_242 : i32
    %c1_i32_243 = arith.constant 1 : i32
    %375 = arith.select %374, %c1_i32_243, %c16_i32_241 : i32
    %376 = vector.broadcast %375 : i32 to vector<24x256xi32>
    %377 = arith.remsi %373, %376 : vector<24x256xi32>
    %c0_i32_244 = arith.constant 0 : i32
    %378 = vector.broadcast %c0_i32_244 : i32 to vector<24x256xi32>
    %379 = arith.cmpi ne, %377, %378 : vector<24x256xi32>
    %c0_i32_245 = arith.constant 0 : i32
    %380 = vector.broadcast %c0_i32_245 : i32 to vector<24x256xi32>
    %381 = arith.cmpi slt, %377, %380 : vector<24x256xi32>
    %c0_i32_246 = arith.constant 0 : i32
    %382 = arith.cmpi slt, %375, %c0_i32_246 : i32
    %383 = vector.broadcast %382 : i1 to vector<24x256xi1>
    %384 = vector.broadcast %383 : vector<24x256xi1> to vector<24x256xi1>
    %385 = arith.xori %381, %384 : vector<24x256xi1>
    %386 = arith.andi %385, %379 : vector<24x256xi1>
    %387 = vector.broadcast %375 : i32 to vector<24x256xi32>
    %388 = arith.addi %377, %387 : vector<24x256xi32>
    %389 = arith.select %386, %388, %377 : vector<24x256xi1>, vector<24x256xi32>
    %c0_247 = arith.constant 0 : index
    %c111_248 = arith.constant 111 : index
    %390 = vector.load %arg11[%c0_247, %c111_248] : memref<24x512xf32, #tpu.memory_space<vmem>>, vector<24x256xf32>
    %c-1_i32_249 = arith.constant -1 : i32
    %391 = vector.broadcast %c-1_i32_249 : i32 to vector<24x256xi32>
    %392 = arith.addi %389, %391 : vector<24x256xi32>
    %c0_i32_250 = arith.constant 0 : i32
    %393 = vector.broadcast %c0_i32_250 : i32 to vector<24x256xi32>
    %394 = arith.cmpi sge, %392, %393 : vector<24x256xi32>
    %c16_i32_251 = arith.constant 16 : i32
    %395 = vector.broadcast %c16_i32_251 : i32 to vector<24x256xi32>
    %396 = arith.cmpi slt, %392, %395 : vector<24x256xi32>
    %397 = arith.andi %394, %396 : vector<24x256xi1>
    %cst_252 = arith.constant 0.000000e+00 : f32
    %398 = vector.broadcast %cst_252 : f32 to vector<24x256xf32>
    %399 = arith.select %397, %390, %398 : vector<24x256xi1>, vector<24x256xf32>
    %c0_253 = arith.constant 0 : index
    %c112_254 = arith.constant 112 : index
    %400 = vector.load %arg11[%c0_253, %c112_254] : memref<24x512xf32, #tpu.memory_space<vmem>>, vector<24x256xf32>
    %c0_255 = arith.constant 0 : index
    %c113_256 = arith.constant 113 : index
    %401 = vector.load %arg11[%c0_255, %c113_256] : memref<24x512xf32, #tpu.memory_space<vmem>>, vector<24x256xf32>
    %c1_i32_257 = arith.constant 1 : i32
    %402 = vector.broadcast %c1_i32_257 : i32 to vector<24x256xi32>
    %403 = arith.addi %389, %402 : vector<24x256xi32>
    %c0_i32_258 = arith.constant 0 : i32
    %404 = vector.broadcast %c0_i32_258 : i32 to vector<24x256xi32>
    %405 = arith.cmpi sge, %403, %404 : vector<24x256xi32>
    %c16_i32_259 = arith.constant 16 : i32
    %406 = vector.broadcast %c16_i32_259 : i32 to vector<24x256xi32>
    %407 = arith.cmpi slt, %403, %406 : vector<24x256xi32>
    %408 = arith.andi %405, %407 : vector<24x256xi1>
    %cst_260 = arith.constant 0.000000e+00 : f32
    %409 = vector.broadcast %cst_260 : f32 to vector<24x256xf32>
    %410 = arith.select %408, %401, %409 : vector<24x256xi1>, vector<24x256xf32>
    %c0_261 = arith.constant 0 : index
    %c127_262 = arith.constant 127 : index
    %411 = vector.load %arg11[%c0_261, %c127_262] : memref<24x512xf32, #tpu.memory_space<vmem>>, vector<24x256xf32>
    %c-1_i32_263 = arith.constant -1 : i32
    %412 = vector.broadcast %c-1_i32_263 : i32 to vector<24x256xi32>
    %413 = arith.addi %389, %412 : vector<24x256xi32>
    %c0_i32_264 = arith.constant 0 : i32
    %414 = vector.broadcast %c0_i32_264 : i32 to vector<24x256xi32>
    %415 = arith.cmpi sge, %413, %414 : vector<24x256xi32>
    %c16_i32_265 = arith.constant 16 : i32
    %416 = vector.broadcast %c16_i32_265 : i32 to vector<24x256xi32>
    %417 = arith.cmpi slt, %413, %416 : vector<24x256xi32>
    %418 = arith.andi %415, %417 : vector<24x256xi1>
    %cst_266 = arith.constant 0.000000e+00 : f32
    %419 = vector.broadcast %cst_266 : f32 to vector<24x256xf32>
    %420 = arith.select %418, %411, %419 : vector<24x256xi1>, vector<24x256xf32>
    %c0_267 = arith.constant 0 : index
    %c128_268 = arith.constant 128 : index
    %421 = vector.load %arg11[%c0_267, %c128_268] : memref<24x512xf32, #tpu.memory_space<vmem>>, vector<24x256xf32>
    %c0_269 = arith.constant 0 : index
    %c129_270 = arith.constant 129 : index
    %422 = vector.load %arg11[%c0_269, %c129_270] : memref<24x512xf32, #tpu.memory_space<vmem>>, vector<24x256xf32>
    %c1_i32_271 = arith.constant 1 : i32
    %423 = vector.broadcast %c1_i32_271 : i32 to vector<24x256xi32>
    %424 = arith.addi %389, %423 : vector<24x256xi32>
    %c0_i32_272 = arith.constant 0 : i32
    %425 = vector.broadcast %c0_i32_272 : i32 to vector<24x256xi32>
    %426 = arith.cmpi sge, %424, %425 : vector<24x256xi32>
    %c16_i32_273 = arith.constant 16 : i32
    %427 = vector.broadcast %c16_i32_273 : i32 to vector<24x256xi32>
    %428 = arith.cmpi slt, %424, %427 : vector<24x256xi32>
    %429 = arith.andi %426, %428 : vector<24x256xi1>
    %cst_274 = arith.constant 0.000000e+00 : f32
    %430 = vector.broadcast %cst_274 : f32 to vector<24x256xf32>
    %431 = arith.select %429, %422, %430 : vector<24x256xi1>, vector<24x256xf32>
    %c0_275 = arith.constant 0 : index
    %c143_276 = arith.constant 143 : index
    %432 = vector.load %arg11[%c0_275, %c143_276] : memref<24x512xf32, #tpu.memory_space<vmem>>, vector<24x256xf32>
    %c-1_i32_277 = arith.constant -1 : i32
    %433 = vector.broadcast %c-1_i32_277 : i32 to vector<24x256xi32>
    %434 = arith.addi %389, %433 : vector<24x256xi32>
    %c0_i32_278 = arith.constant 0 : i32
    %435 = vector.broadcast %c0_i32_278 : i32 to vector<24x256xi32>
    %436 = arith.cmpi sge, %434, %435 : vector<24x256xi32>
    %c16_i32_279 = arith.constant 16 : i32
    %437 = vector.broadcast %c16_i32_279 : i32 to vector<24x256xi32>
    %438 = arith.cmpi slt, %434, %437 : vector<24x256xi32>
    %439 = arith.andi %436, %438 : vector<24x256xi1>
    %cst_280 = arith.constant 0.000000e+00 : f32
    %440 = vector.broadcast %cst_280 : f32 to vector<24x256xf32>
    %441 = arith.select %439, %432, %440 : vector<24x256xi1>, vector<24x256xf32>
    %c0_281 = arith.constant 0 : index
    %c144_282 = arith.constant 144 : index
    %442 = vector.load %arg11[%c0_281, %c144_282] : memref<24x512xf32, #tpu.memory_space<vmem>>, vector<24x256xf32>
    %c0_283 = arith.constant 0 : index
    %c145_284 = arith.constant 145 : index
    %443 = vector.load %arg11[%c0_283, %c145_284] : memref<24x512xf32, #tpu.memory_space<vmem>>, vector<24x256xf32>
    %c1_i32_285 = arith.constant 1 : i32
    %444 = vector.broadcast %c1_i32_285 : i32 to vector<24x256xi32>
    %445 = arith.addi %389, %444 : vector<24x256xi32>
    %c0_i32_286 = arith.constant 0 : i32
    %446 = vector.broadcast %c0_i32_286 : i32 to vector<24x256xi32>
    %447 = arith.cmpi sge, %445, %446 : vector<24x256xi32>
    %c16_i32_287 = arith.constant 16 : i32
    %448 = vector.broadcast %c16_i32_287 : i32 to vector<24x256xi32>
    %449 = arith.cmpi slt, %445, %448 : vector<24x256xi32>
    %450 = arith.andi %447, %449 : vector<24x256xi1>
    %cst_288 = arith.constant 0.000000e+00 : f32
    %451 = vector.broadcast %cst_288 : f32 to vector<24x256xf32>
    %452 = arith.select %450, %443, %451 : vector<24x256xi1>, vector<24x256xf32>
    %c0_289 = arith.constant 0 : index
    %c0_290 = arith.constant 0 : index
    %453 = vector.load %arg12[%c0_289, %c0_290] : memref<400x256xf32, #tpu.memory_space<vmem>>, vector<24x256xf32>
    tpu.vector_store %arg12[%c0_289, %c0_290], %399 {strides = array<i32>} : memref<400x256xf32, #tpu.memory_space<vmem>>, vector<24x256xf32>,
    %c24 = arith.constant 24 : index
    %c0_291 = arith.constant 0 : index
    %454 = vector.load %arg12[%c24, %c0_291] : memref<400x256xf32, #tpu.memory_space<vmem>>, vector<24x256xf32>
    tpu.vector_store %arg12[%c24, %c0_291], %400 {strides = array<i32>} : memref<400x256xf32, #tpu.memory_space<vmem>>, vector<24x256xf32>,
    %c48_292 = arith.constant 48 : index
    %c0_293 = arith.constant 0 : index
    %455 = vector.load %arg12[%c48_292, %c0_293] : memref<400x256xf32, #tpu.memory_space<vmem>>, vector<24x256xf32>
    tpu.vector_store %arg12[%c48_292, %c0_293], %410 {strides = array<i32>} : memref<400x256xf32, #tpu.memory_space<vmem>>, vector<24x256xf32>,
    %c72 = arith.constant 72 : index
    %c0_294 = arith.constant 0 : index
    %456 = vector.load %arg12[%c72, %c0_294] : memref<400x256xf32, #tpu.memory_space<vmem>>, vector<24x256xf32>
    tpu.vector_store %arg12[%c72, %c0_294], %420 {strides = array<i32>} : memref<400x256xf32, #tpu.memory_space<vmem>>, vector<24x256xf32>,
    %c96_295 = arith.constant 96 : index
    %c0_296 = arith.constant 0 : index
    %457 = vector.load %arg12[%c96_295, %c0_296] : memref<400x256xf32, #tpu.memory_space<vmem>>, vector<24x256xf32>
    tpu.vector_store %arg12[%c96_295, %c0_296], %421 {strides = array<i32>} : memref<400x256xf32, #tpu.memory_space<vmem>>, vector<24x256xf32>,
    %c120 = arith.constant 120 : index
    %c0_297 = arith.constant 0 : index
    %458 = vector.load %arg12[%c120, %c0_297] : memref<400x256xf32, #tpu.memory_space<vmem>>, vector<24x256xf32>
    tpu.vector_store %arg12[%c120, %c0_297], %431 {strides = array<i32>} : memref<400x256xf32, #tpu.memory_space<vmem>>, vector<24x256xf32>,
    %c144_298 = arith.constant 144 : index
    %c0_299 = arith.constant 0 : index
    %459 = vector.load %arg12[%c144_298, %c0_299] : memref<400x256xf32, #tpu.memory_space<vmem>>, vector<24x256xf32>
    tpu.vector_store %arg12[%c144_298, %c0_299], %441 {strides = array<i32>} : memref<400x256xf32, #tpu.memory_space<vmem>>, vector<24x256xf32>,
    %c168 = arith.constant 168 : index
    %c0_300 = arith.constant 0 : index
    %460 = vector.load %arg12[%c168, %c0_300] : memref<400x256xf32, #tpu.memory_space<vmem>>, vector<24x256xf32>
    tpu.vector_store %arg12[%c168, %c0_300], %442 {strides = array<i32>} : memref<400x256xf32, #tpu.memory_space<vmem>>, vector<24x256xf32>,
    %c192_301 = arith.constant 192 : index
    %c0_302 = arith.constant 0 : index
    %461 = vector.load %arg12[%c192_301, %c0_302] : memref<400x256xf32, #tpu.memory_space<vmem>>, vector<24x256xf32>
    tpu.vector_store %arg12[%c192_301, %c0_302], %452 {strides = array<i32>} : memref<400x256xf32, #tpu.memory_space<vmem>>, vector<24x256xf32>,
    %c0_303 = arith.constant 0 : index
    %c0_304 = arith.constant 0 : index
    %462 = vector.load %arg12[%c0_303, %c0_304] : memref<400x256xf32, #tpu.memory_space<vmem>>, vector<216x256xf32>
    %cst_305 = arith.constant dense<0.000000e+00> : vector<24x256xf32>
    %463 = tpu.matmul %370, %462, %cst_305 {dimension_numbers = #tpu.dot_dimension_numbers<[1], [0], [0], [1], [0, 0, 1, 1], [], []>} : vector<24x216xf32>, vector<216x256xf32>, vector<24x256xf32> -> vector<24x256xf32>
    %464 = vector.broadcast %371 : vector<24x1xf32> to vector<24x256xf32>
    %465 = arith.addf %463, %464 : vector<24x256xf32>
    %c0_306 = arith.constant 0 : index
    %c40 = arith.constant 40 : index
    %c0_307 = arith.constant 0 : index
    %466 = vector.load %arg10[%c0_306, %c40, %c0_307] : memref<1x88x256xf32, #tpu.memory_space<vmem>>, vector<1x24x256xf32>
    %467 = vector.shape_cast %466 : vector<1x24x256xf32> to vector<24x256xf32>
    %468 = vector.shape_cast %465 : vector<24x256xf32> to vector<1x24x256xf32>
    tpu.vector_store %arg10[%c0_306, %c40, %c0_307], %468 {strides = array<i32>} : memref<1x88x256xf32, #tpu.memory_space<vmem>>, vector<1x24x256xf32>,
    %469 = vector.extract_strided_slice %5 {offsets = [48, 0], sizes = [24, 256], strides = [1, 1]} : vector<72x256xf32> to vector<24x256xf32>
    %cst_308 = arith.constant 0.000000e+00 : f32
    %470 = vector.broadcast %cst_308 : f32 to vector<24x256xf32>
    %c0_309 = arith.constant 0 : index
    %c128_310 = arith.constant 128 : index
    %471 = vector.load %arg11[%c0_309, %c128_310] : memref<24x512xf32, #tpu.memory_space<vmem>>, vector<24x256xf32>
    tpu.vector_store %arg11[%c0_309, %c128_310], %469 {strides = array<i32>} : memref<24x512xf32, #tpu.memory_space<vmem>>, vector<24x256xf32>,
    %472 = tpu.iota {dimensions = array<i32: 1>} : vector<24x256xi32>
    %c16_i32_311 = arith.constant 16 : i32
    %c0_i32_312 = arith.constant 0 : i32
    %473 = arith.cmpi eq, %c16_i32_311, %c0_i32_312 : i32
    %c1_i32_313 = arith.constant 1 : i32
    %474 = arith.select %473, %c1_i32_313, %c16_i32_311 : i32
    %475 = vector.broadcast %474 : i32 to vector<24x256xi32>
    %476 = arith.remsi %472, %475 : vector<24x256xi32>
    %c0_i32_314 = arith.constant 0 : i32
    %477 = vector.broadcast %c0_i32_314 : i32 to vector<24x256xi32>
    %478 = arith.cmpi ne, %476, %477 : vector<24x256xi32>
    %c0_i32_315 = arith.constant 0 : i32
    %479 = vector.broadcast %c0_i32_315 : i32 to vector<24x256xi32>
    %480 = arith.cmpi slt, %476, %479 : vector<24x256xi32>
    %c0_i32_316 = arith.constant 0 : i32
    %481 = arith.cmpi slt, %474, %c0_i32_316 : i32
    %482 = vector.broadcast %481 : i1 to vector<24x256xi1>
    %483 = vector.broadcast %482 : vector<24x256xi1> to vector<24x256xi1>
    %484 = arith.xori %480, %483 : vector<24x256xi1>
    %485 = arith.andi %484, %478 : vector<24x256xi1>
    %486 = vector.broadcast %474 : i32 to vector<24x256xi32>
    %487 = arith.addi %476, %486 : vector<24x256xi32>
    %488 = arith.select %485, %487, %476 : vector<24x256xi1>, vector<24x256xi32>
    %c0_317 = arith.constant 0 : index
    %c111_318 = arith.constant 111 : index
    %489 = vector.load %arg11[%c0_317, %c111_318] : memref<24x512xf32, #tpu.memory_space<vmem>>, vector<24x256xf32>
    %c-1_i32_319 = arith.constant -1 : i32
    %490 = vector.broadcast %c-1_i32_319 : i32 to vector<24x256xi32>
    %491 = arith.addi %488, %490 : vector<24x256xi32>
    %c0_i32_320 = arith.constant 0 : i32
    %492 = vector.broadcast %c0_i32_320 : i32 to vector<24x256xi32>
    %493 = arith.cmpi sge, %491, %492 : vector<24x256xi32>
    %c16_i32_321 = arith.constant 16 : i32
    %494 = vector.broadcast %c16_i32_321 : i32 to vector<24x256xi32>
    %495 = arith.cmpi slt, %491, %494 : vector<24x256xi32>
    %496 = arith.andi %493, %495 : vector<24x256xi1>
    %cst_322 = arith.constant 0.000000e+00 : f32
    %497 = vector.broadcast %cst_322 : f32 to vector<24x256xf32>
    %498 = arith.select %496, %489, %497 : vector<24x256xi1>, vector<24x256xf32>
    %c0_323 = arith.constant 0 : index
    %c112_324 = arith.constant 112 : index
    %499 = vector.load %arg11[%c0_323, %c112_324] : memref<24x512xf32, #tpu.memory_space<vmem>>, vector<24x256xf32>
    %c0_325 = arith.constant 0 : index
    %c113_326 = arith.constant 113 : index
    %500 = vector.load %arg11[%c0_325, %c113_326] : memref<24x512xf32, #tpu.memory_space<vmem>>, vector<24x256xf32>
    %c1_i32_327 = arith.constant 1 : i32
    %501 = vector.broadcast %c1_i32_327 : i32 to vector<24x256xi32>
    %502 = arith.addi %488, %501 : vector<24x256xi32>
    %c0_i32_328 = arith.constant 0 : i32
    %503 = vector.broadcast %c0_i32_328 : i32 to vector<24x256xi32>
    %504 = arith.cmpi sge, %502, %503 : vector<24x256xi32>
    %c16_i32_329 = arith.constant 16 : i32
    %505 = vector.broadcast %c16_i32_329 : i32 to vector<24x256xi32>
    %506 = arith.cmpi slt, %502, %505 : vector<24x256xi32>
    %507 = arith.andi %504, %506 : vector<24x256xi1>
    %cst_330 = arith.constant 0.000000e+00 : f32
    %508 = vector.broadcast %cst_330 : f32 to vector<24x256xf32>
    %509 = arith.select %507, %500, %508 : vector<24x256xi1>, vector<24x256xf32>
    %c0_331 = arith.constant 0 : index
    %c127_332 = arith.constant 127 : index
    %510 = vector.load %arg11[%c0_331, %c127_332] : memref<24x512xf32, #tpu.memory_space<vmem>>, vector<24x256xf32>
    %c-1_i32_333 = arith.constant -1 : i32
    %511 = vector.broadcast %c-1_i32_333 : i32 to vector<24x256xi32>
    %512 = arith.addi %488, %511 : vector<24x256xi32>
    %c0_i32_334 = arith.constant 0 : i32
    %513 = vector.broadcast %c0_i32_334 : i32 to vector<24x256xi32>
    %514 = arith.cmpi sge, %512, %513 : vector<24x256xi32>
    %c16_i32_335 = arith.constant 16 : i32
    %515 = vector.broadcast %c16_i32_335 : i32 to vector<24x256xi32>
    %516 = arith.cmpi slt, %512, %515 : vector<24x256xi32>
    %517 = arith.andi %514, %516 : vector<24x256xi1>
    %cst_336 = arith.constant 0.000000e+00 : f32
    %518 = vector.broadcast %cst_336 : f32 to vector<24x256xf32>
    %519 = arith.select %517, %510, %518 : vector<24x256xi1>, vector<24x256xf32>
    %c0_337 = arith.constant 0 : index
    %c128_338 = arith.constant 128 : index
    %520 = vector.load %arg11[%c0_337, %c128_338] : memref<24x512xf32, #tpu.memory_space<vmem>>, vector<24x256xf32>
    %c0_339 = arith.constant 0 : index
    %c129_340 = arith.constant 129 : index
    %521 = vector.load %arg11[%c0_339, %c129_340] : memref<24x512xf32, #tpu.memory_space<vmem>>, vector<24x256xf32>
    %c1_i32_341 = arith.constant 1 : i32
    %522 = vector.broadcast %c1_i32_341 : i32 to vector<24x256xi32>
    %523 = arith.addi %488, %522 : vector<24x256xi32>
    %c0_i32_342 = arith.constant 0 : i32
    %524 = vector.broadcast %c0_i32_342 : i32 to vector<24x256xi32>
    %525 = arith.cmpi sge, %523, %524 : vector<24x256xi32>
    %c16_i32_343 = arith.constant 16 : i32
    %526 = vector.broadcast %c16_i32_343 : i32 to vector<24x256xi32>
    %527 = arith.cmpi slt, %523, %526 : vector<24x256xi32>
    %528 = arith.andi %525, %527 : vector<24x256xi1>
    %cst_344 = arith.constant 0.000000e+00 : f32
    %529 = vector.broadcast %cst_344 : f32 to vector<24x256xf32>
    %530 = arith.select %528, %521, %529 : vector<24x256xi1>, vector<24x256xf32>
    %c0_345 = arith.constant 0 : index
    %c143_346 = arith.constant 143 : index
    %531 = vector.load %arg11[%c0_345, %c143_346] : memref<24x512xf32, #tpu.memory_space<vmem>>, vector<24x256xf32>
    %c-1_i32_347 = arith.constant -1 : i32
    %532 = vector.broadcast %c-1_i32_347 : i32 to vector<24x256xi32>
    %533 = arith.addi %488, %532 : vector<24x256xi32>
    %c0_i32_348 = arith.constant 0 : i32
    %534 = vector.broadcast %c0_i32_348 : i32 to vector<24x256xi32>
    %535 = arith.cmpi sge, %533, %534 : vector<24x256xi32>
    %c16_i32_349 = arith.constant 16 : i32
    %536 = vector.broadcast %c16_i32_349 : i32 to vector<24x256xi32>
    %537 = arith.cmpi slt, %533, %536 : vector<24x256xi32>
    %538 = arith.andi %535, %537 : vector<24x256xi1>
    %cst_350 = arith.constant 0.000000e+00 : f32
    %539 = vector.broadcast %cst_350 : f32 to vector<24x256xf32>
    %540 = arith.select %538, %531, %539 : vector<24x256xi1>, vector<24x256xf32>
    %c0_351 = arith.constant 0 : index
    %c144_352 = arith.constant 144 : index
    %541 = vector.load %arg11[%c0_351, %c144_352] : memref<24x512xf32, #tpu.memory_space<vmem>>, vector<24x256xf32>
    %c0_353 = arith.constant 0 : index
    %c145_354 = arith.constant 145 : index
    %542 = vector.load %arg11[%c0_353, %c145_354] : memref<24x512xf32, #tpu.memory_space<vmem>>, vector<24x256xf32>
    %c1_i32_355 = arith.constant 1 : i32
    %543 = vector.broadcast %c1_i32_355 : i32 to vector<24x256xi32>
    %544 = arith.addi %488, %543 : vector<24x256xi32>
    %c0_i32_356 = arith.constant 0 : i32
    %545 = vector.broadcast %c0_i32_356 : i32 to vector<24x256xi32>
    %546 = arith.cmpi sge, %544, %545 : vector<24x256xi32>
    %c16_i32_357 = arith.constant 16 : i32
    %547 = vector.broadcast %c16_i32_357 : i32 to vector<24x256xi32>
    %548 = arith.cmpi slt, %544, %547 : vector<24x256xi32>
    %549 = arith.andi %546, %548 : vector<24x256xi1>
    %cst_358 = arith.constant 0.000000e+00 : f32
    %550 = vector.broadcast %cst_358 : f32 to vector<24x256xf32>
    %551 = arith.select %549, %542, %550 : vector<24x256xi1>, vector<24x256xf32>
    %552 = arith.addf %470, %498 : vector<24x256xf32>
    %553 = arith.addf %552, %499 : vector<24x256xf32>
    %554 = arith.addf %553, %509 : vector<24x256xf32>
    %555 = arith.addf %554, %519 : vector<24x256xf32>
    %556 = arith.addf %555, %520 : vector<24x256xf32>
    %557 = arith.addf %556, %530 : vector<24x256xf32>
    %558 = arith.addf %557, %540 : vector<24x256xf32>
    %559 = arith.addf %558, %541 : vector<24x256xf32>
    %560 = arith.addf %559, %551 : vector<24x256xf32>
    %cst_359 = arith.constant 0.111111112 : f32
    %561 = vector.broadcast %cst_359 : f32 to vector<24x256xf32>
    %562 = arith.mulf %560, %561 : vector<24x256xf32>
    %563 = vector.extract_strided_slice %6 {offsets = [48, 0], sizes = [24, 1], strides = [1, 1]} : vector<72x1xf32> to vector<24x1xf32>
    %564 = vector.broadcast %563 : vector<24x1xf32> to vector<24x256xf32>
    %565 = arith.addf %562, %564 : vector<24x256xf32>
    %c0_360 = arith.constant 0 : index
    %c64_361 = arith.constant 64 : index
    %c0_362 = arith.constant 0 : index
    %566 = vector.load %arg10[%c0_360, %c64_361, %c0_362] : memref<1x88x256xf32, #tpu.memory_space<vmem>>, vector<1x24x256xf32>
    %567 = vector.shape_cast %566 : vector<1x24x256xf32> to vector<24x256xf32>
    %568 = vector.shape_cast %565 : vector<24x256xf32> to vector<1x24x256xf32>
    tpu.vector_store %arg10[%c0_360, %c64_361, %c0_362], %568 {strides = array<i32>} : memref<1x88x256xf32, #tpu.memory_space<vmem>>, vector<1x24x256xf32>,
    return
  }
  func.func @transform_0(%arg0: i32) -> (i32, i32, i32) {
    %c0_i32 = arith.constant 0 : i32
    %c0_i32_0 = arith.constant 0 : i32
    %c0_i32_1 = arith.constant 0 : i32
    return %arg0, %c0_i32, %c0_i32_0 : i32, i32, i32
  }
  func.func @transform_1(%arg0: i32) -> (i32, i32) {
    %c0_i32 = arith.constant 0 : i32
    %c0_i32_0 = arith.constant 0 : i32
    %c0_i32_1 = arith.constant 0 : i32
    return %c0_i32, %c0_i32_0 : i32, i32
  }
  func.func @transform_2(%arg0: i32) -> (i32, i32) {
    %c0_i32 = arith.constant 0 : i32
    %c0_i32_0 = arith.constant 0 : i32
    %c0_i32_1 = arith.constant 0 : i32
    return %c0_i32, %c0_i32_0 : i32, i32
  }
  func.func @transform_3(%arg0: i32) -> (i32, i32) {
    %c0_i32 = arith.constant 0 : i32
    %c0_i32_0 = arith.constant 0 : i32
    %c0_i32_1 = arith.constant 0 : i32
    return %c0_i32, %c0_i32_0 : i32, i32
  }
  func.func @transform_4(%arg0: i32) -> (i32, i32) {
    %c0_i32 = arith.constant 0 : i32
    %c0_i32_0 = arith.constant 0 : i32
    %c0_i32_1 = arith.constant 0 : i32
    return %c0_i32, %c0_i32_0 : i32, i32
  }
  func.func @transform_5(%arg0: i32) -> (i32, i32) {
    %c0_i32 = arith.constant 0 : i32
    %c0_i32_0 = arith.constant 0 : i32
    %c0_i32_1 = arith.constant 0 : i32
    return %c0_i32, %c0_i32_0 : i32, i32
  }
  func.func @transform_6(%arg0: i32) -> (i32, i32) {
    %c0_i32 = arith.constant 0 : i32
    %c0_i32_0 = arith.constant 0 : i32
    %c0_i32_1 = arith.constant 0 : i32
    return %c0_i32, %c0_i32_0 : i32, i32
  }
  func.func @transform_7(%arg0: i32) -> (i32, i32) {
    %c0_i32 = arith.constant 0 : i32
    %c0_i32_0 = arith.constant 0 : i32
    %c0_i32_1 = arith.constant 0 : i32
    return %c0_i32, %c0_i32_0 : i32, i32
  }
  func.func @transform_8(%arg0: i32) -> (i32, i32) {
    %c0_i32 = arith.constant 0 : i32
    %c0_i32_0 = arith.constant 0 : i32
    %c0_i32_1 = arith.constant 0 : i32
    return %c0_i32, %c0_i32_0 : i32, i32
  }
  func.func @transform_9(%arg0: i32) -> (i32, i32, i32) {
    %c0_i32 = arith.constant 0 : i32
    %c0_i32_0 = arith.constant 0 : i32
    %c0_i32_1 = arith.constant 0 : i32
    return %arg0, %c0_i32, %c0_i32_0 : i32, i32, i32
  }
}

</mosaic_0001>

<bundles_post_ra>
// kernel: inception_a_pallas.1
= control target key start
LH: loop header
LB: loop body
LE: loop exit
PB: predicated region body
PF: predicated region fallthrough
CT: control target
= control target key end

     0   :  { %s4281_s30 = smov 0   ;;  %s5986_s0 = inlined_call_operand.vmem [shape: f32[2,4,256], index: 0, kind: input, shape index: {}]   ;;  %s5987_s1 = inlined_call_operand.vmem [shape: f32[72,4], index: 1, kind: input, shape index: {}]   ;;  %s5988_s2 = inlined_call_operand.vmem [shape: f32[72,1], index: 2, kind: input, shape index: {}]   ;;  %s5989_s3 = inlined_call_operand.vmem [shape: f32[24,400], index: 3, kind: input, shape index: {}]   ;;  %s5990_s4 = inlined_call_operand.vmem [shape: f32[24,1], index: 4, kind: input, shape index: {}]   ;;  %s5991_s5 = inlined_call_operand.vmem [shape: f32[24,144], index: 5, kind: input, shape index: {}]   ;;  %s5992_s6 = inlined_call_operand.vmem [shape: f32[24,1], index: 6, kind: input, shape index: {}]   ;;  %s5993_s7 = inlined_call_operand.vmem [shape: f32[24,216], index: 7, kind: input, shape index: {}]   ;;  %s5994_s8 = inlined_call_operand.vmem [shape: f32[24,1], index: 8, kind: input, shape index: {}]   ;;  %s5995_s9 = inlined_call_operand.vmem [shape: f32[2,88,256], index: 9, kind: output, shape index: {}]  }
   0x1 LB: > { %s3039_s10 = sadd.s32 4294967295, %s4202_s30   ;;  %p3043_p0 = scmp.ge.s32.totalorder %s4202_s30, 1  ;;  %s4202_s30 = sphi %s4281_s30, %s19_s30  }
   0x2   : > { %p287_p1 = scmp.lt.s32.totalorder %s4202_s30, 3 }
   0x4   : > { %p288_p2 = pnand %p3043_p0, %p287_p1 }
   0x6   : > { %291 = sbr.rel (%p288_p2) target bundleno = 1085 (0x43d), region = 56 }
   0xd   : > { %p323_p3 = scmp.lt.s32.totalorder %s3039_s10, 1  ;;  %v6010_v0 = vmov 0.0   ;;  %v4205_v1 = vmov 0   ;;  %v511_v2 = vld [vmem:[%s5988_s2 + $0x10] sm:$0xff]  ;;  %v509_v3 = vld [vmem:[%s5988_s2] sm:$0xff]  ;;  %v512_v4 = vld [vmem:[%s5988_s2 + $0x18] sm:$0xff] }
   0xe   : > { %454 = vmatprep.mubr.f32.mxu0 %v6010_v0  ;;  %3519 = vset.pattern.permute.xlu1 %v4205_v1  ;;  %v510_v5 = vld [vmem:[%s5988_s2 + $0x8] sm:$0xff]  ;;  %vm385_vm0 = vcmask 1043456   ;;  %v346_v8 = vld [vmem:[%s5987_s1] sm:$0xff]  ;;  %vm357_vm1 = vcmask 31744   ;;  %v348_v12 = vld [vmem:[%s5987_s1 + $0x10] sm:$0xff]  ;;  %s4206_s20 = smov 17  }
   0xf   : > { %s6286_s10 = smov (!%p323_p3, %s3039_s10), 1  ;;  %3518 = vset.pattern.permute.xlu0 %v4205_v1  ;;  %530 = vperm.xlu1 %3519, %v511_v2   ;;  %v514_v9 = vld [vmem:[%s5988_s2 + $0x28] sm:$0xff]  ;;  %v513_v10 = vld [vmem:[%s5988_s2 + $0x20] sm:$0xff]  ;;  %v349_v13 = vld [vmem:[%s5987_s1 + $0x18] sm:$0xff]  ;;  %s4207_s21 = smov 16   ;;  %vm6050_vm2 = vcmask 130048  }
  0x10   : > { %520 = vperm.xlu0 %3518, %v509_v3   ;;  %s3069_s15 = sshll.u32 %s6286_s10, 3  ;;  %v347_v11 = vld [vmem:[%s5987_s1 + $0x8] sm:$0xff]  ;;  %v350_v14 = vld [vmem:[%s5987_s1 + $0x20] sm:$0xff]  ;;  %s3482_s23 = smul.u32 176, %s6286_s10  ;;  %v352_v63 = vld [vmem:[%s5987_s1 + $0x30] sm:$0xff]  ;;  %vm642_vm3 = vcmask 277504  }
  0x11   : > { %s327_s22 = scalar_lea.vmem %s5986_s0, %s3069_s15  ;;  %v351_v15 = vld [vmem:[%s5987_s1 + $0x28] sm:$0xff]  ;;  %s4209_s10 = smov 33   ;;  %v353_v1 = vld [vmem:[%s5987_s1 + $0x38] sm:$0xff]  ;;  %v354_v2 = vld [vmem:[%s5987_s1 + $0x40] sm:$0xff]  ;;  %vm675_vm7 = vcmask 269312   ;;  %vm6046_vm13 = vcmask 138240  }
  0x12   : > { %v345_v6 = vld [vmem:[%s327_s22] sm:$0xff]  ;;  %s4208_s22 = smov 15   ;;  %s4354_s26 = scalar_lea.vmem %s5995_s9, %s3482_s23  ;;  %v1639_v3 = vld [vmem:[%s5991_s5 + $0x8] sm:$0xff]  ;;  %vm6049_vm15 = vcmask 121856  }
  0x13   : > { %v356_v7 = vcombine.high %v345_v6, %v345_v6  ;;  %535 = vperm.xlu1 %3519, %v512_v4   ;;  %s4210_s27 = smov 34   ;;  %s4211_s28 = smov 30  }
  0x14   : > { %525 = vperm.xlu0 %3518, %v510_v5   ;;  %s4212_s29 = smov 31   ;;  %s4213_s11 = smov 18  }
  0x15   : > { %3047 = vmatprep.subr.msk.mxu0 %vm385_vm0, %v356_v7  ;;  %s4214_s12 = smov 127   ;;  %s4215_s13 = smov 1  }
  0x16   : > { %3048 = vmatpush1.msk.msra.mxu0 %vm385_vm0, %v345_v6  ;;  %s4216_s14 = smov 112   ;;  %s4217_s15 = smov 113  }
  0x17   : > { %3049 = vmatmul.mubr.msk.f32.vlgmr.msra.gmra.mrb[0].mxu0 %vm357_vm1, %v346_v8  ;;  %545 = vperm.xlu1 %3519, %v514_v9   ;;  %s4218_s23 = smov 111   ;;  %s4222_s16 = smov 114  }
  0x18   : > { %460 = vmatprep.mubr.f32.mxu0 %v6010_v0  ;;  %540 = vperm.xlu0 %3518, %v513_v10   ;;  %s4223_s17 = smov 110   ;;  %s4224_s18 = smov 98  }
  0x19   : > { %s4225_s19 = smov 97   ;;  %s4229_s25 = smov 96  }
  0x1b   : > { %3050 = vmatmul.mubr.msk.f32.gmra.mrb[2].mxu0 %vm357_vm1, %v347_v11  ;;  %3521 = vrot.lane.b32.xlu1 %v6010_v0, %s4206_s20  ;;  %v583_v11 = vlaneseq }
  0x1c   : > { %466 = vmatprep.mubr.f32.mxu0 %v6010_v0  ;;  %3526 = vrot.lane.b32.xlu0 %v6010_v0, %s4207_s21 }
  0x1f   : > { %3051 = vmatmul.mubr.msk.f32.gmra.mrb[4].mxu0 %vm357_vm1, %v348_v12  ;;  %3531 = vrot.lane.b32.xlu1 %v6010_v0, %s4208_s22 }
  0x20   : > { %472 = vmatprep.mubr.f32.mxu0 %v6010_v0 }
  0x23   : > { %3052 = vmatmul.mubr.msk.f32.gmra.mrb[6].mxu0 %vm357_vm1, %v349_v13 }
  0x24   : > { %478 = vmatprep.mubr.f32.mxu0 %v6010_v0 }
  0x27   : > { %3053 = vmatmul.mubr.msk.f32.gmra.mrb[8].mxu0 %vm357_vm1, %v350_v14  ;;  %v584_v14 = vand.u32 127, %v583_v11 }
  0x28   : > { %484 = vmatprep.mubr.f32.mxu0 %v6010_v0 }
  0x2b   : > { %3054 = vmatmul.mubr.msk.f32.gmra.mrb[10].mxu0 %vm357_vm1, %v351_v15 }
  0x2c   : > { %490 = vmatprep.mubr.f32.mxu0 %v6010_v0 }
  0x2f   : > { %3055 = vmatmul.mubr.msk.f32.gmra.mrb[12].mxu0 %vm357_vm1, %v352_v63 }
  0x30   : > { %496 = vmatprep.mubr.f32.mxu0 %v6010_v0 }
  0x33   : > { %3056 = vmatmul.mubr.msk.f32.gmra.mrb[14].mxu0 %vm357_vm1, %v353_v1 }
  0x34   : > { %502 = vmatprep.mubr.f32.mxu0 %v6010_v0 }
  0x37   : > { %3057 = vmatmul.mubr.msk.f32.gmra.mrb[16].mxu0 %vm357_vm1, %v354_v2  ;;  %vm6048_vm1 = vcmask 7168  }
  0x38   : > { %3061 = vmatprep.mubr.msk.f32.mxu0 %vm6050_vm2, %v1639_v3 }
  0x8e   : > { %v531_v25 = vpop.permute.xlu1 %530 }
  0x8f   : > { %v521_v16 = vpop.permute.xlu0 %520 }
  0x92   : > { %v536_v31 = vpop.permute.xlu1 %535 }
  0x93   : > { %v526_v21 = vpop.permute.xlu0 %525 }
  0x96   : > { %v546_v44 = vpop.permute.xlu1 %545 }
  0x97   : > { %v541_v36 = vpop.permute.xlu0 %540 }
  0x9a   : > { %v4511_v5 = vpop.permute.xlu1 %3521 }
  0x9b   : > { %v4523_v7 = vpop.permute.xlu0 %3526 }
  0x9c   : > { %v3528_v58 = vunpack.i.l.bf16 %v4523_v7 }
  0x9e   : > { %v4525_v8 = vpop.permute.xlu1 %3531 }
  0xea   : > { %v456_v17 = vpop.f32.mrb[0].mxu0 }
  0xeb   : > { %v548_v18 = vadd.f32 %v521_v16, %v456_v17  ;;  %v458_v19 = vpop.f32.mrb[1].mxu0  ;;  %v585_v17 = vadd.s32 128, %v584_v14 }
  0xec   : > { %v549_v20 = vadd.f32 %v521_v16, %v458_v19 }
  0xed   : > { %560 = vst [vmem:[%s4354_s26] sm:$0xff] %v548_v18 }
  0xee   : > { %561 = vst [vmem:[%s4354_s26 + $0x8] sm:$0xff] %v549_v20  ;;  %v462_v22 = vpop.f32.mrb[2].mxu0  ;;  %v4549_v20 = vand.u32 15, %v585_v17 }
  0xef   : > { %v550_v23 = vadd.f32 %v526_v21, %v462_v22  ;;  %v464_v24 = vpop.f32.mrb[3].mxu0 }
  0xf0   : > { %v551_v26 = vadd.f32 %v526_v21, %v464_v24  ;;  %v4554_v21 = vand.u32 15, %v584_v14  ;;  %v617_v24 = vadd.s32 4294967294, %v4549_v20 }
  0xf1   : > { %562 = vst [vmem:[%s4354_s26 + $0x10] sm:$0xff] %v550_v23 }
  0xf2   : > { %563 = vst [vmem:[%s4354_s26 + $0x18] sm:$0xff] %v551_v26  ;;  %v468_v27 = vpop.f32.mrb[4].mxu0  ;;  %vm619_vm4 = vcmp.ge.s32.totalorder %v617_v24, 0 }
  0xf3   : > { %v4360_v28 = vadd.f32 %v531_v25, %v468_v27  ;;  %v470_v29 = vpop.f32.mrb[5].mxu0  ;;  %v616_v27 = vadd.s32 4294967294, %v4554_v21  ;;  %vm4583_vm6 = vmpackc.low %vm619_vm4, %vm619_vm4 }
  0xf4   : > { %v4374_v37 = vadd.f32 %v531_v25, %v470_v29 }
  0xf5   : > { %v4364_v30 = vpack.i.bf16 %v4360_v28, %v6010_v0  ;;  %vm618_vm5 = vcmp.ge.s32.totalorder %v616_v27, 0 }
  0xf6   : > { %v474_v32 = vpop.f32.mrb[6].mxu0  ;;  %v4400_v50 = vpack.i.bf16 %v6010_v0, %v4374_v37  ;;  %v4404_v51 = vpack.i.bf16 %v4374_v37, %v4360_v28  ;;  %vm4593_vm9 = vmpackc.low %vm618_vm5, %vm618_vm5  ;;  %vm6045_vm5 = vcmask 1039360  }
  0xf7   : > { %v4366_v33 = vadd.f32 %v536_v31, %v474_v32  ;;  %3541 = vrot.lane.b32.xlu1 %v4364_v30, %s4209_s10  ;;  %3536 = vrot.lane.b32.xlu0 %v4364_v30, %s4210_s27  ;;  %v476_v34 = vpop.f32.mrb[7].mxu0 }
  0xf8   : > { %v4372_v35 = vadd.f32 %v536_v31, %v476_v34  ;;  %6052 = vst [vmem:[#allocation4_spill] sm:$0xff] %v4400_v50  ;;  %v4568_v34 = vadd.s32 4294967295, %v4549_v20 }
  0xf9   : > { %v3960_v55 = vpack.i.bf16 %v4366_v33, %v4374_v37  ;;  %v4505_v4 = vpack.i.bf16 %v4366_v33, %v6010_v0 }
  0xfa   : > { %v480_v38 = vpop.f32.mrb[8].mxu0  ;;  %v4378_v39 = vpack.i.bf16 %v4372_v35, %v4366_v33  ;;  %v4518_v6 = vpack.i.bf16 %v6010_v0, %v4372_v35  ;;  %6054 = vst [vmem:[#allocation6_spill] sm:$0xff] %v4568_v34  ;;  %vm6035_vm8 = vcmp.ge.s32.totalorder %v4568_v34, 0 }
  0xfb   : > { %v4380_v40 = vadd.f32 %v541_v36, %v480_v38  ;;  %3551 = vrot.lane.b32.xlu1 %v4364_v30, %s4211_s28  ;;  %3546 = vrot.lane.b32.xlu0 %v4364_v30, %s4212_s29  ;;  %v482_v41 = vpop.f32.mrb[9].mxu0  ;;  %vm4610_vm11 = vmpackc.low %vm6035_vm8, %vm6035_vm8  ;;  %vm708_vm8 = vcmask 252928  }
  0xfc   : > { %v4385_v42 = vadd.f32 %v541_v36, %v482_v41  ;;  %6053 = vst [vmem:[#allocation5_spill] sm:$0xff] %v4518_v6 }
  0xfd   : > { %v3615_v43 = vpack.i.bf16 %v4380_v40, %v4374_v37 }
  0xfe   : > { %v486_v45 = vpop.f32.mrb[10].mxu0  ;;  %v3625_v46 = vpack.i.bf16 %v4385_v42, %v4380_v40  ;;  %v3660_v62 = vpack.i.bf16 %v6010_v0, %v4385_v42 }
  0xff   : > { %v4391_v47 = vadd.f32 %v546_v44, %v486_v45  ;;  %3561 = vrot.lane.b32.xlu1 %v4364_v30, %s4206_s20  ;;  %3556 = vrot.lane.b32.xlu0 %v4364_v30, %s4213_s11  ;;  %v488_v48 = vpop.f32.mrb[11].mxu0 }
 0x100   : > { %v4396_v49 = vadd.f32 %v546_v44, %v488_v48 }
 0x101   : > { %v3630_v52 = vpack.i.bf16 %v4391_v47, %v4385_v42  ;;  %v3670_v53 = vpack.i.bf16 %v4391_v47, %v4380_v40 }
 0x102   : > { %v3645_v54 = vpack.i.bf16 %v4396_v49, %v4391_v47  ;;  %v3372_v56 = vpack.c.bf16 %v4396_v49, %v4385_v42  ;;  %v3635_v61 = vpack.i.bf16 %v6010_v0, %v4396_v49  ;;  %v6070_v42 = vpack.c.bf16 %v4391_v47, %v4380_v40  ;;  %v4878_v34 = vpop.f32.mrb[12].mxu0 }
 0x103   : > { %3571 = vrot.lane.b32.xlu0 %v4400_v50, %s4209_s10  ;;  %3566 = vrot.lane.b32.xlu1 %v4400_v50, %s4210_s27  ;;  %6086 = vst [vmem:[#allocation25_spill] sm:$0xff] %v4878_v34 }
 0x107   : > { %3581 = vrot.lane.b32.xlu0 %v4400_v50, %s4211_s28  ;;  %3576 = vrot.lane.b32.xlu1 %v4400_v50, %s4212_s29 }
 0x10b   : > { %3586 = vrot.lane.b32.xlu1 %v4400_v50, %s4213_s11  ;;  %3591 = vrot.lane.b32.xlu0 %v4378_v39, %s4210_s27 }
 0x10f   : > { %3596 = vrot.lane.b32.xlu1 %v4378_v39, %s4209_s10  ;;  %3601 = vrot.lane.b32.xlu0 %v4378_v39, %s4212_s29  ;;  %s4220_s29 = smov 2  }
 0x113   : > { %3606 = vrot.lane.b32.xlu1 %v4378_v39, %s4211_s28  ;;  %3611 = vrot.lane.b32.xlu0 %v4378_v39, %s4213_s11  ;;  %s4219_s28 = smov 14   ;;  %s4221_s11 = smov 126  }
 0x117   : > { %3616 = vrot.lane.b32.xlu0 %v3615_v43, %s4206_s20  ;;  %3626 = vrot.lane.b32.xlu1 %v3625_v46, %s4208_s22  ;;  %v4571_v43 = vadd.s32 4294967295, %v4554_v21 }
 0x119   : > { %6055 = vst [vmem:[#allocation7_spill] sm:$0xff] %v4571_v43  ;;  %vm6026_vm10 = vcmp.ge.s32.totalorder %v4571_v43, 0 }
 0x11a   : > { %vm4623_vm12 = vmpackc.low %vm6026_vm10, %vm6026_vm10  ;;  %vm1178_vm10 = vcmask 261120  }
 0x11b   : > { %3621 = vrot.lane.b32.xlu0 %v3625_v46, %s4207_s21  ;;  %3631 = vrot.lane.b32.xlu1 %v3630_v52, %s4206_s20 }
 0x11f   : > { %3646 = vrot.lane.b32.xlu1 %v3645_v54, %s4207_s21  ;;  %3636 = vrot.lane.b32.xlu0 %v3635_v61, %s4206_s20 }
 0x123   : > { %3661 = vrot.lane.b32.xlu1 %v3660_v62, %s4214_s12  ;;  %3641 = vrot.lane.b32.xlu0 %v3625_v46, %s4215_s13 }
 0x127   : > { %3666 = vrot.lane.b32.xlu1 %v3645_v54, %s4215_s13  ;;  %3651 = vrot.lane.b32.xlu0 %v3645_v54, %s4208_s22 }
 0x12b   : > { %3671 = vrot.lane.b32.xlu1 %v3670_v53, %s4214_s12  ;;  %3656 = vrot.lane.b32.xlu0 %v6010_v0, %s4215_s13 }
 0x12f   : > { %3691 = vrot.lane.b32.xlu1 %v3660_v62, %s4216_s14  ;;  %3676 = vrot.lane.b32.xlu0 %v3660_v62, %s4217_s15 }
 0x133   : > { %3696 = vrot.lane.b32.xlu1 %v3635_v61, %s4217_s15  ;;  %3681 = vrot.lane.b32.xlu0 %v3635_v61, %s4214_s12 }
 0x137   : > { %3701 = vrot.lane.b32.xlu1 %v3670_v53, %s4216_s14  ;;  %3686 = vrot.lane.b32.xlu0 %v3670_v53, %s4217_s15 }
 0x13b   : > { %3716 = vrot.lane.b32.xlu1 %v3635_v61, %s4218_s23  ;;  %3706 = vrot.lane.b32.xlu0 %v3635_v61, %s4216_s14 }
 0x13f   : > { %3726 = vrot.lane.b32.xlu1 %v4378_v39, %s4206_s20  ;;  %3711 = vrot.lane.b32.xlu0 %v3660_v62, %s4218_s23 }
 0x143   : > { %3736 = vrot.lane.b32.xlu1 %v4400_v50, %s4208_s22  ;;  %3721 = vrot.lane.b32.xlu0 %v3670_v53, %s4218_s23 }
 0x147   : > { %3746 = vrot.lane.b32.xlu1 %v4364_v30, %s4219_s28  ;;  %3731 = vrot.lane.b32.xlu0 %v4364_v30, %s4208_s22 }
 0x14b   : > { %3756 = vrot.lane.b32.xlu1 %v4378_v39, %s4219_s28  ;;  %3741 = vrot.lane.b32.xlu0 %v4378_v39, %s4208_s22 }
 0x14f   : > { %3766 = vrot.lane.b32.xlu1 %v4400_v50, %s4220_s29  ;;  %3751 = vrot.lane.b32.xlu0 %v4400_v50, %s4219_s28  ;;  %s4226_s28 = smov 95  }
 0x153   : > { %3776 = vrot.lane.b32.xlu1 %v4364_v30, %s4215_s13  ;;  %3761 = vrot.lane.b32.xlu0 %v4364_v30, %s4220_s29 }
 0x157   : > { %3786 = vrot.lane.b32.xlu1 %v4378_v39, %s4215_s13  ;;  %3771 = vrot.lane.b32.xlu0 %v4378_v39, %s4220_s29 }
 0x15b   : > { %3796 = vrot.lane.b32.xlu1 %v4505_v4, %s4214_s12  ;;  %3781 = vrot.lane.b32.xlu0 %v4400_v50, %s4215_s13  ;;  %v4882_v50 = vpop.f32.mrb[13].mxu0 }
 0x15c   : > { %6088 = vst [vmem:[#allocation27_spill] sm:$0xff] %v4882_v50  ;;  %v6098_v50 = vmov 0.0  }
 0x15f   : > { %3806 = vrot.lane.b32.xlu1 %v4404_v51, %s4221_s11  ;;  %3791 = vrot.lane.b32.xlu0 %v4404_v51, %s4214_s12 }
 0x163   : > { %3816 = vrot.lane.b32.xlu1 %v4518_v6, %s4221_s11  ;;  %3801 = vrot.lane.b32.xlu0 %v4518_v6, %s4214_s12 }
 0x167   : > { %3826 = vrot.lane.b32.xlu1 %v4505_v4, %s4222_s16  ;;  %3811 = vrot.lane.b32.xlu0 %v4505_v4, %s4221_s11 }
 0x169   : > { %v4529_v9 = vpop.permute.xlu1 %3541  ;;  %v3537_v10 = vpop.permute.xlu0 %3536 }
 0x16a   : > { %v3539_v25 = vunpack.i.h.bf16 %v3537_v10  ;;  %v3538_v26 = vunpack.i.l.bf16 %v3537_v10  ;;  %v3544_v44 = vunpack.i.h.bf16 %v4529_v9  ;;  %v3543_v45 = vunpack.i.l.bf16 %v4529_v9 }
 0x16b   : > { %3836 = vrot.lane.b32.xlu1 %v4404_v51, %s4217_s15  ;;  %3821 = vrot.lane.b32.xlu0 %v4404_v51, %s4222_s16 }
 0x16c   : > { %v643_v46 = vsel %vm642_vm3, %v3538_v26, %v3539_v25  ;;  %v676_v14 = vsel %vm675_vm7, %v3543_v45, %v3544_v44 }
 0x16d   : > { %v4534_v12 = vpop.permute.xlu1 %3551  ;;  %v4536_v13 = vpop.permute.xlu0 %3546 }
 0x16f   : > { %3846 = vrot.lane.b32.xlu1 %v4518_v6, %s4217_s15  ;;  %3831 = vrot.lane.b32.xlu0 %v4518_v6, %s4222_s16  ;;  %s4227_s16 = smov 94  }
 0x171   : > { %v4541_v15 = vpop.permute.xlu1 %3561  ;;  %v4543_v16 = vpop.permute.xlu0 %3556 }
 0x173   : > { %3856 = vrot.lane.b32.xlu1 %v4505_v4, %s4218_s23  ;;  %3841 = vrot.lane.b32.xlu0 %v4505_v4, %s4217_s15 }
 0x175   : > { %v3572_v18 = vpop.permute.xlu0 %3571  ;;  %v3567_v19 = vpop.permute.xlu1 %3566 }
 0x176   : > { %v3568_v29 = vunpack.i.l.bf16 %v3567_v19  ;;  %v3569_v36 = vunpack.i.h.bf16 %v3567_v19  ;;  %v3573_v48 = vunpack.i.l.bf16 %v3572_v18  ;;  %v3574_v3 = vunpack.i.h.bf16 %v3572_v18 }
 0x177   : > { %3866 = vrot.lane.b32.xlu1 %v4404_v51, %s4223_s17  ;;  %3851 = vrot.lane.b32.xlu0 %v4404_v51, %s4218_s23 }
 0x178   : > { %v644_v52 = vsel %vm642_vm3, %v3539_v25, %v3568_v29  ;;  %v677_v17 = vsel %vm675_vm7, %v3544_v44, %v3573_v48  ;;  %v1646_v44 = vld [vmem:[%s5992_s6 + $0x10] sm:$0xff] }
 0x179   : > { %v4556_v22 = vpop.permute.xlu0 %3581  ;;  %v4558_v23 = vpop.permute.xlu1 %3576 }
 0x17b   : > { %3876 = vrot.lane.b32.xlu1 %v4518_v6, %s4223_s17  ;;  %3861 = vrot.lane.b32.xlu0 %v4518_v6, %s4218_s23 }
 0x17d   : > { %v4565_v31 = vpop.permute.xlu1 %3586  ;;  %v3592_v32 = vpop.permute.xlu0 %3591 }
 0x17e   : > { %v3594_v38 = vunpack.i.h.bf16 %v3592_v32  ;;  %v3593_v41 = vunpack.i.l.bf16 %v3592_v32 }
 0x17f   : > { %3886 = vrot.lane.b32.xlu1 %v4505_v4, %s4224_s18  ;;  %3871 = vrot.lane.b32.xlu0 %v4505_v4, %s4223_s17  ;;  %s4228_s17 = smov 32  }
 0x180   : > { %v646_v53 = vsel %vm642_vm3, %v3593_v41, %v3594_v38  ;;  %v645_v61 = vsel %vm642_vm3, %v3569_v36, %v3593_v41  ;;  %v1644_v36 = vld [vmem:[%s5992_s6] sm:$0xff] }
 0x181   : > { %v3597_v62 = vpop.permute.xlu1 %3596  ;;  %v4588_v63 = vpop.permute.xlu0 %3601  ;;  %v3210_v1 = vpack.c.bf16 %v646_v53, %v644_v52  ;;  %v3213_v2 = vpack.c.bf16 %v645_v61, %v643_v46  ;;  %v3523_v52 = vunpack.i.l.bf16 %v4511_v5 }
 0x182   : > { %v3599_v9 = vunpack.i.h.bf16 %v3597_v62  ;;  %v3598_v10 = vunpack.i.l.bf16 %v3597_v62 }
 0x183   : > { %3212 = vmatprep.subr.msk.bf16.mxu1 %vm4583_vm6, %v3210_v1  ;;  %3896 = vrot.lane.b32.xlu1 %v4404_v51, %s4225_s19 }
 0x184   : > { %v678_v18 = vsel %vm675_vm7, %v3574_v3, %v3598_v10  ;;  %v679_v19 = vsel %vm675_vm7, %v3598_v10, %v3599_v9  ;;  %3881 = vrot.lane.b32.xlu0 %v4404_v51, %s4224_s18  ;;  %3215 = vmatpush1.bf16.msk.msra.mxu1 %vm4593_vm9, %v3213_v2  ;;  %v1645_v9 = vld [vmem:[%s5992_s6 + $0x8] sm:$0xff]  ;;  %vm6044_vm7 = vcmask 924672  }
 0x185   : > { %v4616_v25 = vpop.permute.xlu1 %3606  ;;  %v4618_v26 = vpop.permute.xlu0 %3611  ;;  %v3216_v27 = vpack.c.bf16 %v679_v19, %v677_v17  ;;  %v3219_v29 = vpack.c.bf16 %v678_v18, %v676_v14  ;;  %v3529_v19 = vunpack.i.h.bf16 %v4523_v7  ;;  %v3533_v7 = vunpack.i.l.bf16 %v4525_v8 }
 0x187   : > { %3218 = vmatprep.subr.msk.bf16.mxu1 %vm4610_vm11, %v3216_v27  ;;  %3906 = vrot.lane.b32.xlu1 %v4518_v6, %s4225_s19  ;;  %v4654_v27 = vadd.s32 1, %v4554_v21 }
 0x188   : > { %3891 = vrot.lane.b32.xlu0 %v4518_v6, %s4224_s18  ;;  %3221 = vmatpush1.bf16.msk.msra.mxu1 %vm4623_vm12, %v3219_v29 }
 0x189   : > { %v4637_v38 = vpop.permute.xlu0 %3616  ;;  %v4639_v41 = vpop.permute.xlu1 %3626  ;;  %6064 = vst [vmem:[#allocation8_spill] sm:$0xff] %v4654_v27  ;;  %vm5996_vm14 = vcmp.lt.s32.totalorder %v4654_v27, 16 }
 0x18a   : > { %v3619_v61 = vunpack.i.h.bf16 %v4637_v38  ;;  %vm4705_vm4 = vmpackc.low %vm5996_vm14, %vm5996_vm14  ;;  %vm6043_vm14 = vcmask 916480  }
 0x18b   : > { %1925 = vperm.xlu1 %3519, %v1644_v36  }
 0x18c   : > { %3901 = vrot.lane.b32.xlu0 %v4505_v4, %s4225_s19 }
 0x18d   : > { %v3622_v45 = vpop.permute.xlu0 %3621  ;;  %v3632_v46 = vpop.permute.xlu1 %3631 }
 0x18e   : > { %v3634_v48 = vunpack.i.h.bf16 %v3632_v46  ;;  %v3633_v53 = vunpack.i.l.bf16 %v3632_v46  ;;  %v3624_v62 = vunpack.i.h.bf16 %v3622_v45  ;;  %v3623_v1 = vunpack.i.l.bf16 %v3622_v45 }
 0x18f   : > { %1935 = vperm.xlu1 %3519, %v1646_v44  }
 0x190   : > { %3911 = vrot.lane.b32.xlu0 %v4404_v51, %s4226_s28  ;;  %v1677_v29 = vsel %vm6046_vm13, %v3523_v52, %v3634_v48  ;;  %v1676_v36 = vsel %vm6046_vm13, %v3619_v61, %v3633_v53  ;;  %v1828_v53 = vsel %vm6050_vm2, %v3623_v1, %v3624_v62  ;;  %v1827_v62 = vsel %vm6050_vm2, %v3528_v58, %v3623_v1 }
 0x191   : > { %v3647_v2 = vpop.permute.xlu1 %3646  ;;  %v3637_v3 = vpop.permute.xlu0 %3636 }
 0x192   : > { %v3649_v10 = vunpack.i.h.bf16 %v3647_v2  ;;  %v3648_v14 = vunpack.i.l.bf16 %v3647_v2  ;;  %v3639_v17 = vunpack.i.h.bf16 %v3637_v3  ;;  %v3638_v18 = vunpack.i.l.bf16 %v3637_v3 }
 0x193   : > { %3921 = vrot.lane.b32.xlu1 %v4518_v6, %s4226_s28  ;;  %v4664_v2 = vadd.s32 1, %v4549_v20 }
 0x194   : > { %v1675_v44 = vsel %vm6046_vm13, %v3639_v17, %v3619_v61  ;;  %v1678_v45 = vsel %vm6046_vm13, %v3634_v48, %v3638_v18  ;;  %1930 = vperm.xlu0 %3518, %v1645_v9   ;;  %v1830_v46 = vsel %vm6050_vm2, %v3648_v14, %v3649_v10  ;;  %v1829_v57 = vsel %vm6050_vm2, %v3529_v19, %v3648_v14 }
 0x195   : > { %6065 = vst [vmem:[#allocation9_spill] sm:$0xff] %v4664_v2  ;;  %v3353_v3 = vpack.c.bf16 %v1677_v29, %v1675_v44  ;;  %v4666_v60 = vpop.permute.xlu1 %3661  ;;  %v3642_v59 = vpop.permute.xlu0 %3641  ;;  %v3350_v52 = vpack.c.bf16 %v1678_v45, %v1676_v36  ;;  %v3534_v61 = vunpack.i.h.bf16 %v4525_v8  ;;  %v3629_v48 = vunpack.i.h.bf16 %v4639_v41 }
 0x196   : > { %v3628_v9 = vunpack.i.l.bf16 %v4639_v41  ;;  %v3356_v10 = vpack.c.bf16 %v1830_v46, %v1828_v53  ;;  %vm5997_vm0 = vcmp.lt.s32.totalorder %v4664_v2, 16  ;;  %v3644_v41 = vunpack.i.h.bf16 %v3642_v59 }
 0x197   : > { %3931 = vrot.lane.b32.xlu1 %v4505_v4, %s4227_s16  ;;  %3352 = vmatprep.subr.msk.bf16.mxu0 %vm4610_vm11, %v3350_v52  ;;  %v3643_v14 = vunpack.i.l.bf16 %v3642_v59  ;;  %v3358_v19 = vpack.c.bf16 %v1829_v57, %v1827_v62  ;;  %vm4698_vm3 = vmpackc.low %vm5997_vm0, %vm5997_vm0  ;;  %vm6041_vm0 = vcmask 908288  }
 0x198   : > { %3916 = vrot.lane.b32.xlu0 %v4505_v4, %s4226_s28  ;;  %3355 = vmatpush1.bf16.msk.msra.mxu0 %vm4623_vm12, %v3353_v3  ;;  %v1699_v58 = vsel %vm6049_vm15, %v3533_v7, %v3628_v9  ;;  %v1700_v1 = vsel %vm6049_vm15, %v3628_v9, %v3629_v48 }
 0x199   : > { %v3667_v17 = vpop.permute.xlu1 %3666  ;;  %v3652_v18 = vpop.permute.xlu0 %3651  ;;  %3357 = vmatprep.subr.bf16.mxu0 %v3356_v10  ;;  %v1724_v48 = vsel %vm6048_vm1, %v3643_v14, %v3644_v41 }
 0x19a   : > { %v3669_v8 = vunpack.i.h.bf16 %v3667_v17  ;;  %v3668_v29 = vunpack.i.l.bf16 %v3667_v17  ;;  %v3654_v36 = vunpack.i.h.bf16 %v3652_v18  ;;  %v3653_v44 = vunpack.i.l.bf16 %v3652_v18 }
 0x19b   : > { %3941 = vrot.lane.b32.xlu1 %v4378_v39, %s4228_s17 }
 0x19c   : > { %v1726_v45 = vsel %vm6048_vm1, %v3668_v29, %v3669_v8  ;;  %v1701_v59 = vsel %vm6049_vm15, %v3534_v61, %v3653_v44  ;;  %v1702_v46 = vsel %vm6049_vm15, %v3653_v44, %v3654_v36  ;;  %3926 = vrot.lane.b32.xlu0 %v4404_v51, %s4227_s16  ;;  %3359 = vmatpush1.bf16.msra.mxu0 %v3358_v19  ;;  %v3664_v8 = vunpack.i.h.bf16 %v4666_v60  ;;  %v2033_v61 = vld [vmem:[%s5993_s7 + $0x18] sm:$0xff] }
 0x19d   : > { %v3363_v3 = vpack.c.bf16 %v1701_v59, %v1699_v58  ;;  %v3672_v52 = vpop.permute.xlu1 %3671  ;;  %v3657_v39 = vpop.permute.xlu0 %3656  ;;  %v3360_v53 = vpack.c.bf16 %v1702_v46, %v1700_v1  ;;  %v3366_v7 = vpack.c.bf16 %v1726_v45, %v1724_v48  ;;  %v3663_v36 = vunpack.i.l.bf16 %v4666_v60 }
 0x19e   : > { %v3659_v9 = vunpack.i.h.bf16 %v3657_v39  ;;  %v3658_v10 = vunpack.i.l.bf16 %v3657_v39  ;;  %v3673_v44 = vunpack.i.l.bf16 %v3672_v52 }
 0x19f   : > { %3951 = vrot.lane.b32.xlu1 %v4518_v6, %s4227_s16  ;;  %3362 = vmatprep.subr.msk.bf16.mxu0 %vm4698_vm3, %v3360_v53 }
 0x1a0   : > { %v1725_v62 = vsel %vm6048_vm1, %v3659_v9, %v3668_v29  ;;  %v1723_v17 = vsel %vm6048_vm1, %v3658_v10, %v3643_v14  ;;  %3936 = vrot.lane.b32.xlu0 %v4404_v51, %s4228_s17  ;;  %3365 = vmatpush1.bf16.msk.msra.mxu0 %vm4705_vm4, %v3363_v3  ;;  %v3674_v14 = vunpack.i.h.bf16 %v3672_v52  ;;  %v1752_v3 = vsel %vm6045_vm5, %v3663_v36, %v3664_v8 }
 0x1a1   : > { %v3369_v41 = vpack.c.bf16 %v1725_v62, %v1723_v17  ;;  %v3692_v18 = vpop.permute.xlu1 %3691  ;;  %v3677_v19 = vpop.permute.xlu0 %3676  ;;  %3368 = vmatprep.subr.msk.bf16.mxu0 %vm4610_vm11, %v3366_v7  ;;  %v1751_v39 = vsel %vm6045_vm5, %v3673_v44, %v3663_v36 }
 0x1a2   : > { %v3679_v29 = vunpack.i.h.bf16 %v3677_v19  ;;  %v3678_v58 = vunpack.i.l.bf16 %v3677_v19  ;;  %v3694_v17 = vunpack.i.h.bf16 %v3692_v18 }
 0x1a3   : > { %3961 = vrot.lane.b32.xlu1 %v3960_v55, %s4207_s21 }
 0x1a4   : > { %3946 = vrot.lane.b32.xlu0 %v6010_v0, %s4228_s17  ;;  %3371 = vmatpush1.bf16.msk.msra.mxu0 %vm4623_vm12, %v3369_v41  ;;  %v1776_v7 = vsel %vm6044_vm7, %v3678_v58, %v3679_v29  ;;  %v3693_v41 = vunpack.i.l.bf16 %v3692_v18 }
 0x1a5   : > { %v3697_v1 = vpop.permute.xlu1 %3696  ;;  %v3682_v45 = vpop.permute.xlu0 %3681  ;;  %3373 = vmatprep.subr.bf16.mxu0 %v3372_v56 }
 0x1a6   : > { %v3699_v60 = vunpack.i.h.bf16 %v3697_v1  ;;  %v3698_v59 = vunpack.i.l.bf16 %v3697_v1  ;;  %v3684_v46 = vunpack.i.h.bf16 %v3682_v45  ;;  %v3683_v55 = vunpack.i.l.bf16 %v3682_v45 }
 0x1a7   : > { %3971 = vrot.lane.b32.xlu1 %v4404_v51, %s4216_s14  ;;  %v1872_v45 = vsel %vm6043_vm14, %v3693_v41, %v3694_v17 }
 0x1a8   : > { %v1778_v52 = vsel %vm6044_vm7, %v3698_v59, %v3699_v60  ;;  %v1753_v53 = vsel %vm6045_vm5, %v3674_v14, %v3683_v55  ;;  %v1754_v48 = vsel %vm6045_vm5, %v3683_v55, %v3684_v46  ;;  %3956 = vrot.lane.b32.xlu0 %v4364_v30, %s4207_s21  ;;  %3375 = vmatpush1.bf16.msra.mxu0 %v6070_v42  ;;  %vm766_vm5 = vcmask 146432  }
 0x1a9   : > { %v3379_v49 = vpack.c.bf16 %v1753_v53, %v1751_v39  ;;  %v3702_v56 = vpop.permute.xlu1 %3701  ;;  %v3687_v9 = vpop.permute.xlu0 %3686  ;;  %v3376_v10 = vpack.c.bf16 %v1754_v48, %v1752_v3  ;;  %v3382_v30 = vpack.c.bf16 %v1778_v52, %v1776_v7 }
 0x1aa   : > { %v3689_v51 = vunpack.i.h.bf16 %v3687_v9  ;;  %v3688_v62 = vunpack.i.l.bf16 %v3687_v9  ;;  %v3703_v19 = vunpack.i.l.bf16 %v3702_v56  ;;  %v3704_v44 = vunpack.i.h.bf16 %v3702_v56 }
 0x1ab   : > { %3981 = vrot.lane.b32.xlu1 %v4518_v6, %s4216_s14  ;;  %3378 = vmatprep.subr.msk.bf16.mxu0 %vm4698_vm3, %v3376_v10 }
 0x1ac   : > { %v1777_v40 = vsel %vm6044_vm7, %v3689_v51, %v3698_v59  ;;  %v1775_v47 = vsel %vm6044_vm7, %v3688_v62, %v3678_v58  ;;  %3966 = vrot.lane.b32.xlu0 %v4518_v6, %s4207_s21  ;;  %3381 = vmatpush1.bf16.msk.msra.mxu0 %vm4705_vm4, %v3379_v49  ;;  %v1871_v1 = vsel %vm6043_vm14, %v3703_v19, %v3693_v41 }
 0x1ad   : > { %v3385_v18 = vpack.c.bf16 %v1777_v40, %v1775_v47  ;;  %v3717_v8 = vpop.permute.xlu1 %3716  ;;  %v3707_v36 = vpop.permute.xlu0 %3706  ;;  %3384 = vmatprep.subr.msk.bf16.mxu0 %vm4610_vm11, %v3382_v30  ;;  %v1638_v30 = vld [vmem:[%s5991_s5] sm:$0xff]  ;;  %v1641_v40 = vld [vmem:[%s5991_s5 + $0x18] sm:$0xff] }
 0x1ae   : > { %v3709_v14 = vunpack.i.h.bf16 %v3707_v36  ;;  %v3708_v29 = vunpack.i.l.bf16 %v3707_v36  ;;  %v3719_v58 = vunpack.i.h.bf16 %v3717_v8  ;;  %v3718_v60 = vunpack.i.l.bf16 %v3717_v8  ;;  %v1640_v8 = vld [vmem:[%s5991_s5 + $0x10] sm:$0xff]  ;;  %v1643_v36 = vld [vmem:[%s5991_s5 + $0x28] sm:$0xff] }
 0x1af   : > { %2075 = vrot.lane.b32.xlu1 %v6010_v0, %s4206_s20 }
 0x1b0   : > { %v1873_v59 = vsel %vm6043_vm14, %v3704_v44, %v3708_v29  ;;  %3976 = vrot.lane.b32.xlu0 %v4505_v4, %s4216_s14  ;;  %3387 = vmatpush1.bf16.msk.msra.mxu0 %vm4623_vm12, %v3385_v18  ;;  %v1874_v46 = vsel %vm6043_vm14, %v3708_v29, %v3709_v14  ;;  %v1802_v42 = vsel %vm6041_vm0, %v3718_v60, %v3719_v58  ;;  %v1642_v29 = vld [vmem:[%s5991_s5 + $0x20] sm:$0xff] }
 0x1b1   : > { %v4770_v55 = vpop.permute.xlu1 %3726  ;;  %v3712_v3 = vpop.permute.xlu0 %3711  ;;  %v3388_v39 = vpack.c.bf16 %v1874_v46, %v1872_v45  ;;  %v3390_v52 = vpack.c.bf16 %v1873_v59, %v1871_v1 }
 0x1b2   : > { %v3714_v53 = vunpack.i.h.bf16 %v3712_v3  ;;  %v3713_v48 = vunpack.i.l.bf16 %v3712_v3 }
 0x1b3   : > { %3389 = vmatprep.subr.bf16.mxu0 %v3388_v39  ;;  %2315 = vrot.lane.b32.xlu1 %v6010_v0, %s4207_s21 }
 0x1b4   : > { %v1800_v4 = vsel %vm6041_vm0, %v3713_v48, %v3714_v53  ;;  %3391 = vmatpush1.bf16.msra.mxu0 %v3390_v52  ;;  %3986 = vrot.lane.b32.xlu0 %v6010_v0, %s4206_s20 }
 0x1b5   : > { %v4776_v49 = vpop.permute.xlu1 %3736  ;;  %v3722_v56 = vpop.permute.xlu0 %3721  ;;  %v3392_v9 = vpack.c.bf16 %v1802_v42, %v1800_v4 }
 0x1b6   : > { %v3724_v10 = vunpack.i.h.bf16 %v3722_v56  ;;  %v3723_v7 = vunpack.i.l.bf16 %v3722_v56 }
 0x1b7   : > { %3394 = vmatprep.subr.msk.bf16.mxu0 %vm4698_vm3, %v3392_v9  ;;  %2111 = vrot.lane.b32.xlu1 %v6010_v0, %s4208_s22  ;;  %v565_v9 = vld [vmem:[%s5989_s3 + $0x8] sm:$0xff] }
 0x1b8   : > { %v1801_v51 = vsel %vm6041_vm0, %v3724_v10, %v3718_v60  ;;  %v1799_v62 = vsel %vm6041_vm0, %v3723_v7, %v3713_v48  ;;  %1530 = vmatprep.mubr.f32.mxu1 %v565_v9  ;;  %3991 = vrot.lane.b32.xlu0 %v6098_v50, %s4208_s22  ;;  %vm741_vm0 = vcmask 244736  }
 0x1b9   : > { %v3395_v17 = vpack.c.bf16 %v1801_v51, %v1799_v62  ;;  %v4784_v41 = vpop.permute.xlu1 %3746  ;;  %v4786_v19 = vpop.permute.xlu0 %3731 }
 0x1bb   : > { %3397 = vmatpush1.bf16.msk.msra.mxu0 %vm4705_vm4, %v3395_v17  ;;  %2147 = vrot.lane.b32.xlu1 %v6010_v0, %s4215_s13 }
 0x1bd   : > { %v4798_v47 = vpop.permute.xlu1 %3756  ;;  %v4800_v18 = vpop.permute.xlu0 %3741 }
 0x1be   : > { %2012 = vmatmul.mubr.f32.vlgmr.msra.gmra.mrb[18].mxu0 %v1638_v30 }
 0x1bf   : > { %3062 = vmatprep.mubr.msk.f32.mxu0 %vm6050_vm2, %v1641_v40 }
 0x1c1   : > { %v4809_v44 = vpop.permute.xlu1 %3766  ;;  %v4811_v14 = vpop.permute.xlu0 %3751 }
 0x1c2   : > { %2018 = vmatmul.mubr.f32.gmra.mrb[20].mxu0 %v1640_v8 }
 0x1c3   : > { %3063 = vmatprep.mubr.msk.f32.mxu0 %vm6050_vm2, %v1643_v36 }
 0x1c5   : > { %v4817_v1 = vpop.permute.xlu1 %3776  ;;  %v4819_v45 = vpop.permute.xlu0 %3761 }
 0x1c6   : > { %2024 = vmatmul.mubr.f32.gmra.mrb[22].mxu0 %v1642_v29 }
 0x1c9   : > { %v4821_v58 = vpop.permute.xlu1 %3786  ;;  %v4823_v60 = vpop.permute.xlu0 %3771 }
 0x1cd   : > { %v4825_v59 = vpop.permute.xlu1 %3796  ;;  %v4827_v46 = vpop.permute.xlu0 %3781 }
 0x1d1   : > { %v4829_v3 = vpop.permute.xlu1 %3806  ;;  %v4831_v39 = vpop.permute.xlu0 %3791 }
 0x1d5   : > { %v4833_v52 = vpop.permute.xlu1 %3816  ;;  %v4835_v53 = vpop.permute.xlu0 %3801 }
 0x1d9   : > { %v4837_v48 = vpop.permute.xlu1 %3826  ;;  %v4839_v42 = vpop.permute.xlu0 %3811 }
 0x1da   : > { %6071 = vst [vmem:[#allocation10_spill] sm:$0xff] %v4837_v48 }
 0x1dd   : > { %v4841_v4 = vpop.permute.xlu1 %3836  ;;  %v4843_v56 = vpop.permute.xlu0 %3821 }
 0x1de   : > { %6072 = vst [vmem:[#allocation11_spill] sm:$0xff] %v4841_v4  ;;  %v3549_v4 = vunpack.i.h.bf16 %v4536_v13 }
 0x1e1   : > { %v4848_v10 = vpop.permute.xlu0 %3831  ;;  %v4850_v7 = vpop.permute.xlu1 %3846 }
 0x1e2   : > { %6073 = vst [vmem:[#allocation12_spill] sm:$0xff] %v4850_v7  ;;  %v3609_v7 = vunpack.i.h.bf16 %v4616_v25 }
 0x1e5   : > { %v4852_v51 = vpop.permute.xlu0 %3841  ;;  %v4854_v62 = vpop.permute.xlu1 %3856 }
 0x1e6   : > { %6074 = vst [vmem:[#allocation13_spill] sm:$0xff] %v4852_v51  ;;  %6075 = vst [vmem:[#allocation14_spill] sm:$0xff] %v4854_v62 }
 0x1e9   : > { %v4856_v17 = vpop.permute.xlu0 %3851  ;;  %v4858_v30 = vpop.permute.xlu1 %3866 }
 0x1ea   : > { %6076 = vst [vmem:[#allocation15_spill] sm:$0xff] %v4856_v17  ;;  %6077 = vst [vmem:[#allocation16_spill] sm:$0xff] %v4858_v30  ;;  %v4886_v30 = vpop.f32.mrb[14].mxu0 }
 0x1eb   : > { %6090 = vst [vmem:[#allocation29_spill] sm:$0xff] %v4886_v30 }
 0x1ed   : > { %v4860_v40 = vpop.permute.xlu0 %3861  ;;  %v4862_v8 = vpop.permute.xlu1 %3876 }
 0x1ee   : > { %6078 = vst [vmem:[#allocation17_spill] sm:$0xff] %v4860_v40  ;;  %6079 = vst [vmem:[#allocation18_spill] sm:$0xff] %v4862_v8 }
 0x1f1   : > { %v4864_v36 = vpop.permute.xlu0 %3871  ;;  %v4868_v29 = vpop.permute.xlu1 %3886 }
 0x1f2   : > { %6080 = vst [vmem:[#allocation19_spill] sm:$0xff] %v4864_v36  ;;  %6081 = vst [vmem:[#allocation20_spill] sm:$0xff] %v4868_v29  ;;  %v4890_v29 = vpop.f32.mrb[15].mxu0 }
 0x1f3   : > { %6092 = vst [vmem:[#allocation31_spill] sm:$0xff] %v4890_v29 }
 0x1f5   : > { %v4872_v27 = vpop.permute.xlu1 %3896 }
 0x1f6   : > { %v4870_v9 = vpop.permute.xlu0 %3881  ;;  %6083 = vst [vmem:[#allocation22_spill] sm:$0xff] %v4872_v27  ;;  %v4894_v27 = vpop.f32.mrb[16].mxu0 }
 0x1f7   : > { %6082 = vst [vmem:[#allocation21_spill] sm:$0xff] %v4870_v9  ;;  %6094 = vst [vmem:[#allocation33_spill] sm:$0xff] %v4894_v27 }
 0x1f9   : > { %v4876_v43 = vpop.permute.xlu1 %3906 }
 0x1fa   : > { %v4874_v2 = vpop.permute.xlu0 %3891  ;;  %6085 = vst [vmem:[#allocation24_spill] sm:$0xff] %v4876_v43  ;;  %v4898_v43 = vpop.f32.mrb[17].mxu0 }
 0x1fb   : > { %6084 = vst [vmem:[#allocation23_spill] sm:$0xff] %v4874_v2  ;;  %6096 = vst [vmem:[#allocation35_spill] sm:$0xff] %v4898_v43  ;;  %v3604_v43 = vunpack.i.h.bf16 %v4588_v63 }
 0x1fe   : > { %v4880_v6 = vpop.permute.xlu0 %3901 }
 0x1ff   : > { %6087 = vst [vmem:[#allocation26_spill] sm:$0xff] %v4880_v6 }
 0x202   : > { %v4892_v9 = vpop.permute.xlu0 %3911 }
 0x203   : > { %6093 = vst [vmem:[#allocation32_spill] sm:$0xff] %v4892_v9 }
 0x20a   : > { %v4884_v8 = vpop.permute.xlu1 %1925 }
 0x20b   : > { %6089 = vst [vmem:[#allocation28_spill] sm:$0xff] %v4884_v8 }
 0x20e   : > { %v4888_v0 = vpop.permute.xlu1 %1935 }
 0x20f   : > { %6091 = vst [vmem:[#allocation30_spill] sm:$0xff] %v4888_v0 }
 0x212   : > { %v4896_v2 = vpop.permute.xlu1 %3921 }
 0x213   : > { %6095 = vst [vmem:[#allocation34_spill] sm:$0xff] %v4896_v2  ;;  %v4900_v34 = vpop.permute.xlu0 %1930 }
 0x214   : > { %6097 = vst [vmem:[#allocation36_spill] sm:$0xff] %v4900_v34  ;;  %v3603_v34 = vunpack.i.l.bf16 %v4588_v63  ;;  %v3608_v63 = vunpack.i.l.bf16 %v4616_v25 }
 0x216   : > { %v4904_v8 = vpop.permute.xlu1 %3931 }
 0x217   : > { %6099 = vst [vmem:[#allocation37_spill] sm:$0xff] %v4904_v8  ;;  %v4906_v30 = vpop.permute.xlu0 %3916  ;;  %v3578_v8 = vunpack.i.l.bf16 %v4558_v23 }
 0x218   : > { %6100 = vst [vmem:[#allocation38_spill] sm:$0xff] %v4906_v30 }
 0x21a   : > { %v3942_v0 = vpop.permute.xlu1 %3941 }
 0x21b   : > { %v4908_v6 = vpop.permute.xlu0 %3926  ;;  %v3944_v29 = vunpack.i.h.bf16 %v3942_v0  ;;  %v3943_v9 = vunpack.i.l.bf16 %v3942_v0  ;;  %v722_v0 = vadd.s32 2, %v4549_v20  ;;  %v710_v20 = vsel %vm708_vm8, %v3549_v4, %v3578_v8 }
 0x21c   : > { %6101 = vst [vmem:[#allocation39_spill] sm:$0xff] %v4908_v6  ;;  %v3584_v8 = vunpack.i.h.bf16 %v4556_v22 }
 0x21d   : > { %v1182_v50 = vsel %vm1178_vm10, %v3943_v9, %v3944_v29  ;;  %v3579_v29 = vunpack.i.h.bf16 %v4558_v23  ;;  %vm726_vm14 = vcmp.lt.s32.totalorder %v722_v0, 16  ;;  %v745_v23 = vsel %vm741_vm0, %v3608_v63, %v3609_v7 }
 0x21e   : > { %v3588_v7 = vunpack.i.l.bf16 %v4565_v31 }
 0x21f   : > { %v3937_v36 = vpop.permute.xlu0 %3936  ;;  %v711_v48 = vsel %vm708_vm8, %v3579_v29, %v3603_v34  ;;  %v3558_v29 = vunpack.i.l.bf16 %v4543_v16 }
 0x220   : > { %v3939_v27 = vunpack.i.h.bf16 %v3937_v36  ;;  %v3938_v2 = vunpack.i.l.bf16 %v3937_v36  ;;  %v712_v36 = vsel %vm708_vm8, %v3603_v34, %v3604_v43  ;;  %v721_v43 = vadd.s32 2, %v4554_v21  ;;  %v4937_v34 = vpop.permute.xlu1 %3951 }
 0x222   : > { %v1180_v62 = vsel %vm1178_vm10, %v3938_v2, %v3939_v27  ;;  %v3548_v27 = vunpack.i.l.bf16 %v4536_v13  ;;  %v3554_v13 = vunpack.i.h.bf16 %v4534_v12  ;;  %vm725_vm7 = vcmp.lt.s32.totalorder %v721_v43, 16 }
 0x223   : > { %v3947_v30 = vpop.permute.xlu0 %3946  ;;  %v3222_v17 = vpack.c.bf16 %v1182_v50, %v1180_v62 }
 0x224   : > { %v3949_v6 = vunpack.i.h.bf16 %v3947_v30  ;;  %v3948_v40 = vunpack.i.l.bf16 %v3947_v30  ;;  %v3583_v30 = vunpack.i.l.bf16 %v4556_v22  ;;  %v709_v21 = vsel %vm708_vm8, %v3548_v27, %v3549_v4  ;;  %vm4959_vm8 = vmpackc.low %vm725_vm7, %vm725_vm7 }
 0x225   : > { %3223 = vmatprep.subr.bf16.mxu1 %v3222_v17  ;;  %v3226_v17 = vpack.c.bf16 %v712_v36, %v710_v20  ;;  %v3229_v0 = vpack.c.bf16 %v711_v48, %v709_v21  ;;  %v3559_v22 = vunpack.i.h.bf16 %v4543_v16  ;;  %v3728_v27 = vunpack.i.l.bf16 %v4770_v55  ;;  %v566_v36 = vld [vmem:[%s5989_s3 + $0x10] sm:$0xff] }
 0x226   : > { %v1179_v50 = vsel %vm1178_vm10, %v3948_v40, %v3938_v2  ;;  %v1181_v62 = vsel %vm1178_vm10, %v3949_v6, %v3943_v9  ;;  %v3614_v6 = vunpack.i.h.bf16 %v4618_v26  ;;  %v3613_v2 = vunpack.i.l.bf16 %v4618_v26  ;;  %vm4943_vm10 = vmpackc.low %vm726_vm14, %vm726_vm14 }
 0x227   : > { %v3224_v51 = vpack.c.bf16 %v1181_v62, %v1179_v50  ;;  %v4928_v25 = vpop.permute.xlu0 %3956  ;;  %v3553_v40 = vunpack.i.l.bf16 %v4534_v12  ;;  %v743_v9 = vsel %vm741_vm0, %v3554_v13, %v3583_v30  ;;  %v744_v12 = vsel %vm741_vm0, %v3584_v8, %v3608_v63 }
 0x228   : > { %v3232_v26 = vpack.c.bf16 %v745_v23, %v743_v9  ;;  %v770_v4 = vsel %vm766_vm5, %v3613_v2, %v3614_v6  ;;  %v3589_v50 = vunpack.i.h.bf16 %v4565_v31  ;;  %v768_v30 = vsel %vm766_vm5, %v3559_v22, %v3588_v7 }
 0x229   : > { %3225 = vmatpush1.bf16.msra.mxu1 %v3224_v51  ;;  %v3729_v51 = vunpack.i.h.bf16 %v4770_v55  ;;  %v742_v48 = vsel %vm741_vm0, %v3553_v40, %v3554_v13  ;;  %v3618_v55 = vunpack.i.l.bf16 %v4637_v38  ;;  %v3238_v13 = vpack.c.bf16 %v770_v4, %v768_v30 }
 0x22a   : > { %3228 = vmatprep.subr.msk.bf16.mxu1 %vm4698_vm3, %v3226_v17  ;;  %v3235_v20 = vpack.c.bf16 %v744_v12, %v742_v48  ;;  %v769_v43 = vsel %vm766_vm5, %v3589_v50, %v3613_v2  ;;  %v3962_v17 = vpop.permute.xlu1 %3961  ;;  %v3564_v16 = vunpack.i.h.bf16 %v4541_v15  ;;  %v3524_v6 = vunpack.i.h.bf16 %v4511_v5 }
 0x22b   : > { %v3967_v62 = vpop.permute.xlu0 %3966  ;;  %v795_v31 = vsel %vm6046_vm13, %v3728_v27, %v3729_v51  ;;  %v3563_v40 = vunpack.i.l.bf16 %v4541_v15  ;;  %v767_v21 = vsel %vm766_vm5, %v3558_v29, %v3559_v22  ;;  %v3964_v2 = vunpack.i.h.bf16 %v3962_v17 }
 0x22c   : > { %v3968_v23 = vunpack.i.l.bf16 %v3967_v62  ;;  %v793_v38 = vsel %vm6046_vm13, %v3564_v16, %v3618_v55  ;;  %v3959_v8 = vunpack.i.h.bf16 %v4928_v25  ;;  %v3241_v9 = vpack.c.bf16 %v769_v43, %v767_v21 }
 0x22d   : > { %3231 = vmatpush1.bf16.msk.msra.mxu1 %vm4705_vm4, %v3229_v0  ;;  %v794_v7 = vsel %vm6046_vm13, %v3524_v6, %v3728_v27  ;;  %v3969_v0 = vunpack.i.h.bf16 %v3967_v62  ;;  %v3244_v12 = vpack.c.bf16 %v795_v31, %v793_v38  ;;  %v3743_v5 = vunpack.i.l.bf16 %v4800_v18 }
 0x22e   : > { %3234 = vmatprep.subr.msk.bf16.mxu1 %vm4943_vm10, %v3232_v26  ;;  %v3744_v26 = vunpack.i.h.bf16 %v4800_v18  ;;  %v3963_v15 = vunpack.i.l.bf16 %v3962_v17  ;;  %v1223_v22 = vsel %vm6050_vm2, %v3964_v2, %v3968_v23  ;;  %v792_v4 = vsel %vm6046_vm13, %v3563_v40, %v3564_v16 }
 0x22f   : > { %v3734_v51 = vunpack.i.h.bf16 %v4786_v19  ;;  %v3958_v48 = vunpack.i.l.bf16 %v4928_v25  ;;  %v3247_v27 = vpack.c.bf16 %v794_v7, %v792_v4  ;;  %v3738_v18 = vunpack.i.l.bf16 %v4776_v49 }
 0x230   : > { %v1221_v29 = vsel %vm6050_vm2, %v3959_v8, %v3963_v15  ;;  %v1222_v62 = vsel %vm6050_vm2, %v3969_v0, %v3964_v2  ;;  %v3739_v30 = vunpack.i.h.bf16 %v4776_v49  ;;  %v820_v55 = vsel %vm6049_vm15, %v3743_v5, %v3744_v26 }
 0x231   : > { %3237 = vmatpush1.bf16.msk.msra.mxu1 %vm4959_vm8, %v3235_v20  ;;  %v3250_v50 = vpack.c.bf16 %v1223_v22, %v1221_v29  ;;  %v3753_v20 = vunpack.i.l.bf16 %v4811_v14  ;;  %v3749_v25 = vunpack.i.h.bf16 %v4784_v41  ;;  %v818_v43 = vsel %vm6049_vm15, %v3734_v51, %v3738_v18 }
 0x232   : > { %3240 = vmatprep.subr.msk.bf16.mxu1 %vm4583_vm6, %v3238_v13  ;;  %v3733_v17 = vunpack.i.l.bf16 %v4786_v19  ;;  %v1220_v13 = vsel %vm6050_vm2, %v3958_v48, %v3959_v8  ;;  %v3759_v16 = vunpack.i.h.bf16 %v4798_v47  ;;  %v3758_v49 = vunpack.i.l.bf16 %v4798_v47 }
 0x233   : > { %v3754_v31 = vunpack.i.h.bf16 %v4811_v14  ;;  %v3252_v23 = vpack.c.bf16 %v1222_v62, %v1220_v13  ;;  %vm841_vm14 = vcmask 113664   ;;  %v819_v6 = vsel %vm6049_vm15, %v3739_v30, %v3743_v5 }
 0x234   : > { %v3254_v40 = vpack.c.bf16 %v820_v55, %v818_v43  ;;  %v3748_v21 = vunpack.i.l.bf16 %v4784_v41  ;;  %v843_v38 = vsel %vm841_vm14, %v3749_v25, %v3753_v20  ;;  %v3774_v19 = vunpack.i.h.bf16 %v4823_v60 }
 0x235   : > { %3243 = vmatpush1.bf16.msk.msra.mxu1 %vm4593_vm9, %v3241_v9  ;;  %v3773_v2 = vunpack.i.l.bf16 %v4823_v60  ;;  %v817_v8 = vsel %vm6049_vm15, %v3733_v17, %v3734_v51  ;;  %v845_v47 = vsel %vm841_vm14, %v3758_v49, %v3759_v16  ;;  %v844_v14 = vsel %vm841_vm14, %v3754_v31, %v3758_v49 }
 0x236   : > { %3246 = vmatprep.subr.msk.bf16.mxu1 %vm4610_vm11, %v3244_v12  ;;  %v3764_v9 = vunpack.i.h.bf16 %v4819_v45  ;;  %v3257_v7 = vpack.c.bf16 %v819_v6, %v817_v8  ;;  %vm866_vm0 = vcmask 15360   ;;  %v3260_v41 = vpack.c.bf16 %v845_v47, %v843_v38 }
 0x237   : > { %v842_v0 = vsel %vm841_vm14, %v3748_v21, %v3749_v25  ;;  %v3768_v12 = vunpack.i.l.bf16 %v4809_v44  ;;  %v870_v60 = vsel %vm866_vm0, %v3773_v2, %v3774_v19  ;;  %v3783_v26 = vunpack.i.l.bf16 %v4827_v46 }
 0x238   : > { %v3769_v5 = vunpack.i.h.bf16 %v4809_v44  ;;  %v3763_v15 = vunpack.i.l.bf16 %v4819_v45  ;;  %v3263_v22 = vpack.c.bf16 %v844_v14, %v842_v0  ;;  %v3779_v4 = vunpack.i.h.bf16 %v4817_v1  ;;  %v5071_v14 = vpop.permute.xlu1 %3971  ;;  %v6112_v0 = vld [vmem:[#allocation10_spill] sm:$0xff] }
 0x239   : > { %3249 = vmatpush1.bf16.msk.msra.mxu1 %vm4623_vm12, %v3247_v27  ;;  %v868_v51 = vsel %vm866_vm0, %v3764_v9, %v3768_v12  ;;  %v3789_v48 = vunpack.i.h.bf16 %v4821_v58  ;;  %v3788_v27 = vunpack.i.l.bf16 %v4821_v58  ;;  %v3784_v18 = vunpack.i.h.bf16 %v4827_v46 }
 0x23a   : > { %3251 = vmatprep.subr.bf16.mxu1 %v3250_v50  ;;  %v869_v29 = vsel %vm866_vm0, %v3769_v5, %v3773_v2  ;;  %v3266_v50 = vpack.c.bf16 %v870_v60, %v868_v51  ;;  %v893_v44 = vsel %vm6048_vm1, %v3779_v4, %v3783_v26  ;;  %v3778_v45 = vunpack.i.l.bf16 %v4817_v1  ;;  %v6113_v26 = vld [vmem:[#allocation13_spill] sm:$0xff] }
 0x23b   : > { %v867_v62 = vsel %vm866_vm0, %v3763_v15, %v3764_v9  ;;  %v895_v30 = vsel %vm6048_vm1, %v3788_v27, %v3789_v48  ;;  %v894_v55 = vsel %vm6048_vm1, %v3784_v18, %v3788_v27  ;;  %v3804_v46 = vunpack.i.h.bf16 %v4835_v53  ;;  %v3977_v27 = vpop.permute.xlu0 %3976 }
 0x23c   : > { %v3269_v58 = vpack.c.bf16 %v869_v29, %v867_v62  ;;  %v3272_v20 = vpack.c.bf16 %v895_v30, %v893_v44  ;;  %v3803_v25 = vunpack.i.l.bf16 %v4835_v53  ;;  %v892_v1 = vsel %vm6048_vm1, %v3778_v45, %v3779_v4  ;;  %v6114_v4 = vld [vmem:[#allocation12_spill] sm:$0xff]  ;;  %v6115_v29 = vld [vmem:[#allocation11_spill] sm:$0xff]  ;;  %v3982_v30 = vpop.permute.xlu1 %3981 }
 0x23d   : > { %3253 = vmatpush1.bf16.msra.mxu1 %v3252_v23  ;;  %v3794_v43 = vunpack.i.h.bf16 %v4831_v39  ;;  %v3275_v17 = vpack.c.bf16 %v894_v55, %v892_v1  ;;  %v3798_v13 = vunpack.i.l.bf16 %v4825_v59  ;;  %vm6106_vm5 = vcmask 1039360  }
 0x23e   : > { %3256 = vmatprep.subr.msk.bf16.mxu1 %vm4698_vm3, %v3254_v40  ;;  %v924_v16 = vsel %vm6106_vm5, %v3803_v25, %v3804_v46  ;;  %v3813_v49 = vunpack.i.l.bf16 %v4839_v42  ;;  %v3799_v53 = vunpack.i.h.bf16 %v4825_v59  ;;  %v3793_v31 = vunpack.i.l.bf16 %v4831_v39  ;;  %vm6108_vm7 = vmmov %vm6106_vm5 }
 0x23f   : > { %v6107_v23 = vpack.c.bf16 %v4372_v35, %v4374_v37  ;;  %v3809_v6 = vunpack.i.h.bf16 %v4829_v3  ;;  %v922_v40 = vsel %vm6108_vm7, %v3794_v43, %v3798_v13  ;;  %v3819_v21 = vunpack.i.h.bf16 %v4833_v52  ;;  %vm6109_vm0 = vmmov %vm6106_vm5 }
 0x240   : > { %v3818_v38 = vunpack.i.l.bf16 %v4833_v52  ;;  %vm945_vm14 = vcmask 1031168   ;;  %v923_v19 = vsel %vm6109_vm0, %v3799_v53, %v3803_v25  ;;  %v3814_v2 = vunpack.i.h.bf16 %v4839_v42  ;;  %vm6111_vm5 = vmmov %vm6109_vm0 }
 0x241   : > { %3259 = vmatpush1.bf16.msk.msra.mxu1 %vm4705_vm4, %v3257_v7  ;;  %v3282_v59 = vpack.c.bf16 %v924_v16, %v922_v40  ;;  %v3808_v39 = vunpack.i.l.bf16 %v4829_v3  ;;  %v947_v8 = vsel %vm945_vm14, %v3809_v6, %v3813_v49  ;;  %v3834_v35 = vunpack.i.h.bf16 %v4848_v10  ;;  %v564_v40 = vld [vmem:[%s5989_s3] sm:$0xff] }
 0x242   : > { %3262 = vmatprep.subr.msk.bf16.mxu1 %vm4943_vm10, %v3260_v41  ;;  %v3833_v37 = vunpack.i.l.bf16 %v4848_v10  ;;  %v6110_v47 = vpack.c.bf16 %v4366_v33, %v4360_v28  ;;  %v921_v52 = vsel %vm6111_vm5, %v3793_v31, %v3794_v43  ;;  %v949_v42 = vsel %vm945_vm14, %v3818_v38, %v3819_v21  ;;  %v6119_v31 = vld [vmem:[#allocation17_spill] sm:$0xff] }
 0x243   : > { %v3824_v3 = vunpack.i.h.bf16 %v4843_v56  ;;  %v3285_v9 = vpack.c.bf16 %v923_v19, %v921_v52  ;;  %v948_v7 = vsel %vm945_vm14, %v3814_v2, %v3818_v38  ;;  %vm970_vm7 = vcmask 932864   ;;  %v6122_v19 = vld [vmem:[#allocation15_spill] sm:$0xff] }
 0x244   : > { %v3288_v10 = vpack.c.bf16 %v949_v42, %v947_v8  ;;  %v946_v41 = vsel %vm945_vm14, %v3808_v39, %v3809_v6  ;;  %v3828_v12 = vunpack.i.l.bf16 %v6112_v0  ;;  %v974_v60 = vsel %vm970_vm7, %v3833_v37, %v3834_v35  ;;  %v6124_v35 = vld [vmem:[#allocation14_spill] sm:$0xff] }
 0x245   : > { %3265 = vmatpush1.bf16.msk.msra.mxu1 %vm4959_vm8, %v3263_v22  ;;  %v3843_v5 = vunpack.i.l.bf16 %v6113_v26  ;;  %v3829_v15 = vunpack.i.h.bf16 %v6112_v0  ;;  %v3823_v22 = vunpack.i.l.bf16 %v4843_v56  ;;  %v3849_v51 = vunpack.i.h.bf16 %v6114_v4 }
 0x246   : > { %3268 = vmatprep.subr.msk.bf16.mxu1 %vm4583_vm6, %v3266_v50  ;;  %v3848_v48 = vunpack.i.l.bf16 %v6114_v4  ;;  %v3839_v18 = vunpack.i.h.bf16 %v6115_v29  ;;  %v972_v50 = vsel %vm970_vm7, %v3824_v3, %v3828_v12  ;;  %v3291_v44 = vpack.c.bf16 %v948_v7, %v946_v41 }
 0x247   : > { %v973_v45 = vsel %vm970_vm7, %v3829_v15, %v3833_v37  ;;  %v3844_v62 = vunpack.i.h.bf16 %v6113_v26  ;;  %vm6116_vm14 = vcmask 924672   ;;  %v3978_v55 = vunpack.i.l.bf16 %v3977_v27 }
 0x248   : > { %v997_v56 = vsel %vm6116_vm14, %v3839_v18, %v3843_v5  ;;  %v971_v46 = vsel %vm970_vm7, %v3823_v22, %v3824_v3  ;;  %vm6117_vm0 = vmmov %vm6116_vm14  ;;  %v3974_v1 = vunpack.i.h.bf16 %v5071_v14  ;;  %v3984_v43 = vunpack.i.h.bf16 %v3982_v30 }
 0x249   : > { %3271 = vmatpush1.bf16.msk.msra.mxu1 %vm4593_vm9, %v3269_v58  ;;  %v3294_v58 = vpack.c.bf16 %v974_v60, %v972_v50  ;;  %v999_v25 = vsel %vm6117_vm0, %v3848_v48, %v3849_v51  ;;  %v3297_v13 = vpack.c.bf16 %v973_v45, %v971_v46  ;;  %vm6118_vm5 = vmmov %vm6117_vm0  ;;  %v3979_v49 = vunpack.i.h.bf16 %v3977_v27  ;;  %v6130_v60 = vld [vmem:[#allocation18_spill] sm:$0xff]  ;;  %v6134_v46 = vld [vmem:[#allocation20_spill] sm:$0xff] }
 0x24a   : > { %3274 = vmatprep.subr.msk.bf16.mxu1 %vm4610_vm11, %v3272_v20  ;;  %v3838_v20 = vunpack.i.l.bf16 %v6115_v29  ;;  %v998_v16 = vsel %vm6118_vm5, %v3844_v62, %v3848_v48  ;;  %v3300_v53 = vpack.c.bf16 %v999_v25, %v997_v56  ;;  %v3863_v6 = vunpack.i.l.bf16 %v6119_v31  ;;  %vm6121_vm14 = vmmov %vm6117_vm0  ;;  %v6131_v29 = vld [vmem:[#allocation23_spill] sm:$0xff] }
 0x24b   : > { %vm6120_vm7 = vcmask 916480   ;;  %v3854_v2 = vunpack.i.h.bf16 %v6122_v19  ;;  %v3858_v37 = vunpack.i.l.bf16 %v6124_v35  ;;  %v3859_v42 = vunpack.i.h.bf16 %v6124_v35 }
 0x24c   : > { %v1282_v21 = vsel %vm6120_vm7, %v3974_v1, %v3978_v55  ;;  %v996_v38 = vsel %vm6121_vm14, %v3838_v20, %v3839_v18  ;;  %vm6123_vm0 = vmmov %vm6120_vm7  ;;  %vm6126_vm7 = vcmask 908288   ;;  %v3853_v0 = vunpack.i.l.bf16 %v6122_v19 }
 0x24d   : > { %3277 = vmatpush1.bf16.msk.msra.mxu1 %vm4623_vm12, %v3275_v17  ;;  %v3983_v17 = vunpack.i.l.bf16 %v3982_v30  ;;  %v3303_v39 = vpack.c.bf16 %v998_v16, %v996_v38  ;;  %vm6125_vm5 = vmmov %vm6123_vm0  ;;  %v3879_v26 = vunpack.i.h.bf16 %v6130_v60  ;;  %v3878_v5 = vunpack.i.l.bf16 %v6130_v60 }
 0x24e   : > { %3279 = vmatprep.subr.bf16.mxu1 %v6107_v23  ;;  %v3864_v23 = vunpack.i.h.bf16 %v6119_v31  ;;  %vm6129_vm14 = vmmov %vm6126_vm7  ;;  %v1023_v4 = vsel %vm6126_vm7, %v3859_v42, %v3863_v6  ;;  %v3894_v18 = vunpack.i.h.bf16 %v6131_v29  ;;  %v3893_v50 = vunpack.i.l.bf16 %v6131_v29  ;;  %v6140_v29 = vld [vmem:[#allocation30_spill] sm:$0xff] }
 0x24f   : > { %v1284_v8 = vsel %vm6123_vm0, %v3983_v17, %v3984_v43  ;;  %v1022_v41 = vsel %vm6129_vm14, %v3854_v2, %v3858_v37  ;;  %vm6132_vm14 = vmmov %vm6126_vm7  ;;  %v3888_v25 = vunpack.i.l.bf16 %v6134_v46  ;;  %v6135_v43 = vld [vmem:[#allocation26_spill] sm:$0xff] }
 0x250   : > { %v3306_v52 = vpack.c.bf16 %v1284_v8, %v1282_v21  ;;  %v1024_v3 = vsel %vm6126_vm7, %v3863_v6, %v3864_v23  ;;  %v6137_v6 = vld [vmem:[#allocation24_spill] sm:$0xff]  ;;  %v3904_v19 = vunpack.i.h.bf16 %v6135_v43 }
 0x251   : > { %3281 = vmatpush1.bf16.msra.mxu1 %v6110_v47  ;;  %v1283_v47 = vsel %vm6125_vm5, %v3979_v49, %v3983_v17  ;;  %vm1045_vm5 = vcmask 900096   ;;  %v3310_v51 = vpack.c.bf16 %v1024_v3, %v1022_v41  ;;  %v3903_v17 = vunpack.i.l.bf16 %v6135_v43  ;;  %v568_v43 = vld [vmem:[%s5989_s3 + $0x20] sm:$0xff] }
 0x252   : > { %3284 = vmatprep.subr.msk.bf16.mxu1 %vm4698_vm3, %v3282_v59  ;;  %v3973_v59 = vunpack.i.l.bf16 %v5071_v14  ;;  %v6128_v14 = vld [vmem:[#allocation16_spill] sm:$0xff]  ;;  %v1049_v45 = vsel %vm1045_vm5, %v3878_v5, %v3879_v26  ;;  %v3908_v21 = vunpack.i.l.bf16 %v6137_v6 }
 0x253   : > { %v3868_v48 = vunpack.i.l.bf16 %v6128_v14 }
 0x254   : > { %v1281_v12 = vsel %vm6123_vm0, %v3973_v59, %v3974_v1  ;;  %vm1070_vm0 = vcmask 801792  }
 0x255   : > { %3287 = vmatpush1.bf16.msk.msra.mxu1 %vm4705_vm4, %v3285_v9  ;;  %v6127_v9 = vld [vmem:[#allocation19_spill] sm:$0xff]  ;;  %v3308_v22 = vpack.c.bf16 %v1283_v47, %v1281_v12  ;;  %v1074_v1 = vsel %vm1070_vm0, %v3893_v50, %v3894_v18 }
 0x256   : > { %3290 = vmatprep.subr.msk.bf16.mxu1 %vm4943_vm10, %v3288_v10  ;;  %v3873_v7 = vunpack.i.l.bf16 %v6127_v9  ;;  %v3869_v10 = vunpack.i.h.bf16 %v6128_v14  ;;  %v3874_v15 = vunpack.i.h.bf16 %v6127_v9 }
 0x258   : > { %v1047_v27 = vsel %vm1045_vm5, %v3869_v10, %v3873_v7  ;;  %v1048_v30 = vsel %vm1045_vm5, %v3874_v15, %v3878_v5  ;;  %v1046_v20 = vsel %vm1045_vm5, %v3868_v48, %v3869_v10  ;;  %vm1095_vm5 = vcmask 793600   ;;  %v6138_v7 = vld [vmem:[#allocation28_spill] sm:$0xff] }
 0x259   : > { %3293 = vmatpush1.bf16.msk.msra.mxu1 %vm4959_vm8, %v3291_v44  ;;  %v1021_v44 = vsel %vm6132_vm14, %v3853_v0, %v3854_v2  ;;  %v3316_v55 = vpack.c.bf16 %v1049_v45, %v1047_v27  ;;  %v3319_v16 = vpack.c.bf16 %v1048_v30, %v1046_v20  ;;  %v1098_v47 = vsel %vm1095_vm5, %v3904_v19, %v3908_v21  ;;  %v6139_v0 = vld [vmem:[#allocation36_spill] sm:$0xff]  ;;  %v2076_v19 = vpop.permute.xlu1 %2075 }
 0x25a   : > { %3296 = vmatprep.subr.msk.bf16.mxu1 %vm4583_vm6, %v3294_v58  ;;  %v3313_v62 = vpack.c.bf16 %v1023_v4, %v1021_v44  ;;  %v6133_v58 = vld [vmem:[#allocation21_spill] sm:$0xff]  ;;  %v6141_v45 = vmov 0.0   ;;  %v6142_v20 = vld [vmem:[#allocation4_spill] sm:$0xff] }
 0x25b   : > { %v3884_v56 = vunpack.i.h.bf16 %v6133_v58  ;;  %v3883_v49 = vunpack.i.l.bf16 %v6133_v58 }
 0x25d   : > { %3299 = vmatpush1.bf16.msk.msra.mxu1 %vm4593_vm9, %v3297_v13  ;;  %v3889_v13 = vunpack.i.h.bf16 %v6134_v46  ;;  %v1072_v23 = vsel %vm1070_vm0, %v3884_v56, %v3888_v25  ;;  %v1071_v8 = vsel %vm1070_vm0, %v3883_v49, %v3884_v56  ;;  %v569_v25 = vld [vmem:[%s5989_s3 + $0x28] sm:$0xff]  ;;  %v567_v49 = vld [vmem:[%s5989_s3 + $0x18] sm:$0xff] }
 0x25e   : > { %3302 = vmatprep.subr.msk.bf16.mxu1 %vm4610_vm11, %v3300_v53  ;;  %v6136_v53 = vld [vmem:[#allocation22_spill] sm:$0xff]  ;;  %v3322_v2 = vpack.c.bf16 %v1074_v1, %v1072_v23  ;;  %v6143_v1 = vld [vmem:[#allocation5_spill] sm:$0xff] }
 0x25f   : > { %v3899_v31 = vunpack.i.h.bf16 %v6136_v53  ;;  %v1073_v38 = vsel %vm1070_vm0, %v3889_v13, %v3893_v50  ;;  %v6144_v13 = vpack.i.bf16 %v4366_v33, %v4360_v28  ;;  %v2031_v28 = vld [vmem:[%s5993_s7 + $0x8] sm:$0xff]  ;;  %v2038_v23 = vld [vmem:[%s5994_s8 + $0x10] sm:$0xff] }
 0x260   : > { %1531 = vmatmul.mubr.f32.vlgmr.msra.gmra.mrb[0].mxu1 %v564_v40  ;;  %v3909_v40 = vunpack.i.h.bf16 %v6137_v6  ;;  %v3325_v37 = vpack.c.bf16 %v1073_v38, %v1071_v8  ;;  %v577_v33 = vld [vmem:[%s5990_s4 + $0x8] sm:$0xff]  ;;  %v578_v6 = vld [vmem:[%s5990_s4 + $0x10] sm:$0xff]  ;;  %v5317_v8 = vpop.permute.xlu1 %2315 }
 0x261   : > { %3305 = vmatpush1.bf16.msk.msra.mxu1 %vm4623_vm12, %v3303_v39  ;;  %v1097_v59 = vsel %vm1095_vm5, %v3899_v31, %v3903_v17  ;;  %v3898_v39 = vunpack.i.l.bf16 %v6136_v53  ;;  %1536 = vmatprep.mubr.f32.mxu1 %v569_v25  ;;  %v573_v17 = vld [vmem:[%s5989_s3 + $0x48] sm:$0xff]  ;;  %v2036_v53 = vld [vmem:[%s5994_s8] sm:$0xff] }
 0x262   : > { %3307 = vmatprep.subr.bf16.mxu1 %v3306_v52  ;;  %v1099_v35 = vsel %vm1095_vm5, %v3908_v21, %v3909_v40  ;;  %v2037_v40 = vld [vmem:[%s5994_s8 + $0x8] sm:$0xff] }
 0x263   : > { %v3328_v52 = vpack.c.bf16 %v1099_v35, %v1097_v59  ;;  %v1096_v42 = vsel %vm1095_vm5, %v3898_v39, %v3899_v31  ;;  %v576_v31 = vld [vmem:[%s5990_s4] sm:$0xff]  ;;  %v6145_v21 = vld [vmem:[#allocation25_spill] sm:$0xff]  ;;  %v6148_v59 = vld [vmem:[#allocation35_spill] sm:$0xff]  ;;  %v3987_v35 = vpop.permute.xlu0 %3986 }
 0x264   : > { %v3331_v3 = vpack.c.bf16 %v1098_v47, %v1096_v42  ;;  %1537 = vmatmul.mubr.f32.gmra.mrb[2].mxu1 %v568_v43  ;;  %v6146_v38 = vld [vmem:[#allocation29_spill] sm:$0xff]  ;;  %v6149_v39 = vld [vmem:[#allocation31_spill] sm:$0xff]  ;;  %v5323_v47 = vpop.permute.xlu1 %2111 }
 0x265   : > { %3309 = vmatpush1.bf16.msra.mxu1 %v3308_v22  ;;  %1542 = vmatprep.mubr.f32.mxu1 %v573_v17 }
 0x266   : > { %3312 = vmatprep.subr.msk.bf16.mxu1 %vm4698_vm3, %v3310_v51 }
 0x268   : > { %v5335_v42 = vpop.permute.xlu1 %2147 }
 0x269   : > { %3315 = vmatpush1.bf16.msk.msra.mxu1 %vm4705_vm4, %v3313_v62 }
 0x26a   : > { %3318 = vmatprep.subr.msk.bf16.mxu1 %vm4943_vm10, %v3316_v55 }
 0x26d   : > { %3321 = vmatpush1.bf16.msk.msra.mxu1 %vm4959_vm8, %v3319_v16  ;;  %v572_v16 = vld [vmem:[%s5989_s3 + $0x40] sm:$0xff] }
 0x26e   : > { %3324 = vmatprep.subr.msk.bf16.mxu1 %vm4583_vm6, %v3322_v2  ;;  %1543 = vmatmul.mubr.f32.gmra.mrb[4].mxu1 %v572_v16  ;;  %vm6047_vm6 = vcmask 719872   ;;  %v6147_v2 = vld [vmem:[#allocation27_spill] sm:$0xff] }
 0x26f   : > { %3058 = vmatprep.mubr.msk.f32.mxu1 %vm6050_vm2, %v567_v49  ;;  %3064 = vmatprep.mubr.msk.f32.mxu0 %vm6047_vm6, %v2031_v28 }
 0x271   : > { %3327 = vmatpush1.bf16.msk.msra.mxu1 %vm4593_vm9, %v3325_v37  ;;  %v6150_v37 = vld [vmem:[#allocation33_spill] sm:$0xff]  ;;  %vm4230_vm9 = vmmov 1  }
 0x272   : > { %3330 = vmatprep.subr.msk.bf16.mxu1 %vm4610_vm11, %v3328_v52  ;;  %v5329_v52 = vpop.permute.xlu0 %3991 }
 0x275   : > { %3333 = vmatpush1.bf16.msk.msra.mxu1 %vm4623_vm12, %v3331_v3 }
 0x291   : > { %v2013_v9 = vpop.f32.mrb[18].mxu0 }
 0x292   : > { %v5172_v14 = vadd.f32 %v2013_v9, %v6138_v7  ;;  %v2015_v54 = vpop.f32.mrb[19].mxu0 }
 0x293   : > { %v5175_v10 = vadd.f32 %v2015_v54, %v6138_v7 }
 0x295   : > { %v2019_v41 = vpop.f32.mrb[20].mxu0  ;;  %v3995_v11 = vpack.i.bf16 %v5175_v10, %v5172_v14  ;;  %v4015_v62 = vpack.i.bf16 %v6141_v45, %v5175_v10 }
 0x296   : > { %v5180_v12 = vadd.f32 %v2019_v41, %v6139_v0  ;;  %v2021_v60 = vpop.f32.mrb[21].mxu0 }
 0x297   : > { %v5183_v26 = vadd.f32 %v2021_v60, %v6139_v0  ;;  %3996 = vrot.lane.b32.xlu0 %v3995_v11, %s4206_s20  ;;  %v3988_v0 = vunpack.i.l.bf16 %v3987_v35 }
 0x298   : > { %v5188_v5 = vpack.i.bf16 %v5180_v12, %v5172_v14  ;;  %v3434_v27 = vpack.c.bf16 %v5180_v12, %v5172_v14  ;;  %v4020_v58 = vpack.i.bf16 %v5180_v12, %v6141_v45 }
 0x299   : > { %v2025_v15 = vpop.f32.mrb[22].mxu0  ;;  %v4030_v22 = vpack.i.bf16 %v5183_v26, %v5180_v12  ;;  %v4055_v4 = vpack.i.bf16 %v5183_v26, %v5172_v14  ;;  %v3432_v48 = vpack.c.bf16 %v5183_v26, %v5175_v10  ;;  %v4080_v55 = vpack.i.bf16 %v6141_v45, %v5183_v26 }
 0x29a   : > { %v2027_v51 = vpop.f32.mrb[23].mxu0  ;;  %v5201_v18 = vadd.f32 %v2025_v15, %v6140_v29 }
 0x29b   : > { %4031 = vrot.lane.b32.xlu1 %v4030_v22, %s4206_s20  ;;  %4001 = vrot.lane.b32.xlu0 %v3995_v11, %s4207_s21  ;;  %v5210_v44 = vadd.f32 %v2027_v51, %v6140_v29 }
 0x29c   : > { %v4040_v50 = vpack.i.bf16 %v5201_v18, %v5183_v26 }
 0x29d   : > { %v4050_v30 = vpack.i.bf16 %v5210_v44, %v5201_v18  ;;  %v4065_v56 = vpack.i.bf16 %v6141_v45, %v5210_v44  ;;  %v4115_v46 = vpack.i.bf16 %v5210_v44, %v6141_v45 }
 0x29f   : > { %4036 = vrot.lane.b32.xlu1 %v4030_v22, %s4208_s22  ;;  %4006 = vrot.lane.b32.xlu0 %v3995_v11, %s4208_s22 }
 0x2a3   : > { %4041 = vrot.lane.b32.xlu1 %v4040_v50, %s4207_s21  ;;  %4011 = vrot.lane.b32.xlu0 %v3995_v11, %s4215_s13  ;;  %v3989_v11 = vunpack.i.h.bf16 %v3987_v35  ;;  %v6151_v35 = vld [vmem:[#allocation6_spill] sm:$0xff] }
 0x2a4   : > { %vm6152_vm7 = vcmp.ge.s32.totalorder %v6151_v35, 0 }
 0x2a5   : > { %vm5390_vm14 = vmpackc.low %vm4230_vm9, %vm6152_vm7 }
 0x2a7   : > { %4046 = vrot.lane.b32.xlu1 %v4040_v50, %s4215_s13  ;;  %4016 = vrot.lane.b32.xlu0 %v4015_v62, %s4214_s12 }
 0x2ab   : > { %4051 = vrot.lane.b32.xlu1 %v4050_v30, %s4206_s20  ;;  %4021 = vrot.lane.b32.xlu0 %v4020_v58, %s4207_s21 }
 0x2af   : > { %4056 = vrot.lane.b32.xlu1 %v4055_v4, %s4214_s12  ;;  %4026 = vrot.lane.b32.xlu0 %v4020_v58, %s4215_s13 }
 0x2b3   : > { %4061 = vrot.lane.b32.xlu1 %v4020_v58, %s4214_s12  ;;  %4066 = vrot.lane.b32.xlu0 %v4065_v56, %s4207_s21 }
 0x2b7   : > { %4071 = vrot.lane.b32.xlu1 %v4050_v30, %s4208_s22  ;;  %2201 = vrot.lane.b32.xlu0 %v5201_v18, %s4214_s12 }
 0x2bb   : > { %4076 = vrot.lane.b32.xlu1 %v4015_v62, %s4217_s15  ;;  %4081 = vrot.lane.b32.xlu0 %v4080_v55, %s4217_s15 }
 0x2bf   : > { %4086 = vrot.lane.b32.xlu1 %v5188_v5, %s4217_s15  ;;  %4096 = vrot.lane.b32.xlu0 %v4065_v56, %s4215_s13 }
 0x2c3   : > { %4091 = vrot.lane.b32.xlu1 %v4015_v62, %s4216_s14  ;;  %2237 = vrot.lane.b32.xlu0 %v5201_v18, %s4217_s15 }
 0x2c7   : > { %4101 = vrot.lane.b32.xlu1 %v4055_v4, %s4216_s14  ;;  %4106 = vrot.lane.b32.xlu0 %v6142_v20, %s4229_s25 }
 0x2cb   : > { %4111 = vrot.lane.b32.xlu1 %v6143_v1, %s4229_s25  ;;  %4116 = vrot.lane.b32.xlu0 %v4115_v46, %s4214_s12 }
 0x2cf   : > { %2381 = vrot.lane.b32.xlu1 %v5201_v18, %s4216_s14  ;;  %4121 = vrot.lane.b32.xlu0 %v6144_v13, %s4229_s25 }
 0x2d3   : > { %4141 = vrot.lane.b32.xlu1 %v4115_v46, %s4216_s14  ;;  %4126 = vrot.lane.b32.xlu0 %v4065_v56, %s4217_s15 }
 0x2d7   : > { %4146 = vrot.lane.b32.xlu1 %v4080_v55, %s4218_s23  ;;  %4131 = vrot.lane.b32.xlu0 %v4020_v58, %s4216_s14 }
 0x2db   : > { %2275 = vrot.lane.b32.xlu1 %v5210_v44, %s4218_s23  ;;  %4136 = vrot.lane.b32.xlu0 %v4015_v62, %s4218_s23 }
 0x2df   : > { %2273 = vrot.lane.b32.xlu1 %v5201_v18, %s4218_s23  ;;  %4151 = vrot.lane.b32.xlu0 %v5188_v5, %s4218_s23 }
 0x2e3   : > { %1449 = vperm.xlu1 %3519, %v577_v33   ;;  %2277 = vrot.lane.b32.xlu0 %v6141_v45, %s4218_s23 }
 0x2e7   : > { %2467 = vperm.xlu1 %3519, %v2036_v53   ;;  %1444 = vperm.xlu0 %3518, %v576_v31  }
 0x2eb   : > { %2477 = vperm.xlu1 %3519, %v2038_v23   ;;  %1454 = vperm.xlu0 %3518, %v578_v6  }
 0x2ef   : > { %2605 = vrot.lane.b32.xlu1 %v6145_v21, %s4206_s20  ;;  %2472 = vperm.xlu0 %3518, %v2037_v40  }
 0x2f3   : > { %2611 = vrot.lane.b32.xlu1 %v6146_v38, %s4206_s20  ;;  %4156 = vrot.lane.b32.xlu0 %v6141_v45, %s4206_s20 }
 0x2f7   : > { %2615 = vrot.lane.b32.xlu1 %v6141_v45, %s4206_s20  ;;  %2607 = vrot.lane.b32.xlu0 %v6147_v2, %s4206_s20 }
 0x2fb   : > { %2619 = vrot.lane.b32.xlu1 %v6148_v59, %s4206_s20  ;;  %2613 = vrot.lane.b32.xlu0 %v6149_v39, %s4206_s20 }
 0x2ff   : > { %2641 = vrot.lane.b32.xlu1 %v6145_v21, %s4208_s22  ;;  %2617 = vrot.lane.b32.xlu0 %v6150_v37, %s4206_s20 }
 0x303   : > { %2647 = vrot.lane.b32.xlu1 %v6146_v38, %s4208_s22  ;;  %4161 = vrot.lane.b32.xlu0 %v6141_v45, %s4208_s22 }
 0x307   : > { %2651 = vrot.lane.b32.xlu1 %v6141_v45, %s4208_s22  ;;  %2643 = vrot.lane.b32.xlu0 %v6147_v2, %s4208_s22 }
 0x309   : > { %v3997_v3 = vpop.permute.xlu0 %3996 }
 0x30a   : > { %v3999_v9 = vunpack.i.h.bf16 %v3997_v3  ;;  %v3998_v7 = vunpack.i.l.bf16 %v3997_v3 }
 0x30b   : > { %2655 = vrot.lane.b32.xlu1 %v6148_v59, %s4208_s22  ;;  %2649 = vrot.lane.b32.xlu0 %v6149_v39, %s4208_s22 }
 0x30c   : > { %v2081_v15 = vsel %vm6046_vm13, %v3988_v0, %v3998_v7  ;;  %v2082_v22 = vsel %vm6046_vm13, %v3998_v7, %v3999_v9  ;;  %v6155_v9 = vld [vmem:[#allocation7_spill] sm:$0xff] }
 0x30d   : > { %v4032_v54 = vpop.permute.xlu1 %4031  ;;  %v4002_v41 = vpop.permute.xlu0 %4001  ;;  %vm6156_vm0 = vcmp.ge.s32.totalorder %v6155_v9, 0 }
 0x30e   : > { %v4034_v60 = vunpack.i.h.bf16 %v4032_v54  ;;  %v4033_v5 = vunpack.i.l.bf16 %v4032_v54  ;;  %v4004_v46 = vunpack.i.h.bf16 %v4002_v41  ;;  %v4003_v25 = vunpack.i.l.bf16 %v4002_v41  ;;  %vm5397_vm5 = vmpackc.low %vm4230_vm9, %vm6156_vm0 }
 0x30f   : > { %2677 = vrot.lane.b32.xlu1 %v6145_v21, %s4215_s13  ;;  %2653 = vrot.lane.b32.xlu0 %v6150_v37, %s4208_s22  ;;  %vm6161_vm0 = vcmp.ge.s32.totalorder %v6151_v35, 0 }
 0x310   : > { %v2083_v4 = vsel %vm6046_vm13, %v3989_v11, %v4033_v5  ;;  %v2084_v51 = vsel %vm6046_vm13, %v4033_v5, %v4034_v60  ;;  %v2322_v49 = vsel %vm6050_vm2, %v4003_v25, %v4004_v46 }
 0x311   : > { %v3401_v29 = vpack.c.bf16 %v2083_v4, %v2081_v15  ;;  %v5349_v50 = vpop.permute.xlu1 %4036  ;;  %v5351_v62 = vpop.permute.xlu0 %4006  ;;  %v3398_v30 = vpack.c.bf16 %v2084_v51, %v2082_v22 }
 0x312   : > { %v4039_v41 = vunpack.i.h.bf16 %v5349_v50  ;;  %v4038_v11 = vunpack.i.l.bf16 %v5349_v50  ;;  %v4009_v0 = vunpack.i.h.bf16 %v5351_v62  ;;  %v4008_v60 = vunpack.i.l.bf16 %v5351_v62 }
 0x313   : > { %2683 = vrot.lane.b32.xlu1 %v6146_v38, %s4215_s13  ;;  %4166 = vrot.lane.b32.xlu0 %v6141_v45, %s4215_s13 }
 0x314   : > { %3400 = vmatprep.subr.msk.bf16.mxu0 %vm4610_vm11, %v3398_v30  ;;  %v2120_v46 = vsel %vm6049_vm15, %v4038_v11, %v4039_v41 }
 0x315   : > { %3403 = vmatpush1.bf16.msk.msra.mxu0 %vm4623_vm12, %v3401_v29  ;;  %v4042_v58 = vpop.permute.xlu1 %4041  ;;  %v5361_v56 = vpop.permute.xlu0 %4011 }
 0x316   : > { %v4044_v7 = vunpack.i.h.bf16 %v4042_v58  ;;  %v4043_v22 = vunpack.i.l.bf16 %v4042_v58  ;;  %v2118_v58 = vsel %vm6049_vm15, %v4008_v60, %v4009_v0 }
 0x317   : > { %2687 = vrot.lane.b32.xlu1 %v6141_v45, %s4215_s13  ;;  %2679 = vrot.lane.b32.xlu0 %v6147_v2, %s4215_s13 }
 0x318   : > { %v2325_v29 = vsel %vm6050_vm2, %v5317_v8, %v4044_v7 }
 0x319   : > { %v5367_v55 = vpop.permute.xlu1 %4046  ;;  %v5369_v20 = vpop.permute.xlu0 %4016 }
 0x31b   : > { %2691 = vrot.lane.b32.xlu1 %v6148_v59, %s4215_s13  ;;  %2685 = vrot.lane.b32.xlu0 %v6149_v39, %s4215_s13 }
 0x31d   : > { %v4052_v1 = vpop.permute.xlu1 %4051  ;;  %v4022_v43 = vpop.permute.xlu0 %4021 }
 0x31e   : > { %v4054_v17 = vunpack.i.h.bf16 %v4052_v1  ;;  %v4053_v13 = vunpack.i.l.bf16 %v4052_v1  ;;  %v4023_v16 = vunpack.i.l.bf16 %v4022_v43  ;;  %v4024_v54 = vunpack.i.h.bf16 %v4022_v43 }
 0x31f   : > { %2731 = vrot.lane.b32.xlu1 %v6147_v2, %s4214_s12  ;;  %2689 = vrot.lane.b32.xlu0 %v6150_v37, %s4215_s13 }
 0x320   : > { %v2085_v28 = vsel %vm6046_vm13, %v2076_v19, %v4053_v13  ;;  %v2086_v33 = vsel %vm6046_vm13, %v4053_v13, %v4054_v17  ;;  %v2321_v53 = vsel %vm6050_vm2, %v4023_v16, %v4003_v25  ;;  %v2324_v62 = vsel %vm6050_vm2, %v4024_v54, %v4043_v22 }
 0x321   : > { %v3407_v31 = vpack.c.bf16 %v2321_v53, %v2085_v28  ;;  %v5383_v23 = vpop.permute.xlu1 %4056  ;;  %v5385_v6 = vpop.permute.xlu0 %4026  ;;  %v3404_v40 = vpack.c.bf16 %v2322_v49, %v2086_v33  ;;  %v3994_v13 = vunpack.i.h.bf16 %v5329_v52  ;;  %v3993_v16 = vunpack.i.l.bf16 %v5329_v52 }
 0x322   : > { %v4014_v28 = vunpack.i.h.bf16 %v5361_v56  ;;  %v4013_v33 = vunpack.i.l.bf16 %v5361_v56  ;;  %v4028_v56 = vunpack.i.l.bf16 %v5385_v6 }
 0x323   : > { %2735 = vrot.lane.b32.xlu1 %v6146_v38, %s4214_s12  ;;  %2729 = vrot.lane.b32.xlu0 %v6145_v21, %s4214_s12  ;;  %v2119_v53 = vsel %vm6049_vm15, %v3994_v13, %v4038_v11  ;;  %v6159_v11 = vld [vmem:[#allocation9_spill] sm:$0xff] }
 0x324   : > { %3406 = vmatprep.subr.msk.bf16.mxu0 %vm5390_vm14, %v3404_v40  ;;  %v3414_v40 = vpack.c.bf16 %v2120_v46, %v2118_v58  ;;  %v2154_v0 = vsel %vm6048_vm1, %v4013_v33, %v4014_v28  ;;  %vm6160_vm7 = vcmp.lt.s32.totalorder %v6159_v11, 16  ;;  %v6162_v58 = vld [vmem:[#allocation8_spill] sm:$0xff] }
 0x325   : > { %3409 = vmatpush1.bf16.msk.msra.mxu0 %vm5397_vm5, %v3407_v31  ;;  %v5413_v5 = vpop.permute.xlu1 %4061  ;;  %v4067_v15 = vpop.permute.xlu0 %4066  ;;  %v2117_v31 = vsel %vm6049_vm15, %v3993_v16, %v4008_v60  ;;  %vm3421_vm13 = vmpackc.low %vm6161_vm0, %vm6160_vm7  ;;  %v4049_v60 = vunpack.i.h.bf16 %v5367_v55  ;;  %vm6163_vm7 = vcmp.lt.s32.totalorder %v6162_v58, 16  ;;  %vm6164_vm0 = vcmp.ge.s32.totalorder %v6155_v9, 0 }
 0x326   : > { %v4069_v4 = vunpack.i.h.bf16 %v4067_v15  ;;  %v4068_v51 = vunpack.i.l.bf16 %v4067_v15  ;;  %v3417_v41 = vpack.c.bf16 %v2119_v53, %v2117_v31  ;;  %v4029_v15 = vunpack.i.h.bf16 %v5385_v6  ;;  %vm3424_vm6 = vmpackc.low %vm6164_vm0, %vm6163_vm7 }
 0x327   : > { %2741 = vrot.lane.b32.xlu1 %v6150_v37, %s4214_s12  ;;  %4171 = vrot.lane.b32.xlu0 %v6141_v45, %s4214_s12  ;;  %v4019_v16 = vunpack.i.h.bf16 %v5369_v20  ;;  %vm6170_vm0 = vcmp.lt.s32.totalorder %v6159_v11, 16 }
 0x328   : > { %v2323_v50 = vsel %vm6050_vm2, %v4069_v4, %v4024_v54  ;;  %v2326_v30 = vsel %vm6050_vm2, %v4044_v7, %v4068_v51  ;;  %vm6175_vm2 = vcmp.lt.s32.totalorder %v6162_v58, 16 }
 0x329   : > { %v4072_v25 = vpop.permute.xlu1 %4071  ;;  %v5426_v1 = vpop.permute.xlu0 %2201  ;;  %v3410_v43 = vpack.c.bf16 %v2326_v30, %v2324_v62  ;;  %v3412_v17 = vpack.c.bf16 %v2325_v29, %v2323_v50  ;;  %v4048_v50 = vunpack.i.l.bf16 %v5367_v55  ;;  %v2153_v62 = vsel %vm6048_vm1, %v4028_v56, %v4013_v33 }
 0x32a   : > { %v4074_v8 = vunpack.i.h.bf16 %v4072_v25  ;;  %v4073_v49 = vunpack.i.l.bf16 %v4072_v25  ;;  %v2157_v55 = vsel %vm6048_vm1, %v5335_v42, %v4049_v60  ;;  %v6166_v42 = vld [vmem:[#allocation34_spill] sm:$0xff]  ;;  %v4058_v56 = vunpack.i.l.bf16 %v5383_v23 }
 0x32b   : > { %2745 = vrot.lane.b32.xlu1 %v6141_v45, %s4214_s12  ;;  %2737 = vrot.lane.b32.xlu0 %v6149_v39, %s4214_s12 }
 0x32c   : > { %3411 = vmatprep.subr.bf16.mxu0 %v3410_v43  ;;  %v2122_v52 = vsel %vm6049_vm15, %v4073_v49, %v4074_v8  ;;  %v2121_v22 = vsel %vm6049_vm15, %v5323_v47, %v4073_v49  ;;  %v6165_v47 = vld [vmem:[#allocation32_spill] sm:$0xff]  ;;  %v2156_v43 = vsel %vm6048_vm1, %v4029_v15, %v4048_v50  ;;  %v4018_v8 = vunpack.i.l.bf16 %v5369_v20  ;;  %v6167_v20 = vld [vmem:[#allocation38_spill] sm:$0xff] }
 0x32d   : > { %3413 = vmatpush1.bf16.msra.mxu0 %v3412_v17  ;;  %v5439_v7 = vpop.permute.xlu1 %4076  ;;  %v5441_v54 = vpop.permute.xlu0 %4081  ;;  %v3420_v4 = vpack.c.bf16 %v2154_v0, %v2122_v52  ;;  %v3914_v6 = vunpack.i.h.bf16 %v6165_v47  ;;  %v3423_v25 = vpack.c.bf16 %v2153_v62, %v2121_v22  ;;  %v3913_v31 = vunpack.i.l.bf16 %v6165_v47 }
 0x32e   : > { %3416 = vmatprep.subr.msk.bf16.mxu0 %vm4698_vm3, %v3414_v40  ;;  %v3924_v40 = vunpack.i.h.bf16 %v6166_v42  ;;  %v3923_v52 = vunpack.i.l.bf16 %v6166_v42  ;;  %v4078_v22 = vunpack.i.l.bf16 %v5439_v7  ;;  %vm6174_vm15 = vcmask 924672  }
 0x32f   : > { %2767 = vrot.lane.b32.xlu1 %v6147_v2, %s4217_s15  ;;  %2743 = vrot.lane.b32.xlu0 %v6148_v59, %s4214_s12 }
 0x331   : > { %3419 = vmatpush1.bf16.msk.msra.mxu0 %vm4705_vm4, %v3417_v41  ;;  %v5461_v51 = vpop.permute.xlu1 %4086  ;;  %v4097_v29 = vpop.permute.xlu0 %4096  ;;  %v3919_v41 = vunpack.i.h.bf16 %v6167_v20 }
 0x332   : > { %v4099_v30 = vunpack.i.h.bf16 %v4097_v29  ;;  %v4098_v46 = vunpack.i.l.bf16 %v4097_v29  ;;  %3422 = vmatprep.subr.msk.bf16.mxu0 %vm3421_vm13, %v3420_v4  ;;  %vm6051_vm13 = vcmask 777216   ;;  %v4088_v14 = vunpack.i.l.bf16 %v5461_v51 }
 0x333   : > { %4181 = vrot.lane.b32.xlu1 %v6141_v45, %s4207_s21  ;;  %2765 = vrot.lane.b32.xlu0 %v6145_v21, %s4217_s15  ;;  %v5509_v50 = vsel %vm6051_vm13, %v3913_v31, %v3914_v6  ;;  %v5512_v62 = vsel %vm6051_vm13, %v3923_v52, %v3924_v40  ;;  %v5535_v26 = vsel %vm6051_vm13, %v3919_v41, %v3923_v52  ;;  %vm6176_vm13 = vmmov %vm6174_vm15 }
 0x334   : > { %v2155_v17 = vsel %vm6048_vm1, %v4099_v30, %v4029_v15  ;;  %v2158_v13 = vsel %vm6048_vm1, %v4049_v60, %v4098_v46  ;;  %v4064_v60 = vunpack.i.h.bf16 %v5413_v5  ;;  %v4079_v15 = vunpack.i.h.bf16 %v5439_v7 }
 0x335   : > { %v3426_v49 = vpack.c.bf16 %v2158_v13, %v2156_v43  ;;  %v3429_v28 = vpack.c.bf16 %v2157_v55, %v2155_v17  ;;  %3425 = vmatpush1.bf16.msk.msra.mxu0 %vm3424_vm6, %v3423_v25  ;;  %v5481_v33 = vpop.permute.xlu1 %4091  ;;  %v5483_v53 = vpop.permute.xlu0 %2237  ;;  %vm6168_vm6 = vcmask 1039360   ;;  %v4059_v30 = vunpack.i.h.bf16 %v5383_v23 }
 0x336   : > { %v2208_v0 = vsel %vm6168_vm6, %v4018_v8, %v4019_v16  ;;  %vm6169_vm7 = vmmov %vm6168_vm6  ;;  %v4084_v7 = vunpack.i.h.bf16 %v5441_v54  ;;  %v4083_v25 = vunpack.i.l.bf16 %v5441_v54  ;;  %v4063_v17 = vunpack.i.l.bf16 %v5413_v5 }
 0x337   : > { %2847 = vrot.lane.b32.xlu1 %v6147_v2, %s4207_s21  ;;  %4176 = vrot.lane.b32.xlu0 %v6141_v45, %s4217_s15  ;;  %v2207_v46 = vsel %vm6169_vm7, %v4058_v56, %v4018_v8  ;;  %vm5530_vm6 = vmpackc.low %vm6170_vm0, %vm4230_vm9  ;;  %v3436_v23 = vpack.c.bf16 %v2208_v0, %v5210_v44  ;;  %vm1321_vm7 = vcmask 785408   ;;  %vm6173_vm1 = vcmask 1039360  }
 0x338   : > { %3428 = vmatprep.subr.msk.bf16.mxu0 %vm4610_vm11, %v3426_v49  ;;  %v3439_v54 = vpack.c.bf16 %v2207_v46, %v5201_v18  ;;  %v2209_v13 = vsel %vm6173_vm1, %v4064_v60, %v4059_v30  ;;  %v2244_v16 = vsel %vm6174_vm15, %v4078_v22, %v4079_v15  ;;  %vm1145_vm0 = vcmask 769024   ;;  %vm3440_vm1 = vmpackc.low %vm6175_vm2, %vm4230_vm9 }
 0x339   : > { %3431 = vmatpush1.bf16.msk.msra.mxu0 %vm4623_vm12, %v3429_v28  ;;  %v5502_v4 = vpop.permute.xlu1 %4101  ;;  %v5504_v29 = vpop.permute.xlu0 %4106  ;;  %v2246_v18 = vsel %vm6176_vm13, %v4083_v25, %v4084_v7  ;;  %v4089_v5 = vunpack.i.h.bf16 %v5461_v51  ;;  %vm6177_vm15 = vcmask 1039360   ;;  %vm6180_vm9 = vcmask 777216  }
 0x33a   : > { %3433 = vmatprep.subr.bf16.mxu0 %v3432_v48  ;;  %v4109_v55 = vunpack.i.h.bf16 %v5504_v29  ;;  %v4108_v43 = vunpack.i.l.bf16 %v5504_v29  ;;  %v3918_v48 = vunpack.i.l.bf16 %v6167_v20  ;;  %v3954_v29 = vunpack.i.h.bf16 %v4937_v34 }
 0x33b   : > { %2853 = vrot.lane.b32.xlu1 %v6149_v39, %s4207_s21  ;;  %2845 = vrot.lane.b32.xlu0 %v6145_v21, %s4207_s21  ;;  %v4094_v47 = vunpack.i.h.bf16 %v5481_v33 }
 0x33c   : > { %v1323_v12 = vsel %vm1321_vm7, %v4108_v43, %v4109_v55  ;;  %v1122_v51 = vsel %vm6180_vm9, %v3914_v6, %v3918_v48  ;;  %v3448_v55 = vpack.c.bf16 %v2246_v18, %v2244_v16  ;;  %v4093_v6 = vunpack.i.l.bf16 %v5481_v33 }
 0x33d   : > { %3435 = vmatpush1.bf16.msra.mxu0 %v3434_v27  ;;  %v4112_v8 = vpop.permute.xlu1 %4111  ;;  %v4117_v49 = vpop.permute.xlu0 %4116  ;;  %v4103_v48 = vunpack.i.l.bf16 %v5502_v4 }
 0x33e   : > { %v4114_v28 = vunpack.i.h.bf16 %v4112_v8  ;;  %v4113_v31 = vunpack.i.l.bf16 %v4112_v8  ;;  %v4119_v42 = vunpack.i.h.bf16 %v4117_v49  ;;  %v4118_v44 = vunpack.i.l.bf16 %v4117_v49  ;;  %3438 = vmatprep.subr.msk.bf16.mxu0 %vm5530_vm6, %v3436_v23  ;;  %vm6178_vm6 = vmmov %vm6177_vm15  ;;  %v6183_v8 = vld [vmem:[#allocation39_spill] sm:$0xff] }
 0x33f   : > { %2857 = vrot.lane.b32.xlu1 %v6150_v37, %s4207_s21  ;;  %2851 = vrot.lane.b32.xlu0 %v6146_v38, %s4207_s21  ;;  %vm6179_vm2 = vmmov %vm6178_vm6  ;;  %v3929_v49 = vunpack.i.h.bf16 %v6183_v8 }
 0x340   : > { %v2211_v27 = vsel %vm6177_vm15, %v5426_v1, %v4119_v42  ;;  %v2212_v40 = vsel %vm6178_vm6, %v4119_v42, %v4063_v17  ;;  %v2210_v52 = vsel %vm6179_vm2, %v4059_v30, %v4118_v44  ;;  %v1325_v56 = vsel %vm1321_vm7, %v4113_v31, %v4114_v28  ;;  %vm6181_vm15 = vmmov %vm6176_vm13 }
 0x341   : > { %v3445_v20 = vpack.c.bf16 %v2211_v27, %v2209_v13  ;;  %v3442_v41 = vpack.c.bf16 %v2212_v40, %v2210_v52  ;;  %3441 = vmatpush1.bf16.msk.msra.mxu0 %vm3440_vm1, %v3439_v54  ;;  %v2382_v0 = vpop.permute.xlu1 %2381  ;;  %v4122_v60 = vpop.permute.xlu0 %4121  ;;  %v3334_v15 = vpack.c.bf16 %v1325_v56, %v1323_v12  ;;  %v3953_v1 = vunpack.i.l.bf16 %v4937_v34  ;;  %vm6186_vm6 = vmmov %vm6176_vm13 }
 0x342   : > { %v4124_v46 = vunpack.i.h.bf16 %v4122_v60  ;;  %v4123_v7 = vunpack.i.l.bf16 %v4122_v60  ;;  %v2243_v30 = vsel %vm6176_vm13, %v4088_v14, %v4078_v22  ;;  %v2245_v10 = vsel %vm6181_vm15, %v4089_v5, %v4083_v25  ;;  %v6182_v22 = vld [vmem:[#allocation37_spill] sm:$0xff] }
 0x343   : > { %2771 = vrot.lane.b32.xlu1 %v6146_v38, %s4217_s15  ;;  %2855 = vrot.lane.b32.xlu0 %v6141_v45, %s4207_s21  ;;  %v3934_v25 = vunpack.i.h.bf16 %v6182_v22  ;;  %v3933_v54 = vunpack.i.l.bf16 %v6182_v22  ;;  %v3341_v17 = vpack.c.bf16 %v5535_v26, %v5509_v50  ;;  %v1149_v42 = vsel %vm1145_vm0, %v3953_v1, %v3954_v29 }
 0x344   : > { %v1324_v34 = vsel %vm1321_vm7, %v4124_v46, %v4113_v31  ;;  %v1322_v23 = vsel %vm1321_vm7, %v4123_v7, %v4108_v43  ;;  %3335 = vmatprep.subr.bf16.mxu1 %v3334_v15  ;;  %3444 = vmatprep.subr.msk.bf16.mxu0 %vm4698_vm3, %v3442_v41  ;;  %v3338_v31 = vpack.c.bf16 %v5512_v62, %v1122_v51  ;;  %vm6184_vm7 = vcmask 916480  }
 0x345   : > { %v3336_v13 = vpack.c.bf16 %v1324_v34, %v1322_v23  ;;  %3447 = vmatpush1.bf16.msk.msra.mxu0 %vm4705_vm4, %v3445_v20  ;;  %v4142_v33 = vpop.permute.xlu1 %4141  ;;  %v4127_v16 = vpop.permute.xlu0 %4126  ;;  %v3451_v44 = vpack.c.bf16 %v2245_v10, %v2243_v30  ;;  %v2388_v26 = vsel %vm6184_vm7, %v4093_v6, %v4094_v47  ;;  %vm6185_vm1 = vmmov %vm6184_vm7  ;;  %v3928_v14 = vunpack.i.l.bf16 %v6183_v8 }
 0x346   : > { %v4129_v43 = vunpack.i.h.bf16 %v4127_v16  ;;  %v4128_v28 = vunpack.i.l.bf16 %v4127_v16  ;;  %3450 = vmatprep.subr.msk.bf16.mxu0 %vm4610_vm11, %v3448_v55  ;;  %v4144_v18 = vunpack.i.h.bf16 %v4142_v33  ;;  %v4143_v50 = vunpack.i.l.bf16 %v4142_v33  ;;  %vm6187_vm11 = vmmov %vm6186_vm6 }
 0x347   : > { %2777 = vrot.lane.b32.xlu1 %v6150_v37, %s4217_s15  ;;  %2859 = vrot.lane.b32.xlu0 %v6148_v59, %s4207_s21  ;;  %v2387_v5 = vsel %vm6185_vm1, %v4103_v48, %v4093_v6  ;;  %v4104_v12 = vunpack.i.h.bf16 %v5502_v4  ;;  %v1147_v51 = vsel %vm1145_vm0, %v3929_v49, %v3933_v54  ;;  %vm6188_vm2 = vmmov %vm6185_vm1  ;;  %v571_v54 = vld [vmem:[%s5989_s3 + $0x38] sm:$0xff] }
 0x348   : > { %v2247_v24 = vsel %vm6186_vm6, %v5483_v53, %v4128_v28  ;;  %v2248_v62 = vsel %vm6187_vm11, %v4128_v28, %v4129_v43  ;;  %3337 = vmatpush1.bf16.msra.mxu1 %v3336_v13  ;;  %v1148_v53 = vsel %vm1145_vm0, %v3934_v25, %v3953_v1  ;;  %v2391_v60 = vsel %vm6188_vm2, %v2382_v0, %v4144_v18  ;;  %vm6189_vm9 = vmmov %vm6185_vm1  ;;  %v570_v13 = vld [vmem:[%s5989_s3 + $0x30] sm:$0xff]  ;;  %v2030_v28 = vld [vmem:[%s5993_s7] sm:$0xff] }
 0x349   : > { %v3454_v27 = vpack.c.bf16 %v2388_v26, %v2248_v62  ;;  %v3457_v40 = vpack.c.bf16 %v2387_v5, %v2247_v24  ;;  %3340 = vmatprep.subr.msk.bf16.mxu1 %vm4698_vm3, %v3338_v31  ;;  %3453 = vmatpush1.bf16.msk.msra.mxu0 %vm4623_vm12, %v3451_v44  ;;  %v4147_v52 = vpop.permute.xlu1 %4146  ;;  %v4132_v56 = vpop.permute.xlu0 %4131  ;;  %v3344_v4 = vpack.c.bf16 %v1149_v42, %v1147_v51  ;;  %vm6190_vm12 = vmmov %vm6185_vm1  ;;  %v574_v43 = vld [vmem:[%s5989_s3 + $0x50] sm:$0xff]  ;;  %v516_v42 = vld [vmem:[%s5988_s2 + $0x38] sm:$0xff]  ;;  %vm6202_vm6 = vcmask 719872  }
 0x34a   : > { %v4134_v20 = vunpack.i.h.bf16 %v4132_v56  ;;  %v4133_v41 = vunpack.i.l.bf16 %v4132_v56  ;;  %v2390_v32 = vsel %vm6189_vm9, %v4104_v12, %v4143_v50  ;;  %v4149_v15 = vunpack.i.h.bf16 %v4147_v52  ;;  %vm6191_vm13 = vmmov %vm6185_vm1  ;;  %v2032_v44 = vld [vmem:[%s5993_s7 + $0x10] sm:$0xff]  ;;  %v2034_v5 = vld [vmem:[%s5993_s7 + $0x20] sm:$0xff] }
 0x34b   : > { %2781 = vrot.lane.b32.xlu1 %v6141_v45, %s4217_s15  ;;  %2773 = vrot.lane.b32.xlu0 %v6149_v39, %s4217_s15  ;;  %v4148_v29 = vunpack.i.l.bf16 %v4147_v52  ;;  %v1146_v1 = vsel %vm1145_vm0, %v3928_v14, %v3929_v49  ;;  %v575_v49 = vld [vmem:[%s5989_s3 + $0x58] sm:$0xff]  ;;  %v515_v50 = vld [vmem:[%s5988_s2 + $0x30] sm:$0xff]  ;;  %vm6203_vm11 = vmmov %vm6202_vm6  ;;  %vm6204_vm2 = vcmask 138240  }
 0x34c   : > { %v2389_v46 = vsel %vm6190_vm12, %v4134_v20, %v4104_v12  ;;  %3343 = vmatpush1.bf16.msk.msra.mxu1 %vm4705_vm4, %v3341_v17  ;;  %3456 = vmatprep.subr.msk.bf16.mxu0 %vm5390_vm14, %v3454_v27  ;;  %v2392_v0 = vsel %vm6191_vm13, %v4144_v18, %v4133_v41  ;;  %v3347_v10 = vpack.c.bf16 %v1148_v53, %v1146_v1  ;;  %vm6192_vm14 = vcmask 908288   ;;  %v2035_v18 = vld [vmem:[%s5993_s7 + $0x28] sm:$0xff]  ;;  %v517_v24 = vld [vmem:[%s5988_s2 + $0x40] sm:$0xff]  ;;  %vm6205_vm9 = vmmov %vm6204_vm2 }
 0x34d   : > { %v3462_v7 = vpack.c.bf16 %v2391_v60, %v2389_v46  ;;  %3346 = vmatprep.subr.msk.bf16.mxu1 %vm4943_vm10, %v3344_v4  ;;  %3459 = vmatpush1.bf16.msk.msra.mxu0 %vm5397_vm5, %v3457_v40  ;;  %v4137_v55 = vpop.permute.xlu0 %4136  ;;  %v3460_v30 = vpack.c.bf16 %v2392_v0, %v2390_v32  ;;  %v2282_v3 = vsel %vm6192_vm14, %v4148_v29, %v4149_v15  ;;  %vm6193_vm0 = vmmov %vm6192_vm14  ;;  %v2276_v23 = vpop.permute.xlu1 %2275  ;;  %vm6196_vm5 = vcmask 130048  }
 0x34e   : > { %v4139_v47 = vunpack.i.h.bf16 %v4137_v55  ;;  %v4138_v6 = vunpack.i.l.bf16 %v4137_v55  ;;  %vm6194_vm10 = vmmov %vm6193_vm0 }
 0x34f   : > { %2911 = vrot.lane.b32.xlu1 %v6147_v2, %s4216_s14  ;;  %2779 = vrot.lane.b32.xlu0 %v6148_v59, %s4217_s15  ;;  %vm6197_vm15 = vmmov %vm6193_vm0 }
 0x350   : > { %v2280_v48 = vsel %vm6193_vm0, %v4138_v6, %v4139_v47  ;;  %3349 = vmatpush1.bf16.msk.msra.mxu1 %vm4959_vm8, %v3347_v10  ;;  %3461 = vmatprep.subr.bf16.mxu0 %v3460_v30  ;;  %vm6195_vm8 = vmmov %vm6193_vm0 }
 0x351   : > { %v3464_v19 = vpack.c.bf16 %v2282_v3, %v2280_v48  ;;  %3463 = vmatpush1.bf16.msra.mxu0 %v3462_v7  ;;  %v4152_v34 = vpop.permute.xlu0 %4151  ;;  %v2274_v57 = vpop.permute.xlu1 %2273  ;;  %vm6199_vm7 = vmmov %vm6196_vm5 }
 0x352   : > { %v4154_v22 = vunpack.i.h.bf16 %v4152_v34  ;;  %v4153_v25 = vunpack.i.l.bf16 %v4152_v34  ;;  %vm6200_vm1 = vmmov %vm6193_vm0 }
 0x353   : > { %1614 = vmatmul.mubr.f32.vlgmr.msra.gmra.mrb[0].mxu1 %v566_v36  ;;  %2915 = vrot.lane.b32.xlu1 %v6146_v38, %s4216_s14  ;;  %v2283_v31 = vsel %vm6200_vm1, %v2274_v57, %v2276_v23  ;;  %vm6206_vm12 = vmmov %vm6204_vm2  ;;  %vm6216_vm1 = vcmask 7168  }
 0x354   : > { %v2281_v63 = vsel %vm6194_vm10, %v4154_v22, %v4148_v29  ;;  %v2279_v17 = vsel %vm6195_vm8, %v4153_v25, %v4138_v6  ;;  %2909 = vrot.lane.b32.xlu0 %v6145_v21, %s4216_s14  ;;  %3466 = vmatprep.subr.msk.bf16.mxu0 %vm4698_vm3, %v3464_v19  ;;  %vm6198_vm3 = vcmp.lt.s32.totalorder %v6159_v11, 16  ;;  %vm6207_vm13 = vmmov %vm6204_vm2  ;;  %vm6210_vm10 = vcmask 121856  }
 0x355   : > { %v3467_v33 = vpack.c.bf16 %v2281_v63, %v2279_v17  ;;  %v2278_v16 = vpop.permute.xlu0 %2277  ;;  %3059 = vmatprep.mubr.msk.f32.mxu1 %vm6196_vm5, %v571_v54  ;;  %vm6208_vm14 = vmmov %vm6204_vm2 }
 0x356   : > { %v2284_v8 = vsel %vm6197_vm15, %v2276_v23, %v2278_v16  ;;  %vm6209_vm0 = vmmov %vm6204_vm2 }
 0x357   : > { %1620 = vmatmul.mubr.f32.gmra.mrb[2].mxu1 %v570_v13  ;;  %2921 = vrot.lane.b32.xlu1 %v6150_v37, %s4216_s14  ;;  %vm6211_vm8 = vmmov %vm6210_vm10 }
 0x358   : > { %4186 = vrot.lane.b32.xlu0 %v6141_v45, %s4216_s14  ;;  %3469 = vmatpush1.bf16.msk.msra.mxu0 %vm4705_vm4, %v3467_v33  ;;  %vm6201_vm4 = vcmp.lt.s32.totalorder %v6162_v58, 16  ;;  %vm6212_vm5 = vmmov %vm6211_vm8 }
 0x359   : > { %3208 = vmatprep.subr.msk.mxu0 %vm6198_vm3, %v2284_v8  ;;  %3060 = vmatprep.mubr.msk.f32.mxu1 %vm6199_vm7, %v575_v49  ;;  %vm6213_vm15 = vmmov %vm6212_vm5 }
 0x35a   : > { %vm6214_vm3 = vmmov %vm6212_vm5 }
 0x35b   : > { %1626 = vmatmul.mubr.f32.gmra.mrb[4].mxu1 %v574_v43  ;;  %2925 = vrot.lane.b32.xlu1 %v6141_v45, %s4216_s14  ;;  %vm6215_vm7 = vmmov %vm6214_vm3 }
 0x35c   : > { %2917 = vrot.lane.b32.xlu0 %v6149_v39, %s4216_s14  ;;  %3209 = vmatpush1.msk.msra.mxu0 %vm6201_vm4, %v2283_v31  ;;  %vm6217_vm4 = vmmov %vm6216_vm1 }
 0x35d   : > { %2555 = vmatmul.mubr.f32.vlgmr.msra.gmra.mrb[24].mxu0 %v2030_v28 }
 0x35e   : > { %3065 = vmatprep.mubr.msk.f32.mxu0 %vm6202_vm6, %v2033_v61  ;;  %vm6218_vm6 = vmmov %vm6216_vm1 }
 0x35f   : > { %2964 = vperm.xlu1 %3519, %v516_v42  }
 0x360   : > { %2923 = vrot.lane.b32.xlu0 %v6148_v59, %s4216_s14 }
 0x361   : > { %2561 = vmatmul.mubr.f32.gmra.mrb[26].mxu0 %v2032_v44 }
 0x362   : > { %v5697_v26 = vpop.permute.xlu1 %1449  ;;  %3066 = vmatprep.mubr.msk.f32.mxu0 %vm6203_vm11, %v2035_v18  ;;  %vm6219_vm11 = vmmov %vm6216_vm1 }
 0x363   : > { %2801 = vrot.lane.b32.xlu1 %v6145_v21, %s4218_s23 }
 0x364   : > { %2959 = vperm.xlu0 %3518, %v515_v50  }
 0x365   : > { %2567 = vmatmul.mubr.f32.gmra.mrb[28].mxu0 %v2034_v5 }
 0x366   : > { %v5708_v62 = vpop.permute.xlu1 %2467  ;;  %v5710_v14 = vpop.permute.xlu0 %1444 }
 0x367   : > { %4191 = vrot.lane.b32.xlu1 %v6141_v45, %s4218_s23 }
 0x368   : > { %2969 = vperm.xlu0 %3518, %v517_v24  }
 0x36a   : > { %v5714_v12 = vpop.permute.xlu1 %2477  ;;  %v5716_v27 = vpop.permute.xlu0 %1454 }
 0x36b   : > { %2809 = vrot.lane.b32.xlu1 %v6149_v39, %s4218_s23 }
 0x36c   : > { %2803 = vrot.lane.b32.xlu0 %v6147_v2, %s4218_s23 }
 0x36e   : > { %v2606_v40 = vpop.permute.xlu1 %2605  ;;  %v5722_v52 = vpop.permute.xlu0 %2472 }
 0x36f   : > { %2815 = vrot.lane.b32.xlu1 %v6148_v59, %s4218_s23 }
 0x370   : > { %2807 = vrot.lane.b32.xlu0 %v6146_v38, %s4218_s23 }
 0x372   : > { %v2612_v56 = vpop.permute.xlu1 %2611  ;;  %v4157_v51 = vpop.permute.xlu0 %4156 }
 0x373   : > { %v4159_v53 = vunpack.i.h.bf16 %v4157_v51  ;;  %v4158_v20 = vunpack.i.l.bf16 %v4157_v51 }
 0x374   : > { %2813 = vrot.lane.b32.xlu0 %v6150_v37, %s4218_s23 }
 0x375   : > { %v5731_v41 = vsel %vm6204_vm2, %v4158_v20, %v2606_v40  ;;  %v5734_v60 = vsel %vm6205_vm9, %v4159_v53, %v2612_v56  ;;  %vm6220_vm2 = vmmov %vm6216_vm1 }
 0x376   : > { %v2616_v4 = vpop.permute.xlu1 %2615  ;;  %v2608_v32 = vpop.permute.xlu0 %2607  ;;  %vm6221_vm9 = vmmov %vm6216_vm1 }
 0x377   : > { %v2622_v15 = vsel %vm6206_vm12, %v2606_v40, %v2608_v32  ;;  %vm6222_vm12 = vcmask 1039360  }
 0x378   : > { %2817 = vrot.lane.b32.xlu0 %v6141_v45, %s4218_s23 }
 0x37a   : > { %v2620_v29 = vpop.permute.xlu1 %2619  ;;  %v2614_v46 = vpop.permute.xlu0 %2613 }
 0x37b   : > { %v2624_v0 = vsel %vm6207_vm13, %v2612_v56, %v2614_v46  ;;  %vm6223_vm13 = vmmov %vm6222_vm12 }
 0x37e   : > { %v2642_v1 = vpop.permute.xlu1 %2641  ;;  %v2618_v7 = vpop.permute.xlu0 %2617 }
 0x37f   : > { %v5741_v55 = vsel %vm6208_vm14, %v2616_v4, %v2618_v7  ;;  %v5744_v30 = vsel %vm6209_vm0, %v2618_v7, %v2620_v29  ;;  %vm6224_vm14 = vcmp.ge.s32.totalorder %v6151_v35, 0  ;;  %vm6225_vm0 = vcmp.ge.s32.totalorder %v6155_v9, 0 }
 0x382   : > { %v2648_v10 = vpop.permute.xlu1 %2647  ;;  %v4162_v47 = vpop.permute.xlu0 %4161 }
 0x383   : > { %v4164_v6 = vunpack.i.h.bf16 %v4162_v47  ;;  %v4163_v3 = vunpack.i.l.bf16 %v4162_v47 }
 0x385   : > { %v5747_v48 = vsel %vm6210_vm10, %v4164_v6, %v2648_v10  ;;  %v2657_v45 = vsel %vm6211_vm8, %v4163_v3, %v2642_v1  ;;  %vm6226_vm10 = vcmask 130048  }
 0x386   : > { %v2652_v36 = vpop.permute.xlu1 %2651  ;;  %v2644_v19 = vpop.permute.xlu0 %2643  ;;  %vm6227_vm8 = vmmov %vm6226_vm10 }
 0x387   : > { %v2658_v34 = vsel %vm6212_vm5, %v2642_v1, %v2644_v19  ;;  %v2634_v19 = vsel %vm6224_vm14, %v2622_v15, 0.0  ;;  %vm6228_vm5 = vmmov %vm6224_vm14 }
 0x388   : > { %vm6240_vm14 = vmmov %vm6228_vm5 }
 0x38a   : > { %v2656_v23 = vpop.permute.xlu1 %2655  ;;  %v2650_v22 = vpop.permute.xlu0 %2649 }
 0x38b   : > { %v5752_v25 = vsel %vm6213_vm15, %v2648_v10, %v2650_v22  ;;  %vm6229_vm15 = vcmp.lt.s32.totalorder %v6159_v11, 16 }
 0x38c   : > { %v2670_v15 = vsel %vm6229_vm15, %v2658_v34, 0.0 }
 0x38e   : > { %v2678_v54 = vpop.permute.xlu1 %2677  ;;  %v2654_v63 = vpop.permute.xlu0 %2653 }
 0x38f   : > { %v5755_v17 = vsel %vm6214_vm3, %v2652_v36, %v2654_v63  ;;  %v5758_v13 = vsel %vm6215_vm7, %v2654_v63, %v2656_v23  ;;  %vm6230_vm3 = vcmp.lt.s32.totalorder %v6162_v58, 16  ;;  %vm6231_vm7 = vmmov %vm6225_vm0 }
 0x392   : > { %v2684_v33 = vpop.permute.xlu1 %2683  ;;  %v4167_v16 = vpop.permute.xlu0 %4166 }
 0x393   : > { %v4169_v8 = vunpack.i.h.bf16 %v4167_v16  ;;  %v4168_v49 = vunpack.i.l.bf16 %v4167_v16 }
 0x395   : > { %v2695_v57 = vsel %vm6216_vm1, %v4169_v8, %v2684_v33  ;;  %v2693_v43 = vsel %vm6217_vm4, %v4168_v49, %v2678_v54  ;;  %vm6232_vm1 = vmmov %vm6225_vm0 }
 0x396   : > { %v2688_v28 = vpop.permute.xlu1 %2687  ;;  %v2680_v31 = vpop.permute.xlu0 %2679  ;;  %vm6233_vm4 = vmmov %vm6225_vm0 }
 0x397   : > { %v2694_v61 = vsel %vm6218_vm6, %v2678_v54, %v2680_v31  ;;  %v2633_v54 = vsel %vm6225_vm0, %v5731_v41, 0.0  ;;  %v2636_v31 = vsel %vm6228_vm5, %v2624_v0, 0.0  ;;  %v2635_v41 = vsel %vm6231_vm7, %v5734_v60, 0.0  ;;  %vm6234_vm6 = vmmov %vm6228_vm5 }
 0x398   : > { %v2706_v34 = vsel %vm6234_vm6, %v2694_v61, 0.0  ;;  %vm6247_vm7 = vmmov %vm6234_vm6 }
 0x39a   : > { %v2692_v42 = vpop.permute.xlu1 %2691  ;;  %v2686_v44 = vpop.permute.xlu0 %2685 }
 0x39b   : > { %v2696_v18 = vsel %vm6219_vm11, %v2684_v33, %v2686_v44  ;;  %v2637_v44 = vsel %vm6232_vm1, %v5741_v55, 0.0  ;;  %vm6235_vm11 = vmmov %vm6222_vm12 }
 0x39c   : > { %v2708_v61 = vsel %vm6240_vm14, %v2696_v18, 0.0  ;;  %vm6244_vm5 = vmmov %vm6235_vm11 }
 0x39d   : > { %vm6255_vm14 = vmmov %vm6244_vm5 }
 0x39e   : > { %v2732_v50 = vpop.permute.xlu1 %2731  ;;  %v2690_v5 = vpop.permute.xlu0 %2689 }
 0x39f   : > { %v5765_v24 = vsel %vm6220_vm2, %v2688_v28, %v2690_v5  ;;  %v5768_v40 = vsel %vm6221_vm9, %v2690_v5, %v2692_v42  ;;  %v2669_v42 = vsel %vm6230_vm3, %v2657_v45, 0.0  ;;  %v2705_v5 = vsel %vm6233_vm4, %v2693_v43, 0.0  ;;  %vm6236_vm2 = vmmov %vm6227_vm8 }
 0x3a0   : > { %vm6237_vm9 = vmmov %vm6236_vm2 }
 0x3a1   : > { %vm6249_vm6 = vmmov %vm6236_vm2 }
 0x3a2   : > { %v2736_v56 = vpop.permute.xlu1 %2735  ;;  %v2730_v51 = vpop.permute.xlu0 %2729 }
 0x3a3   : > { %v2747_v53 = vsel %vm6222_vm12, %v2730_v51, %v2732_v50  ;;  %vm6238_vm12 = vmmov %vm6229_vm15 }
 0x3a4   : > { %v2672_v43 = vsel %vm6238_vm12, %v5752_v25, 0.0  ;;  %vm6245_vm15 = vmmov %vm6236_vm2 }
 0x3a6   : > { %v5771_v20 = vpop.permute.xlu1 %2741  ;;  %v5773_v4 = vpop.permute.xlu0 %4171 }
 0x3a7   : > { %v4173_v63 = vunpack.i.l.bf16 %v5773_v4 }
 0x3a9   : > { %v2748_v45 = vsel %vm6235_vm11, %v2732_v50, %v4173_v63  ;;  %vm6250_vm11 = vmmov %vm6244_vm5 }
 0x3aa   : > { %v2746_v32 = vpop.permute.xlu1 %2745  ;;  %v5775_v29 = vpop.permute.xlu0 %2737 }
 0x3ab   : > { %v2749_v18 = vsel %vm6244_vm5, %v2736_v56, %v5775_v29 }
 0x3ae   : > { %v5777_v46 = vpop.permute.xlu1 %2767  ;;  %v5779_v1 = vpop.permute.xlu0 %2743 }
 0x3af   : > { %v5783_v7 = vsel %vm6223_vm13, %v5779_v1, %v2746_v32  ;;  %vm6239_vm13 = vmmov %vm6225_vm0 }
 0x3b0   : > { %vm6241_vm0 = vmmov %vm6230_vm3 }
 0x3b1   : > { %v2671_v50 = vsel %vm6241_vm0, %v5747_v48, 0.0  ;;  %vm6246_vm3 = vmmov %vm6241_vm0 }
 0x3b2   : > { %v4182_v10 = vpop.permute.xlu1 %4181  ;;  %v5785_v47 = vpop.permute.xlu0 %2765  ;;  %vm6248_vm4 = vmmov %vm6241_vm0 }
 0x3b3   : > { %v4183_v36 = vunpack.i.l.bf16 %v4182_v10  ;;  %v4184_v33 = vunpack.i.h.bf16 %v4182_v10 }
 0x3b6   : > { %v2848_v6 = vpop.permute.xlu1 %2847  ;;  %v5787_v3 = vpop.permute.xlu0 %4176 }
 0x3ba   : > { %v2854_v23 = vpop.permute.xlu1 %2853  ;;  %v2846_v22 = vpop.permute.xlu0 %2845 }
 0x3bb   : > { %v2861_v16 = vsel %vm6226_vm10, %v4183_v36, %v2846_v22  ;;  %v2862_v8 = vsel %vm6227_vm8, %v2846_v22, %v2848_v6  ;;  %vm6242_vm10 = vmmov %vm6241_vm0 }
 0x3bc   : > { %v2873_v49 = vadd.f32 %v2861_v16, %v2633_v54  ;;  %v2874_v28 = vadd.f32 %v2862_v8, %v2634_v19  ;;  %v2707_v54 = vsel %vm6239_vm13, %v2695_v57, 0.0  ;;  %v2759_v25 = vsel %vm6242_vm10, %v2747_v53, 0.0  ;;  %vm6243_vm8 = vmmov %vm6238_vm12 }
 0x3bd   : > { %v2760_v57 = vsel %vm6243_vm8, %v2748_v45, 0.0  ;;  %vm6253_vm12 = vmmov %vm6241_vm0  ;;  %vm6256_vm0 = vcmask 924672  }
 0x3be   : > { %v2879_v51 = vadd.f32 %v2873_v49, %v2669_v42  ;;  %v2880_v32 = vadd.f32 %v2874_v28, %v2670_v15  ;;  %v2858_v0 = vpop.permute.xlu1 %2857  ;;  %v2852_v10 = vpop.permute.xlu0 %2851  ;;  %v2673_v42 = vsel %vm6246_vm3, %v5755_v17, 0.0  ;;  %v2761_v17 = vsel %vm6248_vm4, %v2749_v18, 0.0  ;;  %vm6257_vm10 = vmmov %vm6256_vm0 }
 0x3bf   : > { %v2863_v6 = vsel %vm6236_vm2, %v4184_v33, %v2852_v10  ;;  %v2864_v60 = vsel %vm6237_vm9, %v2852_v10, %v2854_v23  ;;  %vm6251_vm2 = vmmov %vm6243_vm8 }
 0x3c0   : > { %v2885_v36 = vadd.f32 %v2879_v51, %v2705_v5  ;;  %v2886_v19 = vadd.f32 %v2880_v32, %v2706_v34  ;;  %v2875_v22 = vadd.f32 %v2863_v6, %v2635_v41  ;;  %v2876_v55 = vadd.f32 %v2864_v60, %v2636_v31  ;;  %vm6252_vm9 = vmmov %vm6247_vm7 }
 0x3c1   : > { %v2638_v32 = vsel %vm6247_vm7, %v5744_v30, 0.0  ;;  %v2751_v34 = vsel %vm6250_vm11, %v5771_v20, %v5779_v1  ;;  %v2674_v30 = vsel %vm6251_vm2, %v5758_v13, 0.0  ;;  %vm6254_vm13 = vmmov %vm6251_vm2 }
 0x3c2   : > { %v2892_v23 = vadd.f32 %v2886_v19, %v6147_v2  ;;  %v2881_v63 = vadd.f32 %v2875_v22, %v2671_v50  ;;  %v2882_v33 = vadd.f32 %v2876_v55, %v2672_v43  ;;  %v5827_v16 = vpop.permute.xlu1 %2771  ;;  %v2856_v8 = vpop.permute.xlu0 %2855  ;;  %v2891_v49 = vadd.f32 %v2885_v36, %v6145_v21  ;;  %vm6258_vm8 = vmmov %vm6251_vm2 }
 0x3c3   : > { %v2865_v48 = vsel %vm6245_vm15, %v2856_v8, %v2858_v0  ;;  %v2763_v20 = vsel %vm6253_vm12, %v2751_v34, 0.0  ;;  %v2764_v43 = vsel %vm6254_vm13, %v5783_v7, 0.0  ;;  %vm6259_vm5 = vmmov %vm6256_vm0  ;;  %vm6269_vm12 = vcmask 908288  }
 0x3c4   : > { %v2887_v28 = vadd.f32 %v2881_v63, %v2707_v54  ;;  %v2888_v2 = vadd.f32 %v2882_v33, %v2708_v61  ;;  %v2877_v31 = vadd.f32 %v2865_v48, %v2637_v44  ;;  %v2897_v15 = vadd.f32 %v2891_v49, %v2759_v25  ;;  %vm6260_vm15 = vmmov %vm6247_vm7 }
 0x3c5   : > { %v5840_v21 = vadd.f32 %v2892_v23, %v2760_v57  ;;  %v2709_v44 = vsel %vm6232_vm1, %v5765_v24, 0.0  ;;  %v4179_v49 = vunpack.i.h.bf16 %v5787_v3  ;;  %v4178_v25 = vunpack.i.l.bf16 %v5787_v3  ;;  %vm6261_vm3 = vmmov %vm6256_vm0 }
 0x3c6   : > { %v2883_v41 = vadd.f32 %v2877_v31, %v2673_v42  ;;  %v5842_v53 = vpop.permute.xlu1 %2777  ;;  %v2860_v5 = vpop.permute.xlu0 %2859  ;;  %v2894_v51 = vadd.f32 %v2888_v2, %v6149_v39  ;;  %v2893_v56 = vadd.f32 %v2887_v28, %v6146_v38  ;;  %v2783_v2 = vsel %vm6257_vm10, %v5785_v47, %v5777_v46  ;;  %vm6262_vm7 = vmmov %vm6232_vm1 }
 0x3c7   : > { %v2866_v10 = vsel %vm6249_vm6, %v2858_v0, %v2860_v5  ;;  %v2710_v0 = vsel %vm6252_vm9, %v5768_v40, 0.0  ;;  %v2784_v42 = vsel %vm6259_vm5, %v5777_v46, %v4178_v25  ;;  %v2795_v47 = vsel %vm6262_vm7, %v2783_v2, 0.0  ;;  %vm6265_vm6 = vmmov %vm6252_vm9 }
 0x3c8   : > { %v2889_v39 = vadd.f32 %v2883_v41, %v2709_v44  ;;  %v2878_v45 = vadd.f32 %v2866_v10, %v2638_v32  ;;  %v5858_v38 = vadd.f32 %v2893_v56, %v2761_v17  ;;  %vm6263_vm1 = vcmask 916480   ;;  %vm6267_vm2 = vmmov %vm6262_vm7 }
 0x3c9   : > { %vm6264_vm4 = vmmov %vm6263_vm1  ;;  %v2796_v46 = vsel %vm6265_vm6, %v2784_v42, 0.0 }
 0x3ca   : > { %v2884_v6 = vadd.f32 %v2878_v45, %v2674_v30  ;;  %v5863_v60 = vpop.permute.xlu1 %2781  ;;  %v2774_v24 = vpop.permute.xlu0 %2773  ;;  %v2895_v36 = vadd.f32 %v2889_v39, %v6150_v37  ;;  %v2903_v39 = vadd.f32 %v2897_v15, %v2795_v47  ;;  %vm6266_vm11 = vmmov %vm6263_vm1  ;;  %v2904_v30 = vadd.f32 %v5840_v21, %v2796_v46 }
 0x3cb   : > { %v2786_v18 = vsel %vm6256_vm0, %v2774_v24, %v4179_v49  ;;  %vm6268_vm9 = vmmov %vm6256_vm0 }
 0x3cc   : > { %v2890_v1 = vadd.f32 %v2884_v6, %v2710_v0  ;;  %v5871_v19 = vadd.f32 %v2895_v36, %v2763_v20  ;;  %v2798_v3 = vsel %vm6260_vm15, %v2786_v18, 0.0  ;;  %vm6270_vm13 = vmmov %vm6258_vm8 }
 0x3cd   : > { %vm6272_vm0 = vmmov %vm6269_vm12 }
 0x3ce   : > { %v2912_v22 = vpop.permute.xlu1 %2911  ;;  %v2896_v55 = vadd.f32 %v2890_v1, %v6148_v59  ;;  %v2780_v13 = vpop.permute.xlu0 %2779  ;;  %v4174_v59 = vunpack.i.h.bf16 %v5773_v4  ;;  %vm6273_vm10 = vmmov %vm6263_vm1 }
 0x3cf   : > { %v2787_v6 = vsel %vm6268_vm9, %v5842_v53, %v2780_v13  ;;  %vm6275_vm5 = vmmov %vm6270_vm13 }
 0x3d0   : > { %v5877_v54 = vadd.f32 %v2896_v55, %v2764_v43  ;;  %v2750_v57 = vsel %vm6255_vm14, %v5775_v29, %v4174_v59  ;;  %v2785_v29 = vsel %vm6261_vm3, %v5827_v16, %v2774_v24  ;;  %vm6271_vm14 = vmmov %vm6269_vm12 }
 0x3d1   : > { %v2762_v4 = vsel %vm6258_vm8, %v2750_v57, 0.0  ;;  %v2797_v16 = vsel %vm6267_vm2, %v2785_v29, 0.0  ;;  %vm6274_vm8 = vcmp.lt.s32.totalorder %v6162_v58, 16  ;;  %vm6276_vm15 = vmmov %vm6261_vm3 }
 0x3d2   : > { %v2916_v37 = vpop.permute.xlu1 %2915  ;;  %v2910_v61 = vpop.permute.xlu0 %2909  ;;  %v2900_v5 = vadd.f32 %v2894_v51, %v2762_v4  ;;  %v2788_v25 = vsel %vm6276_vm15, %v2780_v13, %v5863_v60  ;;  %vm6277_vm3 = vmmov %vm6267_vm2 }
 0x3d3   : > { %v2927_v44 = vsel %vm6263_vm1, %v2910_v61, %v2912_v22  ;;  %vm6278_vm7 = vmmov %vm6272_vm0 }
 0x3d4   : > { %v2906_v34 = vadd.f32 %v2900_v5, %v2798_v3  ;;  %v2939_v24 = vadd.f32 %v2927_v44, %v2903_v39  ;;  %v2800_v3 = vsel %vm6265_vm6, %v2788_v25, 0.0  ;;  %vm6281_vm2 = vmmov %vm6263_vm1 }
 0x3d6   : > { %v2922_v50 = vpop.permute.xlu1 %2921  ;;  %v4187_v40 = vpop.permute.xlu0 %4186 }
 0x3d7   : > { %v4189_v28 = vunpack.i.h.bf16 %v4187_v40  ;;  %v4188_v31 = vunpack.i.l.bf16 %v4187_v40  ;;  %v2905_v40 = vadd.f32 %v5858_v38, %v2797_v16 }
 0x3d9   : > { %v2928_v45 = vsel %vm6266_vm11, %v2912_v22, %v4188_v31  ;;  %vm6280_vm11 = vmmov %vm6272_vm0 }
 0x3da   : > { %v5879_v23 = vpop.permute.xlu1 %2925  ;;  %v2918_v63 = vpop.permute.xlu0 %2917  ;;  %v2940_v55 = vadd.f32 %v2928_v45, %v2904_v30 }
 0x3db   : > { %v2930_v17 = vsel %vm6264_vm4, %v2918_v63, %v4189_v28  ;;  %v2929_v43 = vsel %vm6273_vm10, %v2916_v37, %v2918_v63  ;;  %vm6279_vm4 = vmmov %vm6274_vm8 }
 0x3dc   : > { %v2942_v36 = vadd.f32 %v2930_v17, %v2906_v34  ;;  %v2941_v63 = vadd.f32 %v2929_v43, %v2905_v40  ;;  %vm6282_vm9 = vmmov %vm6279_vm4 }
 0x3de   : > { %v5881_v33 = vpop.permute.xlu1 %2964  ;;  %v5883_v8 = vpop.permute.xlu0 %2923 }
 0x3df   : > { %v2931_v38 = vsel %vm6263_vm1, %v2922_v50, %v5883_v8 }
 0x3e2   : > { %v2802_v7 = vpop.permute.xlu1 %2801 }
 0x3e3   : > { %v2960_v48 = vpop.permute.xlu0 %2959 }
 0x3e6   : > { %v4192_v41 = vpop.permute.xlu1 %4191 }
 0x3e7   : > { %v4194_v56 = vunpack.i.h.bf16 %v4192_v41  ;;  %v5902_v32 = vpop.permute.xlu0 %2969  ;;  %v4193_v10 = vunpack.i.l.bf16 %v4192_v41 }
 0x3ea   : > { %v2810_v51 = vpop.permute.xlu1 %2809 }
 0x3eb   : > { %v2822_v0 = vsel %vm6269_vm12, %v2810_v51, %v4194_v56  ;;  %v2804_v20 = vpop.permute.xlu0 %2803  ;;  %vm6283_vm12 = vmmov %vm6272_vm0 }
 0x3ec   : > { %v2834_v1 = vsel %vm6270_vm13, %v2822_v0, 0.0  ;;  %v2819_v15 = vsel %vm6271_vm14, %v2802_v7, %v2804_v20  ;;  %v2820_v22 = vsel %vm6272_vm0, %v2804_v20, %v4193_v10  ;;  %v2799_v7 = vsel %vm6277_vm3, %v2787_v6, 0.0  ;;  %vm6284_vm13 = vmmov %vm6275_vm5 }
 0x3ed   : > { %v2948_v61 = vadd.f32 %v2942_v36, %v2834_v1  ;;  %v2831_v21 = vsel %vm6274_vm8, %v2819_v15, 0.0  ;;  %v2832_v53 = vsel %vm6275_vm5, %v2820_v22, 0.0  ;;  %v2907_v9 = vadd.f32 %v5871_v19, %v2799_v7 }
 0x3ee   : > { %v2945_v59 = vadd.f32 %v2939_v24, %v2831_v21  ;;  %v2946_v49 = vadd.f32 %v2940_v55, %v2832_v53  ;;  %v2816_v41 = vpop.permute.xlu1 %2815  ;;  %v2932_v19 = vsel %vm6281_vm2, %v5883_v8, %v5879_v23 }
 0x3ef   : > { %v2954_v57 = vmul.f32 0.11111111, %v2948_v61  ;;  %v2808_v37 = vpop.permute.xlu0 %2807  ;;  %v2943_v5 = vadd.f32 %v2931_v38, %v2907_v9 }
 0x3f0   : > { %v2951_v18 = vmul.f32 0.11111111, %v2945_v59  ;;  %v2952_v28 = vmul.f32 0.11111111, %v2946_v49  ;;  %v2821_v2 = vsel %vm6278_vm7, %v2808_v37, %v2810_v51 }
 0x3f1   : > { %v2975_v31 = vadd.f32 %v5881_v33, %v2954_v57  ;;  %v2833_v60 = vsel %vm6279_vm4, %v2821_v2, 0.0 }
 0x3f2   : > { %v2972_v13 = vadd.f32 %v2960_v48, %v2951_v18  ;;  %v2973_v4 = vadd.f32 %v2960_v48, %v2952_v28  ;;  %v2947_v42 = vadd.f32 %v2941_v63, %v2833_v60  ;;  %v2908_v48 = vadd.f32 %v5877_v54, %v2800_v3 }
 0x3f3   : > { %2981 = vst [vmem:[%s4354_s26 + $0x98] sm:$0xff] %v2975_v31  ;;  %v2814_v29 = vpop.permute.xlu0 %2813 }
 0x3f4   : > { %2978 = vst [vmem:[%s4354_s26 + $0x80] sm:$0xff] %v2972_v13  ;;  %2979 = vst [vmem:[%s4354_s26 + $0x88] sm:$0xff] %v2973_v4  ;;  %v2953_v50 = vmul.f32 0.11111111, %v2947_v42  ;;  %v2823_v56 = vsel %vm6280_vm11, %v2814_v29, %v2816_v41  ;;  %v2944_v10 = vadd.f32 %v2932_v19, %v2908_v48 }
 0x3f5   : > { %v2835_v35 = vsel %vm6282_vm9, %v2823_v56, 0.0 }
 0x3f6   : > { %v2974_v47 = vadd.f32 %v5881_v33, %v2953_v50  ;;  %v2949_v44 = vadd.f32 %v2943_v5, %v2835_v35 }
 0x3f7   : > { %v2818_v17 = vpop.permute.xlu0 %2817 }
 0x3f8   : > { %2980 = vst [vmem:[%s4354_s26 + $0x90] sm:$0xff] %v2974_v47  ;;  %v2955_v46 = vmul.f32 0.11111111, %v2949_v44  ;;  %v2824_v34 = vsel %vm6283_vm12, %v2816_v41, %v2818_v17 }
 0x3f9   : > { %v2836_v23 = vsel %vm6284_vm13, %v2824_v34, 0.0 }
 0x3fa   : > { %v2976_v58 = vadd.f32 %v5902_v32, %v2955_v46  ;;  %v2950_v8 = vadd.f32 %v2944_v10, %v2836_v23 }
 0x3fc   : > { %2982 = vst [vmem:[%s4354_s26 + $0xa0] sm:$0xff] %v2976_v58  ;;  %v2956_v54 = vmul.f32 0.11111111, %v2950_v8 }
 0x3fe   : > { %v2977_v33 = vadd.f32 %v5902_v32, %v2956_v54 }
 0x400   : > { %2983 = vst [vmem:[%s4354_s26 + $0xa8] sm:$0xff] %v2977_v33 }
 0x426   : > { %v1615_v39 = vpop.f32.mrb[0].mxu1 }
 0x427   : > { %v3470_v45 = vadd.f32 %v1615_v39, %v5710_v14  ;;  %v1617_v16 = vpop.f32.mrb[1].mxu1 }
 0x428   : > { %v3471_v51 = vadd.f32 %v1617_v16, %v5710_v14 }
 0x429   : > { %1632 = vst [vmem:[%s4354_s26 + $0x20] sm:$0xff] %v3470_v45 }
 0x42a   : > { %1633 = vst [vmem:[%s4354_s26 + $0x28] sm:$0xff] %v3471_v51  ;;  %v1621_v11 = vpop.f32.mrb[2].mxu1 }
 0x42b   : > { %v3472_v30 = vadd.f32 %v1621_v11, %v5697_v26  ;;  %v1623_v6 = vpop.f32.mrb[3].mxu1 }
 0x42c   : > { %v3473_v24 = vadd.f32 %v1623_v6, %v5697_v26 }
 0x42d   : > { %1634 = vst [vmem:[%s4354_s26 + $0x30] sm:$0xff] %v3472_v30 }
 0x42e   : > { %1635 = vst [vmem:[%s4354_s26 + $0x38] sm:$0xff] %v3473_v24  ;;  %v1627_v32 = vpop.f32.mrb[4].mxu1 }
 0x42f   : > { %v3474_v36 = vadd.f32 %v1627_v32, %v5716_v27  ;;  %v1629_v0 = vpop.f32.mrb[5].mxu1 }
 0x430   : > { %v3475_v14 = vadd.f32 %v1629_v0, %v5716_v27  ;;  %v2556_v20 = vpop.f32.mrb[24].mxu0 }
 0x431   : > { %1636 = vst [vmem:[%s4354_s26 + $0x40] sm:$0xff] %v3474_v36  ;;  %v2557_v1 = vadd.f32 %v2556_v20, %v5708_v62  ;;  %v2558_v15 = vpop.f32.mrb[25].mxu0 }
 0x432   : > { %1637 = vst [vmem:[%s4354_s26 + $0x48] sm:$0xff] %v3475_v14  ;;  %v2559_v26 = vadd.f32 %v2558_v15, %v5708_v62 }
 0x433   : > { %2573 = vst [vmem:[%s4354_s26 + $0x50] sm:$0xff] %v2557_v1 }
 0x434   : > { %2574 = vst [vmem:[%s4354_s26 + $0x58] sm:$0xff] %v2559_v26  ;;  %v2562_v22 = vpop.f32.mrb[26].mxu0 }
 0x435   : > { %v2563_v55 = vadd.f32 %v2562_v22, %v5722_v52  ;;  %v2564_v43 = vpop.f32.mrb[27].mxu0 }
 0x436   : > { %v2565_v61 = vadd.f32 %v2564_v43, %v5722_v52 }
 0x437   : > { %2575 = vst [vmem:[%s4354_s26 + $0x60] sm:$0xff] %v2563_v55 }
 0x438   : > { %2576 = vst [vmem:[%s4354_s26 + $0x68] sm:$0xff] %v2565_v61  ;;  %v2568_v27 = vpop.f32.mrb[28].mxu0 }
 0x439   : > { %v2569_v21 = vadd.f32 %v2568_v27, %v5714_v12  ;;  %v2570_v53 = vpop.f32.mrb[29].mxu0 }
 0x43a   : > { %v2571_v40 = vadd.f32 %v2570_v53, %v5714_v12 }
 0x43b   : > { %2577 = vst [vmem:[%s4354_s26 + $0x70] sm:$0xff] %v2569_v21 }
 0x43c   : > { %2578 = vst [vmem:[%s4354_s26 + $0x78] sm:$0xff] %v2571_v40 }
 0x43d PF: > { %s19_s30 = sadd.s32 1, %s4202_s30  }
 0x43e   : > { %p16_p4 = scmp.ge.s32.totalorder %s19_s30, 4  }
 0x440   :  { %18 = sbr.rel (!%p16_p4) target bundleno = 1 (0x1), region = 86 }

</bundles_post_ra>
